<compile_context>
chip_gen: v5e
topology: v5e:2x2
jax: 0.10.0
libtpu: 0.0.40
codegen_flags: <defaults>
</compile_context>

<pallas_src>
import jax
import jax.numpy as jnp
from jax.experimental import pallas as pl
from jax.experimental.pallas import tpu as pltpu


def _lstm_fc_kernel(x_ref, m_ref, w_ih_ref, w_hh_ref, b_ref, w_fc_ref, b_fc_ref,
                    out_ref, h_sc, c_sc, xg_sc, hs_sc):
    """Whole-sequence LSTM + fused FC projection.

    Shapes:
      x_ref   (T, B, E)        m_ref  (T, B, HP)   (0/1 validity mask, pre-broadcast)
      w_ih    (E, 4*HP)        w_hh   (HP, 4*HP)   b (1, 4*HP)
      w_fc    (HP, TAGP)       b_fc   (1, TAGP)
      out_ref (T, B, TAGP)
      scratch: h_sc/c_sc (B, HP), xg_sc (T, B, 4*HP), hs_sc (T, B, HP)
    """
    T = x_ref.shape[0]
    HP = h_sc.shape[-1]

    # Hoist the recurrent weight load out of the serial loop.
    w_hh = w_hh_ref[...]

    # All input projections (+ bias) in one batched MXU matmul, outside the loop.
    xg_sc[...] = (
        jnp.einsum('tbe,eg->tbg', x_ref[...], w_ih_ref[...],
                   preferred_element_type=jnp.float32)
        + b_ref[...]
    )

    h_sc[...] = jnp.zeros_like(h_sc)
    c_sc[...] = jnp.zeros_like(c_sc)

    def step(t, carry):
        h = h_sc[...]
        c = c_sc[...]
        gates = xg_sc[t] + jnp.dot(h, w_hh, preferred_element_type=jnp.float32)

        # PyTorch gate order i, f, g, o; each gate block is HP wide (lane-aligned).
        i_g = jax.nn.sigmoid(gates[:, 0 * HP:1 * HP])
        f_g = jax.nn.sigmoid(gates[:, 1 * HP:2 * HP])
        g_g = jnp.tanh(gates[:, 2 * HP:3 * HP])
        o_g = jax.nn.sigmoid(gates[:, 3 * HP:4 * HP])

        c_new = f_g * c + i_g * g_g
        h_new = o_g * jnp.tanh(c_new)

        m_t = m_ref[t]                       # (B, HP): 1.0 valid step, 0.0 padding
        # PackedSequence semantics: do not advance state past the sequence length.
        h_sc[...] = jnp.where(m_t > 0, h_new, h)
        c_sc[...] = jnp.where(m_t > 0, c_new, c)
        # pad_packed_sequence zero-pads the LSTM output at padded steps.
        hs_sc[t] = h_new * m_t
        return carry

    jax.lax.fori_loop(0, T, step, 0, unroll=bool(T <= 16))

    # Fused FC projection on the VMEM-resident, lane-dense hidden slab.
    out_ref[...] = (
        jnp.einsum('tbh,hk->tbk', hs_sc[...], w_fc_ref[...],
                   preferred_element_type=jnp.float32)
        + b_fc_ref[...]
    )


def _pad_gate_cols(w, H, HP):
    """(K, 4*H) gate-ordered [i|f|g|o] -> (K, 4*HP), each gate block zero-padded."""
    K = w.shape[0]
    w4 = w.reshape(K, 4, H)
    return jnp.pad(w4, ((0, 0), (0, 0), (0, HP - H))).reshape(K, 4 * HP)


@jax.jit
def full_network_forward(x, lengths, w_ih, w_hh, b, w_fc_t, b_fc):
    """x: (B, T, E) float32 padded embedding vectors; lengths: (B,) int32.

    Returns (B, tag, T) float32, matching FullNetWork.forward().
    """
    B, T, E = x.shape
    H = w_hh.shape[0]
    tag = w_fc_t.shape[1]
    HP = ((H + 127) // 128) * 128            # lane-aligned hidden width
    TAGP = ((tag + 127) // 128) * 128        # lane-aligned tag width

    f32 = jnp.float32
    # Gate-blocked, lane-aligned padded parameters. Padded hidden units get all-zero
    # weights/bias -> their h stays exactly 0 and never leaks into real gates.
    w_ih_p = _pad_gate_cols(w_ih.astype(f32), H, HP)                                   # (E, 4HP)
    w_hh_p = _pad_gate_cols(jnp.pad(w_hh.astype(f32), ((0, HP - H), (0, 0))), H, HP)   # (HP, 4HP)
    b_p = _pad_gate_cols(b.astype(f32), H, HP)                                         # (1, 4HP)
    w_fc_p = jnp.pad(w_fc_t.astype(f32), ((0, HP - H), (0, TAGP - tag)))               # (HP, TAGP)
    b_fc_p = jnp.pad(b_fc.astype(f32).reshape(1, tag), ((0, 0), (0, TAGP - tag)))      # (1, TAGP)

    # Time-major views for the kernel; mask pre-broadcast to lane width so the
    # per-step masking is pure elementwise VPU work.
    x_tm = jnp.transpose(x, (1, 0, 2)).astype(f32)                                     # (T, B, E)
    mask = (jnp.arange(T)[None, :] < lengths[:, None]).astype(f32)                     # (B, T)
    mask_tm = jnp.broadcast_to(jnp.transpose(mask)[:, :, None], (T, B, HP))            # (T, B, HP)

    vmem_spec = pl.BlockSpec(memory_space=pltpu.MemorySpace.VMEM)
    tags_p = pl.pallas_call(
        _lstm_fc_kernel,
        out_shape=jax.ShapeDtypeStruct((T, B, TAGP), f32),
        in_specs=[vmem_spec] * 7,
        out_specs=vmem_spec,
        scratch_shapes=[
            pltpu.VMEM((B, HP), f32),            # h state
            pltpu.VMEM((B, HP), f32),            # c state
            pltpu.VMEM((T, B, 4 * HP), f32),     # cached x @ W_ih + bias for all t
            pltpu.VMEM((T, B, HP), f32),         # masked hidden slab for the FC
        ],
    )(x_tm, mask_tm, w_ih_p, w_hh_p, b_p, w_fc_p, b_fc_p)

    # TODO(synk): for large B, add a batch-tile grid axis marked "parallel" so
    # v7x's two TensorCores split the independent per-sequence recurrences.

    # Slice away the lane padding and apply the module's final transpose(-1, 1).
    return jnp.transpose(tags_p[:, :, :tag], (1, 2, 0))                                # (B, tag, T)


def _reference_forward(x, lengths, w_ih, w_hh, b, w_fc_t, b_fc):
    """Pure-JAX reference (lax.scan) used only to validate the kernel."""
    B, T, E = x.shape
    H = w_hh.shape[0]
    mask = (jnp.arange(T)[None, :] < lengths[:, None]).astype(x.dtype)

    def step(carry, inp):
        h, c = carry
        x_t, m_t = inp
        gates = x_t @ w_ih + h @ w_hh + b
        i_g = jax.nn.sigmoid(gates[:, 0 * H:1 * H])
        f_g = jax.nn.sigmoid(gates[:, 1 * H:2 * H])
        g_g = jnp.tanh(gates[:, 2 * H:3 * H])
        o_g = jax.nn.sigmoid(gates[:, 3 * H:4 * H])
        c_new = f_g * c + i_g * g_g
        h_new = o_g * jnp.tanh(c_new)
        h = jnp.where(m_t > 0, h_new, h)
        c = jnp.where(m_t > 0, c_new, c)
        return (h, c), h_new * m_t

    x_tm = jnp.transpose(x, (1, 0, 2))
    m_tm = jnp.transpose(mask, (1, 0))[:, :, None]
    init = (jnp.zeros((B, H), x.dtype), jnp.zeros((B, H), x.dtype))
    _, outs = jax.lax.scan(step, init, (x_tm, m_tm))     # (T, B, H)
    tags = outs @ w_fc_t + b_fc                          # (T, B, tag)
    return jnp.transpose(tags, (1, 2, 0))                # (B, tag, T)


if __name__ == "__main__":
    # Small, module-consistent shapes.
    B, T = 2, 8
    EMBEDDING, HIDDEN, VOCAB, TAG = 32, 64, 100, 8

    key = jax.random.PRNGKey(0)
    k_x, k_wih, k_whh, k_bih, k_bhh, k_wfc, k_bfc = jax.random.split(key, 7)

    # Packed/padded embedding vectors (the nn.Embedding lookup happens before
    # forward() in the PyTorch pipeline, so we feed vectors directly).
    x = jax.random.normal(k_x, (B, T, EMBEDDING), dtype=jnp.float32)
    lengths = jnp.array([T, T - 3], dtype=jnp.int32)   # ragged lengths, descending

    # Deterministic parameter init (PyTorch-like uniform(-1/sqrt(H), 1/sqrt(H))).
    s = 1.0 / jnp.sqrt(jnp.float32(HIDDEN))
    w_ih = jax.random.uniform(k_wih, (EMBEDDING, 4 * HIDDEN), jnp.float32, -s, s)
    w_hh = jax.random.uniform(k_whh, (HIDDEN, 4 * HIDDEN), jnp.float32, -s, s)
    b_ih = jax.random.uniform(k_bih, (1, 4 * HIDDEN), jnp.float32, -s, s)
    b_hh = jax.random.uniform(k_bhh, (1, 4 * HIDDEN), jnp.float32, -s, s)
    b = b_ih + b_hh
    w_fc_t = jax.random.uniform(k_wfc, (HIDDEN, TAG), jnp.float32, -s, s)  # Linear.weight.T
    b_fc = jax.random.uniform(k_bfc, (1, TAG), jnp.float32, -s, s)

    out = full_network_forward(x, lengths, w_ih, w_hh, b, w_fc_t, b_fc)
    out = jax.block_until_ready(out)

    ref = _reference_forward(x, lengths, w_ih, w_hh, b, w_fc_t, b_fc)
    assert out.shape == (B, TAG, T), out.shape
    assert jnp.allclose(out, ref, atol=1e-4, rtol=1e-4), float(jnp.max(jnp.abs(out - ref)))

    print("KERNEL_OK")
</pallas_src>

<mosaic_0001>
module attributes {stable_mosaic.version = 11 : i64} {
  func.func @_lstm_fc_kernel(%arg0: memref<8x2x32xf32, #tpu.memory_space<vmem>>, %arg1: memref<8x2x128xf32, #tpu.memory_space<vmem>>, %arg2: memref<32x512xf32, #tpu.memory_space<vmem>>, %arg3: memref<128x512xf32, #tpu.memory_space<vmem>>, %arg4: memref<1x512xf32, #tpu.memory_space<vmem>>, %arg5: memref<128x128xf32, #tpu.memory_space<vmem>>, %arg6: memref<1x128xf32, #tpu.memory_space<vmem>>, %arg7: memref<8x2x128xf32, #tpu.memory_space<vmem>>, %arg8: memref<2x128xf32, #tpu.memory_space<vmem>>, %arg9: memref<2x128xf32, #tpu.memory_space<vmem>>, %arg10: memref<8x2x512xf32, #tpu.memory_space<vmem>>, %arg11: memref<8x2x128xf32, #tpu.memory_space<vmem>>) attributes {dimension_semantics = [], scalar_prefetch = 0 : i64, scratch_operands = 4 : i64, tpu.core_type = #tpu.core_type<tc>} {
    %c0 = arith.constant 0 : index
    %c0_0 = arith.constant 0 : index
    %0 = vector.load %arg3[%c0, %c0_0] : memref<128x512xf32, #tpu.memory_space<vmem>>, vector<128x512xf32>
    %c0_1 = arith.constant 0 : index
    %c0_2 = arith.constant 0 : index
    %c0_3 = arith.constant 0 : index
    %1 = vector.load %arg0[%c0_1, %c0_2, %c0_3] : memref<8x2x32xf32, #tpu.memory_space<vmem>>, vector<8x2x32xf32>
    %c0_4 = arith.constant 0 : index
    %c0_5 = arith.constant 0 : index
    %2 = vector.load %arg2[%c0_4, %c0_5] : memref<32x512xf32, #tpu.memory_space<vmem>>, vector<32x512xf32>
    "tpu.trace_start"() <{level = 10 : i32, message = "tbe,eg->tbg"}> : () -> ()
    %cst = arith.constant dense<0.000000e+00> : vector<8x2x512xf32>
    %3 = tpu.matmul %1, %2, %cst {dimension_numbers = #tpu.dot_dimension_numbers<[2], [0], [0, 1], [1], [0, 0, 0, 1, 1, 1], [], []>} : vector<8x2x32xf32>, vector<32x512xf32>, vector<8x2x512xf32> -> vector<8x2x512xf32>
    "tpu.trace_stop"() : () -> ()
    %c0_6 = arith.constant 0 : index
    %c0_7 = arith.constant 0 : index
    %4 = vector.load %arg4[%c0_6, %c0_7] : memref<1x512xf32, #tpu.memory_space<vmem>>, vector<1x512xf32>
    %5 = vector.shape_cast %4 : vector<1x512xf32> to vector<1x1x512xf32>
    %6 = vector.broadcast %5 : vector<1x1x512xf32> to vector<8x2x512xf32>
    %7 = arith.addf %3, %6 : vector<8x2x512xf32>
    %c0_8 = arith.constant 0 : index
    %c0_9 = arith.constant 0 : index
    %c0_10 = arith.constant 0 : index
    %8 = vector.load %arg10[%c0_8, %c0_9, %c0_10] : memref<8x2x512xf32, #tpu.memory_space<vmem>>, vector<8x2x512xf32>
    tpu.vector_store %arg10[%c0_8, %c0_9, %c0_10], %7 {strides = array<i32>} : memref<8x2x512xf32, #tpu.memory_space<vmem>>, vector<8x2x512xf32>,
    %cst_11 = arith.constant 0.000000e+00 : f32
    %9 = vector.broadcast %cst_11 : f32 to vector<2x128xf32>
    %c0_12 = arith.constant 0 : index
    %c0_13 = arith.constant 0 : index
    %10 = vector.load %arg8[%c0_12, %c0_13] : memref<2x128xf32, #tpu.memory_space<vmem>>, vector<2x128xf32>
    tpu.vector_store %arg8[%c0_12, %c0_13], %9 {strides = array<i32>} : memref<2x128xf32, #tpu.memory_space<vmem>>, vector<2x128xf32>,
    %cst_14 = arith.constant 0.000000e+00 : f32
    %11 = vector.broadcast %cst_14 : f32 to vector<2x128xf32>
    %c0_15 = arith.constant 0 : index
    %c0_16 = arith.constant 0 : index
    %12 = vector.load %arg9[%c0_15, %c0_16] : memref<2x128xf32, #tpu.memory_space<vmem>>, vector<2x128xf32>
    tpu.vector_store %arg9[%c0_15, %c0_16], %11 {strides = array<i32>} : memref<2x128xf32, #tpu.memory_space<vmem>>, vector<2x128xf32>,
    %c0_i32 = arith.constant 0 : i32
    %c0_17 = arith.constant 0 : index
    %c0_18 = arith.constant 0 : index
    %13 = vector.load %arg8[%c0_17, %c0_18] : memref<2x128xf32, #tpu.memory_space<vmem>>, vector<2x128xf32>
    %c0_19 = arith.constant 0 : index
    %c0_20 = arith.constant 0 : index
    %14 = vector.load %arg9[%c0_19, %c0_20] : memref<2x128xf32, #tpu.memory_space<vmem>>, vector<2x128xf32>
    %15 = arith.index_cast %c0_i32 : i32 to index
    %c0_21 = arith.constant 0 : index
    %c0_22 = arith.constant 0 : index
    %16 = vector.load %arg10[%15, %c0_21, %c0_22] : memref<8x2x512xf32, #tpu.memory_space<vmem>>, vector<1x2x512xf32>
    %17 = vector.shape_cast %16 : vector<1x2x512xf32> to vector<2x512xf32>
    %cst_23 = arith.constant dense<0.000000e+00> : vector<2x512xf32>
    %18 = tpu.matmul %13, %0, %cst_23 {dimension_numbers = #tpu.dot_dimension_numbers<[1], [0], [0], [1], [0, 0, 1, 1], [], []>} : vector<2x128xf32>, vector<128x512xf32>, vector<2x512xf32> -> vector<2x512xf32>
    %19 = arith.addf %17, %18 : vector<2x512xf32>
    %20 = vector.extract_strided_slice %19 {offsets = [0, 0], sizes = [2, 128], strides = [1, 1]} : vector<2x512xf32> to vector<2x128xf32>
    %21 = arith.negf %20 : vector<2x128xf32>
    %22 = math.exp %21 : vector<2x128xf32>
    %cst_24 = arith.constant 1.000000e+00 : f32
    %23 = vector.broadcast %cst_24 : f32 to vector<2x128xf32>
    %24 = arith.addf %23, %22 : vector<2x128xf32>
    %25 = arith.divf %23, %24 : vector<2x128xf32>
    %26 = vector.extract_strided_slice %19 {offsets = [0, 128], sizes = [2, 128], strides = [1, 1]} : vector<2x512xf32> to vector<2x128xf32>
    %27 = arith.negf %26 : vector<2x128xf32>
    %28 = math.exp %27 : vector<2x128xf32>
    %cst_25 = arith.constant 1.000000e+00 : f32
    %29 = vector.broadcast %cst_25 : f32 to vector<2x128xf32>
    %30 = arith.addf %29, %28 : vector<2x128xf32>
    %31 = arith.divf %29, %30 : vector<2x128xf32>
    %32 = vector.extract_strided_slice %19 {offsets = [0, 256], sizes = [2, 128], strides = [1, 1]} : vector<2x512xf32> to vector<2x128xf32>
    %33 = math.tanh %32 : vector<2x128xf32>
    %34 = vector.extract_strided_slice %19 {offsets = [0, 384], sizes = [2, 128], strides = [1, 1]} : vector<2x512xf32> to vector<2x128xf32>
    %35 = arith.negf %34 : vector<2x128xf32>
    %36 = math.exp %35 : vector<2x128xf32>
    %cst_26 = arith.constant 1.000000e+00 : f32
    %37 = vector.broadcast %cst_26 : f32 to vector<2x128xf32>
    %38 = arith.addf %37, %36 : vector<2x128xf32>
    %39 = arith.divf %37, %38 : vector<2x128xf32>
    %40 = arith.mulf %31, %14 : vector<2x128xf32>
    %41 = arith.mulf %25, %33 : vector<2x128xf32>
    %42 = arith.addf %40, %41 : vector<2x128xf32>
    %43 = math.tanh %42 : vector<2x128xf32>
    %44 = arith.mulf %39, %43 : vector<2x128xf32>
    %45 = arith.index_cast %c0_i32 : i32 to index
    %c0_27 = arith.constant 0 : index
    %c0_28 = arith.constant 0 : index
    %46 = vector.load %arg1[%45, %c0_27, %c0_28] : memref<8x2x128xf32, #tpu.memory_space<vmem>>, vector<1x2x128xf32>
    %47 = vector.shape_cast %46 : vector<1x2x128xf32> to vector<2x128xf32>
    %cst_29 = arith.constant 0.000000e+00 : f32
    %48 = vector.broadcast %cst_29 : f32 to vector<2x128xf32>
    %49 = arith.cmpf ogt, %47, %48 : vector<2x128xf32>
    %50 = arith.select %49, %44, %13 : vector<2x128xi1>, vector<2x128xf32>
    %c0_30 = arith.constant 0 : index
    %c0_31 = arith.constant 0 : index
    %51 = vector.load %arg8[%c0_30, %c0_31] : memref<2x128xf32, #tpu.memory_space<vmem>>, vector<2x128xf32>
    tpu.vector_store %arg8[%c0_30, %c0_31], %50 {strides = array<i32>} : memref<2x128xf32, #tpu.memory_space<vmem>>, vector<2x128xf32>,
    %cst_32 = arith.constant 0.000000e+00 : f32
    %52 = vector.broadcast %cst_32 : f32 to vector<2x128xf32>
    %53 = arith.cmpf ogt, %47, %52 : vector<2x128xf32>
    %54 = arith.select %53, %42, %14 : vector<2x128xi1>, vector<2x128xf32>
    %c0_33 = arith.constant 0 : index
    %c0_34 = arith.constant 0 : index
    %55 = vector.load %arg9[%c0_33, %c0_34] : memref<2x128xf32, #tpu.memory_space<vmem>>, vector<2x128xf32>
    tpu.vector_store %arg9[%c0_33, %c0_34], %54 {strides = array<i32>} : memref<2x128xf32, #tpu.memory_space<vmem>>, vector<2x128xf32>,
    %56 = arith.mulf %44, %47 : vector<2x128xf32>
    %57 = arith.index_cast %c0_i32 : i32 to index
    %c0_35 = arith.constant 0 : index
    %c0_36 = arith.constant 0 : index
    %58 = vector.load %arg11[%57, %c0_35, %c0_36] : memref<8x2x128xf32, #tpu.memory_space<vmem>>, vector<1x2x128xf32>
    %59 = vector.shape_cast %58 : vector<1x2x128xf32> to vector<2x128xf32>
    %60 = vector.shape_cast %56 : vector<2x128xf32> to vector<1x2x128xf32>
    tpu.vector_store %arg11[%57, %c0_35, %c0_36], %60 {strides = array<i32>} : memref<8x2x128xf32, #tpu.memory_space<vmem>>, vector<1x2x128xf32>,
    %c1_i32 = arith.constant 1 : i32
    %c0_37 = arith.constant 0 : index
    %c0_38 = arith.constant 0 : index
    %61 = vector.load %arg8[%c0_37, %c0_38] : memref<2x128xf32, #tpu.memory_space<vmem>>, vector<2x128xf32>
    %c0_39 = arith.constant 0 : index
    %c0_40 = arith.constant 0 : index
    %62 = vector.load %arg9[%c0_39, %c0_40] : memref<2x128xf32, #tpu.memory_space<vmem>>, vector<2x128xf32>
    %63 = arith.index_cast %c1_i32 : i32 to index
    %c0_41 = arith.constant 0 : index
    %c0_42 = arith.constant 0 : index
    %64 = vector.load %arg10[%63, %c0_41, %c0_42] : memref<8x2x512xf32, #tpu.memory_space<vmem>>, vector<1x2x512xf32>
    %65 = vector.shape_cast %64 : vector<1x2x512xf32> to vector<2x512xf32>
    %cst_43 = arith.constant dense<0.000000e+00> : vector<2x512xf32>
    %66 = tpu.matmul %61, %0, %cst_43 {dimension_numbers = #tpu.dot_dimension_numbers<[1], [0], [0], [1], [0, 0, 1, 1], [], []>} : vector<2x128xf32>, vector<128x512xf32>, vector<2x512xf32> -> vector<2x512xf32>
    %67 = arith.addf %65, %66 : vector<2x512xf32>
    %68 = vector.extract_strided_slice %67 {offsets = [0, 0], sizes = [2, 128], strides = [1, 1]} : vector<2x512xf32> to vector<2x128xf32>
    %69 = arith.negf %68 : vector<2x128xf32>
    %70 = math.exp %69 : vector<2x128xf32>
    %cst_44 = arith.constant 1.000000e+00 : f32
    %71 = vector.broadcast %cst_44 : f32 to vector<2x128xf32>
    %72 = arith.addf %71, %70 : vector<2x128xf32>
    %73 = arith.divf %71, %72 : vector<2x128xf32>
    %74 = vector.extract_strided_slice %67 {offsets = [0, 128], sizes = [2, 128], strides = [1, 1]} : vector<2x512xf32> to vector<2x128xf32>
    %75 = arith.negf %74 : vector<2x128xf32>
    %76 = math.exp %75 : vector<2x128xf32>
    %cst_45 = arith.constant 1.000000e+00 : f32
    %77 = vector.broadcast %cst_45 : f32 to vector<2x128xf32>
    %78 = arith.addf %77, %76 : vector<2x128xf32>
    %79 = arith.divf %77, %78 : vector<2x128xf32>
    %80 = vector.extract_strided_slice %67 {offsets = [0, 256], sizes = [2, 128], strides = [1, 1]} : vector<2x512xf32> to vector<2x128xf32>
    %81 = math.tanh %80 : vector<2x128xf32>
    %82 = vector.extract_strided_slice %67 {offsets = [0, 384], sizes = [2, 128], strides = [1, 1]} : vector<2x512xf32> to vector<2x128xf32>
    %83 = arith.negf %82 : vector<2x128xf32>
    %84 = math.exp %83 : vector<2x128xf32>
    %cst_46 = arith.constant 1.000000e+00 : f32
    %85 = vector.broadcast %cst_46 : f32 to vector<2x128xf32>
    %86 = arith.addf %85, %84 : vector<2x128xf32>
    %87 = arith.divf %85, %86 : vector<2x128xf32>
    %88 = arith.mulf %79, %62 : vector<2x128xf32>
    %89 = arith.mulf %73, %81 : vector<2x128xf32>
    %90 = arith.addf %88, %89 : vector<2x128xf32>
    %91 = math.tanh %90 : vector<2x128xf32>
    %92 = arith.mulf %87, %91 : vector<2x128xf32>
    %93 = arith.index_cast %c1_i32 : i32 to index
    %c0_47 = arith.constant 0 : index
    %c0_48 = arith.constant 0 : index
    %94 = vector.load %arg1[%93, %c0_47, %c0_48] : memref<8x2x128xf32, #tpu.memory_space<vmem>>, vector<1x2x128xf32>
    %95 = vector.shape_cast %94 : vector<1x2x128xf32> to vector<2x128xf32>
    %cst_49 = arith.constant 0.000000e+00 : f32
    %96 = vector.broadcast %cst_49 : f32 to vector<2x128xf32>
    %97 = arith.cmpf ogt, %95, %96 : vector<2x128xf32>
    %98 = arith.select %97, %92, %61 : vector<2x128xi1>, vector<2x128xf32>
    %c0_50 = arith.constant 0 : index
    %c0_51 = arith.constant 0 : index
    %99 = vector.load %arg8[%c0_50, %c0_51] : memref<2x128xf32, #tpu.memory_space<vmem>>, vector<2x128xf32>
    tpu.vector_store %arg8[%c0_50, %c0_51], %98 {strides = array<i32>} : memref<2x128xf32, #tpu.memory_space<vmem>>, vector<2x128xf32>,
    %cst_52 = arith.constant 0.000000e+00 : f32
    %100 = vector.broadcast %cst_52 : f32 to vector<2x128xf32>
    %101 = arith.cmpf ogt, %95, %100 : vector<2x128xf32>
    %102 = arith.select %101, %90, %62 : vector<2x128xi1>, vector<2x128xf32>
    %c0_53 = arith.constant 0 : index
    %c0_54 = arith.constant 0 : index
    %103 = vector.load %arg9[%c0_53, %c0_54] : memref<2x128xf32, #tpu.memory_space<vmem>>, vector<2x128xf32>
    tpu.vector_store %arg9[%c0_53, %c0_54], %102 {strides = array<i32>} : memref<2x128xf32, #tpu.memory_space<vmem>>, vector<2x128xf32>,
    %104 = arith.mulf %92, %95 : vector<2x128xf32>
    %105 = arith.index_cast %c1_i32 : i32 to index
    %c0_55 = arith.constant 0 : index
    %c0_56 = arith.constant 0 : index
    %106 = vector.load %arg11[%105, %c0_55, %c0_56] : memref<8x2x128xf32, #tpu.memory_space<vmem>>, vector<1x2x128xf32>
    %107 = vector.shape_cast %106 : vector<1x2x128xf32> to vector<2x128xf32>
    %108 = vector.shape_cast %104 : vector<2x128xf32> to vector<1x2x128xf32>
    tpu.vector_store %arg11[%105, %c0_55, %c0_56], %108 {strides = array<i32>} : memref<8x2x128xf32, #tpu.memory_space<vmem>>, vector<1x2x128xf32>,
    %c2_i32 = arith.constant 2 : i32
    %c0_57 = arith.constant 0 : index
    %c0_58 = arith.constant 0 : index
    %109 = vector.load %arg8[%c0_57, %c0_58] : memref<2x128xf32, #tpu.memory_space<vmem>>, vector<2x128xf32>
    %c0_59 = arith.constant 0 : index
    %c0_60 = arith.constant 0 : index
    %110 = vector.load %arg9[%c0_59, %c0_60] : memref<2x128xf32, #tpu.memory_space<vmem>>, vector<2x128xf32>
    %111 = arith.index_cast %c2_i32 : i32 to index
    %c0_61 = arith.constant 0 : index
    %c0_62 = arith.constant 0 : index
    %112 = vector.load %arg10[%111, %c0_61, %c0_62] : memref<8x2x512xf32, #tpu.memory_space<vmem>>, vector<1x2x512xf32>
    %113 = vector.shape_cast %112 : vector<1x2x512xf32> to vector<2x512xf32>
    %cst_63 = arith.constant dense<0.000000e+00> : vector<2x512xf32>
    %114 = tpu.matmul %109, %0, %cst_63 {dimension_numbers = #tpu.dot_dimension_numbers<[1], [0], [0], [1], [0, 0, 1, 1], [], []>} : vector<2x128xf32>, vector<128x512xf32>, vector<2x512xf32> -> vector<2x512xf32>
    %115 = arith.addf %113, %114 : vector<2x512xf32>
    %116 = vector.extract_strided_slice %115 {offsets = [0, 0], sizes = [2, 128], strides = [1, 1]} : vector<2x512xf32> to vector<2x128xf32>
    %117 = arith.negf %116 : vector<2x128xf32>
    %118 = math.exp %117 : vector<2x128xf32>
    %cst_64 = arith.constant 1.000000e+00 : f32
    %119 = vector.broadcast %cst_64 : f32 to vector<2x128xf32>
    %120 = arith.addf %119, %118 : vector<2x128xf32>
    %121 = arith.divf %119, %120 : vector<2x128xf32>
    %122 = vector.extract_strided_slice %115 {offsets = [0, 128], sizes = [2, 128], strides = [1, 1]} : vector<2x512xf32> to vector<2x128xf32>
    %123 = arith.negf %122 : vector<2x128xf32>
    %124 = math.exp %123 : vector<2x128xf32>
    %cst_65 = arith.constant 1.000000e+00 : f32
    %125 = vector.broadcast %cst_65 : f32 to vector<2x128xf32>
    %126 = arith.addf %125, %124 : vector<2x128xf32>
    %127 = arith.divf %125, %126 : vector<2x128xf32>
    %128 = vector.extract_strided_slice %115 {offsets = [0, 256], sizes = [2, 128], strides = [1, 1]} : vector<2x512xf32> to vector<2x128xf32>
    %129 = math.tanh %128 : vector<2x128xf32>
    %130 = vector.extract_strided_slice %115 {offsets = [0, 384], sizes = [2, 128], strides = [1, 1]} : vector<2x512xf32> to vector<2x128xf32>
    %131 = arith.negf %130 : vector<2x128xf32>
    %132 = math.exp %131 : vector<2x128xf32>
    %cst_66 = arith.constant 1.000000e+00 : f32
    %133 = vector.broadcast %cst_66 : f32 to vector<2x128xf32>
    %134 = arith.addf %133, %132 : vector<2x128xf32>
    %135 = arith.divf %133, %134 : vector<2x128xf32>
    %136 = arith.mulf %127, %110 : vector<2x128xf32>
    %137 = arith.mulf %121, %129 : vector<2x128xf32>
    %138 = arith.addf %136, %137 : vector<2x128xf32>
    %139 = math.tanh %138 : vector<2x128xf32>
    %140 = arith.mulf %135, %139 : vector<2x128xf32>
    %141 = arith.index_cast %c2_i32 : i32 to index
    %c0_67 = arith.constant 0 : index
    %c0_68 = arith.constant 0 : index
    %142 = vector.load %arg1[%141, %c0_67, %c0_68] : memref<8x2x128xf32, #tpu.memory_space<vmem>>, vector<1x2x128xf32>
    %143 = vector.shape_cast %142 : vector<1x2x128xf32> to vector<2x128xf32>
    %cst_69 = arith.constant 0.000000e+00 : f32
    %144 = vector.broadcast %cst_69 : f32 to vector<2x128xf32>
    %145 = arith.cmpf ogt, %143, %144 : vector<2x128xf32>
    %146 = arith.select %145, %140, %109 : vector<2x128xi1>, vector<2x128xf32>
    %c0_70 = arith.constant 0 : index
    %c0_71 = arith.constant 0 : index
    %147 = vector.load %arg8[%c0_70, %c0_71] : memref<2x128xf32, #tpu.memory_space<vmem>>, vector<2x128xf32>
    tpu.vector_store %arg8[%c0_70, %c0_71], %146 {strides = array<i32>} : memref<2x128xf32, #tpu.memory_space<vmem>>, vector<2x128xf32>,
    %cst_72 = arith.constant 0.000000e+00 : f32
    %148 = vector.broadcast %cst_72 : f32 to vector<2x128xf32>
    %149 = arith.cmpf ogt, %143, %148 : vector<2x128xf32>
    %150 = arith.select %149, %138, %110 : vector<2x128xi1>, vector<2x128xf32>
    %c0_73 = arith.constant 0 : index
    %c0_74 = arith.constant 0 : index
    %151 = vector.load %arg9[%c0_73, %c0_74] : memref<2x128xf32, #tpu.memory_space<vmem>>, vector<2x128xf32>
    tpu.vector_store %arg9[%c0_73, %c0_74], %150 {strides = array<i32>} : memref<2x128xf32, #tpu.memory_space<vmem>>, vector<2x128xf32>,
    %152 = arith.mulf %140, %143 : vector<2x128xf32>
    %153 = arith.index_cast %c2_i32 : i32 to index
    %c0_75 = arith.constant 0 : index
    %c0_76 = arith.constant 0 : index
    %154 = vector.load %arg11[%153, %c0_75, %c0_76] : memref<8x2x128xf32, #tpu.memory_space<vmem>>, vector<1x2x128xf32>
    %155 = vector.shape_cast %154 : vector<1x2x128xf32> to vector<2x128xf32>
    %156 = vector.shape_cast %152 : vector<2x128xf32> to vector<1x2x128xf32>
    tpu.vector_store %arg11[%153, %c0_75, %c0_76], %156 {strides = array<i32>} : memref<8x2x128xf32, #tpu.memory_space<vmem>>, vector<1x2x128xf32>,
    %c3_i32 = arith.constant 3 : i32
    %c0_77 = arith.constant 0 : index
    %c0_78 = arith.constant 0 : index
    %157 = vector.load %arg8[%c0_77, %c0_78] : memref<2x128xf32, #tpu.memory_space<vmem>>, vector<2x128xf32>
    %c0_79 = arith.constant 0 : index
    %c0_80 = arith.constant 0 : index
    %158 = vector.load %arg9[%c0_79, %c0_80] : memref<2x128xf32, #tpu.memory_space<vmem>>, vector<2x128xf32>
    %159 = arith.index_cast %c3_i32 : i32 to index
    %c0_81 = arith.constant 0 : index
    %c0_82 = arith.constant 0 : index
    %160 = vector.load %arg10[%159, %c0_81, %c0_82] : memref<8x2x512xf32, #tpu.memory_space<vmem>>, vector<1x2x512xf32>
    %161 = vector.shape_cast %160 : vector<1x2x512xf32> to vector<2x512xf32>
    %cst_83 = arith.constant dense<0.000000e+00> : vector<2x512xf32>
    %162 = tpu.matmul %157, %0, %cst_83 {dimension_numbers = #tpu.dot_dimension_numbers<[1], [0], [0], [1], [0, 0, 1, 1], [], []>} : vector<2x128xf32>, vector<128x512xf32>, vector<2x512xf32> -> vector<2x512xf32>
    %163 = arith.addf %161, %162 : vector<2x512xf32>
    %164 = vector.extract_strided_slice %163 {offsets = [0, 0], sizes = [2, 128], strides = [1, 1]} : vector<2x512xf32> to vector<2x128xf32>
    %165 = arith.negf %164 : vector<2x128xf32>
    %166 = math.exp %165 : vector<2x128xf32>
    %cst_84 = arith.constant 1.000000e+00 : f32
    %167 = vector.broadcast %cst_84 : f32 to vector<2x128xf32>
    %168 = arith.addf %167, %166 : vector<2x128xf32>
    %169 = arith.divf %167, %168 : vector<2x128xf32>
    %170 = vector.extract_strided_slice %163 {offsets = [0, 128], sizes = [2, 128], strides = [1, 1]} : vector<2x512xf32> to vector<2x128xf32>
    %171 = arith.negf %170 : vector<2x128xf32>
    %172 = math.exp %171 : vector<2x128xf32>
    %cst_85 = arith.constant 1.000000e+00 : f32
    %173 = vector.broadcast %cst_85 : f32 to vector<2x128xf32>
    %174 = arith.addf %173, %172 : vector<2x128xf32>
    %175 = arith.divf %173, %174 : vector<2x128xf32>
    %176 = vector.extract_strided_slice %163 {offsets = [0, 256], sizes = [2, 128], strides = [1, 1]} : vector<2x512xf32> to vector<2x128xf32>
    %177 = math.tanh %176 : vector<2x128xf32>
    %178 = vector.extract_strided_slice %163 {offsets = [0, 384], sizes = [2, 128], strides = [1, 1]} : vector<2x512xf32> to vector<2x128xf32>
    %179 = arith.negf %178 : vector<2x128xf32>
    %180 = math.exp %179 : vector<2x128xf32>
    %cst_86 = arith.constant 1.000000e+00 : f32
    %181 = vector.broadcast %cst_86 : f32 to vector<2x128xf32>
    %182 = arith.addf %181, %180 : vector<2x128xf32>
    %183 = arith.divf %181, %182 : vector<2x128xf32>
    %184 = arith.mulf %175, %158 : vector<2x128xf32>
    %185 = arith.mulf %169, %177 : vector<2x128xf32>
    %186 = arith.addf %184, %185 : vector<2x128xf32>
    %187 = math.tanh %186 : vector<2x128xf32>
    %188 = arith.mulf %183, %187 : vector<2x128xf32>
    %189 = arith.index_cast %c3_i32 : i32 to index
    %c0_87 = arith.constant 0 : index
    %c0_88 = arith.constant 0 : index
    %190 = vector.load %arg1[%189, %c0_87, %c0_88] : memref<8x2x128xf32, #tpu.memory_space<vmem>>, vector<1x2x128xf32>
    %191 = vector.shape_cast %190 : vector<1x2x128xf32> to vector<2x128xf32>
    %cst_89 = arith.constant 0.000000e+00 : f32
    %192 = vector.broadcast %cst_89 : f32 to vector<2x128xf32>
    %193 = arith.cmpf ogt, %191, %192 : vector<2x128xf32>
    %194 = arith.select %193, %188, %157 : vector<2x128xi1>, vector<2x128xf32>
    %c0_90 = arith.constant 0 : index
    %c0_91 = arith.constant 0 : index
    %195 = vector.load %arg8[%c0_90, %c0_91] : memref<2x128xf32, #tpu.memory_space<vmem>>, vector<2x128xf32>
    tpu.vector_store %arg8[%c0_90, %c0_91], %194 {strides = array<i32>} : memref<2x128xf32, #tpu.memory_space<vmem>>, vector<2x128xf32>,
    %cst_92 = arith.constant 0.000000e+00 : f32
    %196 = vector.broadcast %cst_92 : f32 to vector<2x128xf32>
    %197 = arith.cmpf ogt, %191, %196 : vector<2x128xf32>
    %198 = arith.select %197, %186, %158 : vector<2x128xi1>, vector<2x128xf32>
    %c0_93 = arith.constant 0 : index
    %c0_94 = arith.constant 0 : index
    %199 = vector.load %arg9[%c0_93, %c0_94] : memref<2x128xf32, #tpu.memory_space<vmem>>, vector<2x128xf32>
    tpu.vector_store %arg9[%c0_93, %c0_94], %198 {strides = array<i32>} : memref<2x128xf32, #tpu.memory_space<vmem>>, vector<2x128xf32>,
    %200 = arith.mulf %188, %191 : vector<2x128xf32>
    %201 = arith.index_cast %c3_i32 : i32 to index
    %c0_95 = arith.constant 0 : index
    %c0_96 = arith.constant 0 : index
    %202 = vector.load %arg11[%201, %c0_95, %c0_96] : memref<8x2x128xf32, #tpu.memory_space<vmem>>, vector<1x2x128xf32>
    %203 = vector.shape_cast %202 : vector<1x2x128xf32> to vector<2x128xf32>
    %204 = vector.shape_cast %200 : vector<2x128xf32> to vector<1x2x128xf32>
    tpu.vector_store %arg11[%201, %c0_95, %c0_96], %204 {strides = array<i32>} : memref<8x2x128xf32, #tpu.memory_space<vmem>>, vector<1x2x128xf32>,
    %c4_i32 = arith.constant 4 : i32
    %c0_97 = arith.constant 0 : index
    %c0_98 = arith.constant 0 : index
    %205 = vector.load %arg8[%c0_97, %c0_98] : memref<2x128xf32, #tpu.memory_space<vmem>>, vector<2x128xf32>
    %c0_99 = arith.constant 0 : index
    %c0_100 = arith.constant 0 : index
    %206 = vector.load %arg9[%c0_99, %c0_100] : memref<2x128xf32, #tpu.memory_space<vmem>>, vector<2x128xf32>
    %207 = arith.index_cast %c4_i32 : i32 to index
    %c0_101 = arith.constant 0 : index
    %c0_102 = arith.constant 0 : index
    %208 = vector.load %arg10[%207, %c0_101, %c0_102] : memref<8x2x512xf32, #tpu.memory_space<vmem>>, vector<1x2x512xf32>
    %209 = vector.shape_cast %208 : vector<1x2x512xf32> to vector<2x512xf32>
    %cst_103 = arith.constant dense<0.000000e+00> : vector<2x512xf32>
    %210 = tpu.matmul %205, %0, %cst_103 {dimension_numbers = #tpu.dot_dimension_numbers<[1], [0], [0], [1], [0, 0, 1, 1], [], []>} : vector<2x128xf32>, vector<128x512xf32>, vector<2x512xf32> -> vector<2x512xf32>
    %211 = arith.addf %209, %210 : vector<2x512xf32>
    %212 = vector.extract_strided_slice %211 {offsets = [0, 0], sizes = [2, 128], strides = [1, 1]} : vector<2x512xf32> to vector<2x128xf32>
    %213 = arith.negf %212 : vector<2x128xf32>
    %214 = math.exp %213 : vector<2x128xf32>
    %cst_104 = arith.constant 1.000000e+00 : f32
    %215 = vector.broadcast %cst_104 : f32 to vector<2x128xf32>
    %216 = arith.addf %215, %214 : vector<2x128xf32>
    %217 = arith.divf %215, %216 : vector<2x128xf32>
    %218 = vector.extract_strided_slice %211 {offsets = [0, 128], sizes = [2, 128], strides = [1, 1]} : vector<2x512xf32> to vector<2x128xf32>
    %219 = arith.negf %218 : vector<2x128xf32>
    %220 = math.exp %219 : vector<2x128xf32>
    %cst_105 = arith.constant 1.000000e+00 : f32
    %221 = vector.broadcast %cst_105 : f32 to vector<2x128xf32>
    %222 = arith.addf %221, %220 : vector<2x128xf32>
    %223 = arith.divf %221, %222 : vector<2x128xf32>
    %224 = vector.extract_strided_slice %211 {offsets = [0, 256], sizes = [2, 128], strides = [1, 1]} : vector<2x512xf32> to vector<2x128xf32>
    %225 = math.tanh %224 : vector<2x128xf32>
    %226 = vector.extract_strided_slice %211 {offsets = [0, 384], sizes = [2, 128], strides = [1, 1]} : vector<2x512xf32> to vector<2x128xf32>
    %227 = arith.negf %226 : vector<2x128xf32>
    %228 = math.exp %227 : vector<2x128xf32>
    %cst_106 = arith.constant 1.000000e+00 : f32
    %229 = vector.broadcast %cst_106 : f32 to vector<2x128xf32>
    %230 = arith.addf %229, %228 : vector<2x128xf32>
    %231 = arith.divf %229, %230 : vector<2x128xf32>
    %232 = arith.mulf %223, %206 : vector<2x128xf32>
    %233 = arith.mulf %217, %225 : vector<2x128xf32>
    %234 = arith.addf %232, %233 : vector<2x128xf32>
    %235 = math.tanh %234 : vector<2x128xf32>
    %236 = arith.mulf %231, %235 : vector<2x128xf32>
    %237 = arith.index_cast %c4_i32 : i32 to index
    %c0_107 = arith.constant 0 : index
    %c0_108 = arith.constant 0 : index
    %238 = vector.load %arg1[%237, %c0_107, %c0_108] : memref<8x2x128xf32, #tpu.memory_space<vmem>>, vector<1x2x128xf32>
    %239 = vector.shape_cast %238 : vector<1x2x128xf32> to vector<2x128xf32>
    %cst_109 = arith.constant 0.000000e+00 : f32
    %240 = vector.broadcast %cst_109 : f32 to vector<2x128xf32>
    %241 = arith.cmpf ogt, %239, %240 : vector<2x128xf32>
    %242 = arith.select %241, %236, %205 : vector<2x128xi1>, vector<2x128xf32>
    %c0_110 = arith.constant 0 : index
    %c0_111 = arith.constant 0 : index
    %243 = vector.load %arg8[%c0_110, %c0_111] : memref<2x128xf32, #tpu.memory_space<vmem>>, vector<2x128xf32>
    tpu.vector_store %arg8[%c0_110, %c0_111], %242 {strides = array<i32>} : memref<2x128xf32, #tpu.memory_space<vmem>>, vector<2x128xf32>,
    %cst_112 = arith.constant 0.000000e+00 : f32
    %244 = vector.broadcast %cst_112 : f32 to vector<2x128xf32>
    %245 = arith.cmpf ogt, %239, %244 : vector<2x128xf32>
    %246 = arith.select %245, %234, %206 : vector<2x128xi1>, vector<2x128xf32>
    %c0_113 = arith.constant 0 : index
    %c0_114 = arith.constant 0 : index
    %247 = vector.load %arg9[%c0_113, %c0_114] : memref<2x128xf32, #tpu.memory_space<vmem>>, vector<2x128xf32>
    tpu.vector_store %arg9[%c0_113, %c0_114], %246 {strides = array<i32>} : memref<2x128xf32, #tpu.memory_space<vmem>>, vector<2x128xf32>,
    %248 = arith.mulf %236, %239 : vector<2x128xf32>
    %249 = arith.index_cast %c4_i32 : i32 to index
    %c0_115 = arith.constant 0 : index
    %c0_116 = arith.constant 0 : index
    %250 = vector.load %arg11[%249, %c0_115, %c0_116] : memref<8x2x128xf32, #tpu.memory_space<vmem>>, vector<1x2x128xf32>
    %251 = vector.shape_cast %250 : vector<1x2x128xf32> to vector<2x128xf32>
    %252 = vector.shape_cast %248 : vector<2x128xf32> to vector<1x2x128xf32>
    tpu.vector_store %arg11[%249, %c0_115, %c0_116], %252 {strides = array<i32>} : memref<8x2x128xf32, #tpu.memory_space<vmem>>, vector<1x2x128xf32>,
    %c5_i32 = arith.constant 5 : i32
    %c0_117 = arith.constant 0 : index
    %c0_118 = arith.constant 0 : index
    %253 = vector.load %arg8[%c0_117, %c0_118] : memref<2x128xf32, #tpu.memory_space<vmem>>, vector<2x128xf32>
    %c0_119 = arith.constant 0 : index
    %c0_120 = arith.constant 0 : index
    %254 = vector.load %arg9[%c0_119, %c0_120] : memref<2x128xf32, #tpu.memory_space<vmem>>, vector<2x128xf32>
    %255 = arith.index_cast %c5_i32 : i32 to index
    %c0_121 = arith.constant 0 : index
    %c0_122 = arith.constant 0 : index
    %256 = vector.load %arg10[%255, %c0_121, %c0_122] : memref<8x2x512xf32, #tpu.memory_space<vmem>>, vector<1x2x512xf32>
    %257 = vector.shape_cast %256 : vector<1x2x512xf32> to vector<2x512xf32>
    %cst_123 = arith.constant dense<0.000000e+00> : vector<2x512xf32>
    %258 = tpu.matmul %253, %0, %cst_123 {dimension_numbers = #tpu.dot_dimension_numbers<[1], [0], [0], [1], [0, 0, 1, 1], [], []>} : vector<2x128xf32>, vector<128x512xf32>, vector<2x512xf32> -> vector<2x512xf32>
    %259 = arith.addf %257, %258 : vector<2x512xf32>
    %260 = vector.extract_strided_slice %259 {offsets = [0, 0], sizes = [2, 128], strides = [1, 1]} : vector<2x512xf32> to vector<2x128xf32>
    %261 = arith.negf %260 : vector<2x128xf32>
    %262 = math.exp %261 : vector<2x128xf32>
    %cst_124 = arith.constant 1.000000e+00 : f32
    %263 = vector.broadcast %cst_124 : f32 to vector<2x128xf32>
    %264 = arith.addf %263, %262 : vector<2x128xf32>
    %265 = arith.divf %263, %264 : vector<2x128xf32>
    %266 = vector.extract_strided_slice %259 {offsets = [0, 128], sizes = [2, 128], strides = [1, 1]} : vector<2x512xf32> to vector<2x128xf32>
    %267 = arith.negf %266 : vector<2x128xf32>
    %268 = math.exp %267 : vector<2x128xf32>
    %cst_125 = arith.constant 1.000000e+00 : f32
    %269 = vector.broadcast %cst_125 : f32 to vector<2x128xf32>
    %270 = arith.addf %269, %268 : vector<2x128xf32>
    %271 = arith.divf %269, %270 : vector<2x128xf32>
    %272 = vector.extract_strided_slice %259 {offsets = [0, 256], sizes = [2, 128], strides = [1, 1]} : vector<2x512xf32> to vector<2x128xf32>
    %273 = math.tanh %272 : vector<2x128xf32>
    %274 = vector.extract_strided_slice %259 {offsets = [0, 384], sizes = [2, 128], strides = [1, 1]} : vector<2x512xf32> to vector<2x128xf32>
    %275 = arith.negf %274 : vector<2x128xf32>
    %276 = math.exp %275 : vector<2x128xf32>
    %cst_126 = arith.constant 1.000000e+00 : f32
    %277 = vector.broadcast %cst_126 : f32 to vector<2x128xf32>
    %278 = arith.addf %277, %276 : vector<2x128xf32>
    %279 = arith.divf %277, %278 : vector<2x128xf32>
    %280 = arith.mulf %271, %254 : vector<2x128xf32>
    %281 = arith.mulf %265, %273 : vector<2x128xf32>
    %282 = arith.addf %280, %281 : vector<2x128xf32>
    %283 = math.tanh %282 : vector<2x128xf32>
    %284 = arith.mulf %279, %283 : vector<2x128xf32>
    %285 = arith.index_cast %c5_i32 : i32 to index
    %c0_127 = arith.constant 0 : index
    %c0_128 = arith.constant 0 : index
    %286 = vector.load %arg1[%285, %c0_127, %c0_128] : memref<8x2x128xf32, #tpu.memory_space<vmem>>, vector<1x2x128xf32>
    %287 = vector.shape_cast %286 : vector<1x2x128xf32> to vector<2x128xf32>
    %cst_129 = arith.constant 0.000000e+00 : f32
    %288 = vector.broadcast %cst_129 : f32 to vector<2x128xf32>
    %289 = arith.cmpf ogt, %287, %288 : vector<2x128xf32>
    %290 = arith.select %289, %284, %253 : vector<2x128xi1>, vector<2x128xf32>
    %c0_130 = arith.constant 0 : index
    %c0_131 = arith.constant 0 : index
    %291 = vector.load %arg8[%c0_130, %c0_131] : memref<2x128xf32, #tpu.memory_space<vmem>>, vector<2x128xf32>
    tpu.vector_store %arg8[%c0_130, %c0_131], %290 {strides = array<i32>} : memref<2x128xf32, #tpu.memory_space<vmem>>, vector<2x128xf32>,
    %cst_132 = arith.constant 0.000000e+00 : f32
    %292 = vector.broadcast %cst_132 : f32 to vector<2x128xf32>
    %293 = arith.cmpf ogt, %287, %292 : vector<2x128xf32>
    %294 = arith.select %293, %282, %254 : vector<2x128xi1>, vector<2x128xf32>
    %c0_133 = arith.constant 0 : index
    %c0_134 = arith.constant 0 : index
    %295 = vector.load %arg9[%c0_133, %c0_134] : memref<2x128xf32, #tpu.memory_space<vmem>>, vector<2x128xf32>
    tpu.vector_store %arg9[%c0_133, %c0_134], %294 {strides = array<i32>} : memref<2x128xf32, #tpu.memory_space<vmem>>, vector<2x128xf32>,
    %296 = arith.mulf %284, %287 : vector<2x128xf32>
    %297 = arith.index_cast %c5_i32 : i32 to index
    %c0_135 = arith.constant 0 : index
    %c0_136 = arith.constant 0 : index
    %298 = vector.load %arg11[%297, %c0_135, %c0_136] : memref<8x2x128xf32, #tpu.memory_space<vmem>>, vector<1x2x128xf32>
    %299 = vector.shape_cast %298 : vector<1x2x128xf32> to vector<2x128xf32>
    %300 = vector.shape_cast %296 : vector<2x128xf32> to vector<1x2x128xf32>
    tpu.vector_store %arg11[%297, %c0_135, %c0_136], %300 {strides = array<i32>} : memref<8x2x128xf32, #tpu.memory_space<vmem>>, vector<1x2x128xf32>,
    %c6_i32 = arith.constant 6 : i32
    %c0_137 = arith.constant 0 : index
    %c0_138 = arith.constant 0 : index
    %301 = vector.load %arg8[%c0_137, %c0_138] : memref<2x128xf32, #tpu.memory_space<vmem>>, vector<2x128xf32>
    %c0_139 = arith.constant 0 : index
    %c0_140 = arith.constant 0 : index
    %302 = vector.load %arg9[%c0_139, %c0_140] : memref<2x128xf32, #tpu.memory_space<vmem>>, vector<2x128xf32>
    %303 = arith.index_cast %c6_i32 : i32 to index
    %c0_141 = arith.constant 0 : index
    %c0_142 = arith.constant 0 : index
    %304 = vector.load %arg10[%303, %c0_141, %c0_142] : memref<8x2x512xf32, #tpu.memory_space<vmem>>, vector<1x2x512xf32>
    %305 = vector.shape_cast %304 : vector<1x2x512xf32> to vector<2x512xf32>
    %cst_143 = arith.constant dense<0.000000e+00> : vector<2x512xf32>
    %306 = tpu.matmul %301, %0, %cst_143 {dimension_numbers = #tpu.dot_dimension_numbers<[1], [0], [0], [1], [0, 0, 1, 1], [], []>} : vector<2x128xf32>, vector<128x512xf32>, vector<2x512xf32> -> vector<2x512xf32>
    %307 = arith.addf %305, %306 : vector<2x512xf32>
    %308 = vector.extract_strided_slice %307 {offsets = [0, 0], sizes = [2, 128], strides = [1, 1]} : vector<2x512xf32> to vector<2x128xf32>
    %309 = arith.negf %308 : vector<2x128xf32>
    %310 = math.exp %309 : vector<2x128xf32>
    %cst_144 = arith.constant 1.000000e+00 : f32
    %311 = vector.broadcast %cst_144 : f32 to vector<2x128xf32>
    %312 = arith.addf %311, %310 : vector<2x128xf32>
    %313 = arith.divf %311, %312 : vector<2x128xf32>
    %314 = vector.extract_strided_slice %307 {offsets = [0, 128], sizes = [2, 128], strides = [1, 1]} : vector<2x512xf32> to vector<2x128xf32>
    %315 = arith.negf %314 : vector<2x128xf32>
    %316 = math.exp %315 : vector<2x128xf32>
    %cst_145 = arith.constant 1.000000e+00 : f32
    %317 = vector.broadcast %cst_145 : f32 to vector<2x128xf32>
    %318 = arith.addf %317, %316 : vector<2x128xf32>
    %319 = arith.divf %317, %318 : vector<2x128xf32>
    %320 = vector.extract_strided_slice %307 {offsets = [0, 256], sizes = [2, 128], strides = [1, 1]} : vector<2x512xf32> to vector<2x128xf32>
    %321 = math.tanh %320 : vector<2x128xf32>
    %322 = vector.extract_strided_slice %307 {offsets = [0, 384], sizes = [2, 128], strides = [1, 1]} : vector<2x512xf32> to vector<2x128xf32>
    %323 = arith.negf %322 : vector<2x128xf32>
    %324 = math.exp %323 : vector<2x128xf32>
    %cst_146 = arith.constant 1.000000e+00 : f32
    %325 = vector.broadcast %cst_146 : f32 to vector<2x128xf32>
    %326 = arith.addf %325, %324 : vector<2x128xf32>
    %327 = arith.divf %325, %326 : vector<2x128xf32>
    %328 = arith.mulf %319, %302 : vector<2x128xf32>
    %329 = arith.mulf %313, %321 : vector<2x128xf32>
    %330 = arith.addf %328, %329 : vector<2x128xf32>
    %331 = math.tanh %330 : vector<2x128xf32>
    %332 = arith.mulf %327, %331 : vector<2x128xf32>
    %333 = arith.index_cast %c6_i32 : i32 to index
    %c0_147 = arith.constant 0 : index
    %c0_148 = arith.constant 0 : index
    %334 = vector.load %arg1[%333, %c0_147, %c0_148] : memref<8x2x128xf32, #tpu.memory_space<vmem>>, vector<1x2x128xf32>
    %335 = vector.shape_cast %334 : vector<1x2x128xf32> to vector<2x128xf32>
    %cst_149 = arith.constant 0.000000e+00 : f32
    %336 = vector.broadcast %cst_149 : f32 to vector<2x128xf32>
    %337 = arith.cmpf ogt, %335, %336 : vector<2x128xf32>
    %338 = arith.select %337, %332, %301 : vector<2x128xi1>, vector<2x128xf32>
    %c0_150 = arith.constant 0 : index
    %c0_151 = arith.constant 0 : index
    %339 = vector.load %arg8[%c0_150, %c0_151] : memref<2x128xf32, #tpu.memory_space<vmem>>, vector<2x128xf32>
    tpu.vector_store %arg8[%c0_150, %c0_151], %338 {strides = array<i32>} : memref<2x128xf32, #tpu.memory_space<vmem>>, vector<2x128xf32>,
    %cst_152 = arith.constant 0.000000e+00 : f32
    %340 = vector.broadcast %cst_152 : f32 to vector<2x128xf32>
    %341 = arith.cmpf ogt, %335, %340 : vector<2x128xf32>
    %342 = arith.select %341, %330, %302 : vector<2x128xi1>, vector<2x128xf32>
    %c0_153 = arith.constant 0 : index
    %c0_154 = arith.constant 0 : index
    %343 = vector.load %arg9[%c0_153, %c0_154] : memref<2x128xf32, #tpu.memory_space<vmem>>, vector<2x128xf32>
    tpu.vector_store %arg9[%c0_153, %c0_154], %342 {strides = array<i32>} : memref<2x128xf32, #tpu.memory_space<vmem>>, vector<2x128xf32>,
    %344 = arith.mulf %332, %335 : vector<2x128xf32>
    %345 = arith.index_cast %c6_i32 : i32 to index
    %c0_155 = arith.constant 0 : index
    %c0_156 = arith.constant 0 : index
    %346 = vector.load %arg11[%345, %c0_155, %c0_156] : memref<8x2x128xf32, #tpu.memory_space<vmem>>, vector<1x2x128xf32>
    %347 = vector.shape_cast %346 : vector<1x2x128xf32> to vector<2x128xf32>
    %348 = vector.shape_cast %344 : vector<2x128xf32> to vector<1x2x128xf32>
    tpu.vector_store %arg11[%345, %c0_155, %c0_156], %348 {strides = array<i32>} : memref<8x2x128xf32, #tpu.memory_space<vmem>>, vector<1x2x128xf32>,
    %c7_i32 = arith.constant 7 : i32
    %c0_157 = arith.constant 0 : index
    %c0_158 = arith.constant 0 : index
    %349 = vector.load %arg8[%c0_157, %c0_158] : memref<2x128xf32, #tpu.memory_space<vmem>>, vector<2x128xf32>
    %c0_159 = arith.constant 0 : index
    %c0_160 = arith.constant 0 : index
    %350 = vector.load %arg9[%c0_159, %c0_160] : memref<2x128xf32, #tpu.memory_space<vmem>>, vector<2x128xf32>
    %351 = arith.index_cast %c7_i32 : i32 to index
    %c0_161 = arith.constant 0 : index
    %c0_162 = arith.constant 0 : index
    %352 = vector.load %arg10[%351, %c0_161, %c0_162] : memref<8x2x512xf32, #tpu.memory_space<vmem>>, vector<1x2x512xf32>
    %353 = vector.shape_cast %352 : vector<1x2x512xf32> to vector<2x512xf32>
    %cst_163 = arith.constant dense<0.000000e+00> : vector<2x512xf32>
    %354 = tpu.matmul %349, %0, %cst_163 {dimension_numbers = #tpu.dot_dimension_numbers<[1], [0], [0], [1], [0, 0, 1, 1], [], []>} : vector<2x128xf32>, vector<128x512xf32>, vector<2x512xf32> -> vector<2x512xf32>
    %355 = arith.addf %353, %354 : vector<2x512xf32>
    %356 = vector.extract_strided_slice %355 {offsets = [0, 0], sizes = [2, 128], strides = [1, 1]} : vector<2x512xf32> to vector<2x128xf32>
    %357 = arith.negf %356 : vector<2x128xf32>
    %358 = math.exp %357 : vector<2x128xf32>
    %cst_164 = arith.constant 1.000000e+00 : f32
    %359 = vector.broadcast %cst_164 : f32 to vector<2x128xf32>
    %360 = arith.addf %359, %358 : vector<2x128xf32>
    %361 = arith.divf %359, %360 : vector<2x128xf32>
    %362 = vector.extract_strided_slice %355 {offsets = [0, 128], sizes = [2, 128], strides = [1, 1]} : vector<2x512xf32> to vector<2x128xf32>
    %363 = arith.negf %362 : vector<2x128xf32>
    %364 = math.exp %363 : vector<2x128xf32>
    %cst_165 = arith.constant 1.000000e+00 : f32
    %365 = vector.broadcast %cst_165 : f32 to vector<2x128xf32>
    %366 = arith.addf %365, %364 : vector<2x128xf32>
    %367 = arith.divf %365, %366 : vector<2x128xf32>
    %368 = vector.extract_strided_slice %355 {offsets = [0, 256], sizes = [2, 128], strides = [1, 1]} : vector<2x512xf32> to vector<2x128xf32>
    %369 = math.tanh %368 : vector<2x128xf32>
    %370 = vector.extract_strided_slice %355 {offsets = [0, 384], sizes = [2, 128], strides = [1, 1]} : vector<2x512xf32> to vector<2x128xf32>
    %371 = arith.negf %370 : vector<2x128xf32>
    %372 = math.exp %371 : vector<2x128xf32>
    %cst_166 = arith.constant 1.000000e+00 : f32
    %373 = vector.broadcast %cst_166 : f32 to vector<2x128xf32>
    %374 = arith.addf %373, %372 : vector<2x128xf32>
    %375 = arith.divf %373, %374 : vector<2x128xf32>
    %376 = arith.mulf %367, %350 : vector<2x128xf32>
    %377 = arith.mulf %361, %369 : vector<2x128xf32>
    %378 = arith.addf %376, %377 : vector<2x128xf32>
    %379 = math.tanh %378 : vector<2x128xf32>
    %380 = arith.mulf %375, %379 : vector<2x128xf32>
    %381 = arith.index_cast %c7_i32 : i32 to index
    %c0_167 = arith.constant 0 : index
    %c0_168 = arith.constant 0 : index
    %382 = vector.load %arg1[%381, %c0_167, %c0_168] : memref<8x2x128xf32, #tpu.memory_space<vmem>>, vector<1x2x128xf32>
    %383 = vector.shape_cast %382 : vector<1x2x128xf32> to vector<2x128xf32>
    %cst_169 = arith.constant 0.000000e+00 : f32
    %384 = vector.broadcast %cst_169 : f32 to vector<2x128xf32>
    %385 = arith.cmpf ogt, %383, %384 : vector<2x128xf32>
    %386 = arith.select %385, %380, %349 : vector<2x128xi1>, vector<2x128xf32>
    %c0_170 = arith.constant 0 : index
    %c0_171 = arith.constant 0 : index
    %387 = vector.load %arg8[%c0_170, %c0_171] : memref<2x128xf32, #tpu.memory_space<vmem>>, vector<2x128xf32>
    tpu.vector_store %arg8[%c0_170, %c0_171], %386 {strides = array<i32>} : memref<2x128xf32, #tpu.memory_space<vmem>>, vector<2x128xf32>,
    %cst_172 = arith.constant 0.000000e+00 : f32
    %388 = vector.broadcast %cst_172 : f32 to vector<2x128xf32>
    %389 = arith.cmpf ogt, %383, %388 : vector<2x128xf32>
    %390 = arith.select %389, %378, %350 : vector<2x128xi1>, vector<2x128xf32>
    %c0_173 = arith.constant 0 : index
    %c0_174 = arith.constant 0 : index
    %391 = vector.load %arg9[%c0_173, %c0_174] : memref<2x128xf32, #tpu.memory_space<vmem>>, vector<2x128xf32>
    tpu.vector_store %arg9[%c0_173, %c0_174], %390 {strides = array<i32>} : memref<2x128xf32, #tpu.memory_space<vmem>>, vector<2x128xf32>,
    %392 = arith.mulf %380, %383 : vector<2x128xf32>
    %393 = arith.index_cast %c7_i32 : i32 to index
    %c0_175 = arith.constant 0 : index
    %c0_176 = arith.constant 0 : index
    %394 = vector.load %arg11[%393, %c0_175, %c0_176] : memref<8x2x128xf32, #tpu.memory_space<vmem>>, vector<1x2x128xf32>
    %395 = vector.shape_cast %394 : vector<1x2x128xf32> to vector<2x128xf32>
    %396 = vector.shape_cast %392 : vector<2x128xf32> to vector<1x2x128xf32>
    tpu.vector_store %arg11[%393, %c0_175, %c0_176], %396 {strides = array<i32>} : memref<8x2x128xf32, #tpu.memory_space<vmem>>, vector<1x2x128xf32>,
    %c8_i32 = arith.constant 8 : i32
    %c0_177 = arith.constant 0 : index
    %c0_178 = arith.constant 0 : index
    %c0_179 = arith.constant 0 : index
    %397 = vector.load %arg11[%c0_177, %c0_178, %c0_179] : memref<8x2x128xf32, #tpu.memory_space<vmem>>, vector<8x2x128xf32>
    %c0_180 = arith.constant 0 : index
    %c0_181 = arith.constant 0 : index
    %398 = vector.load %arg5[%c0_180, %c0_181] : memref<128x128xf32, #tpu.memory_space<vmem>>, vector<128x128xf32>
    "tpu.trace_start"() <{level = 10 : i32, message = "tbh,hk->tbk"}> : () -> ()
    %cst_182 = arith.constant dense<0.000000e+00> : vector<8x2x128xf32>
    %399 = tpu.matmul %397, %398, %cst_182 {dimension_numbers = #tpu.dot_dimension_numbers<[2], [0], [0, 1], [1], [0, 0, 0, 1, 1, 1], [], []>} : vector<8x2x128xf32>, vector<128x128xf32>, vector<8x2x128xf32> -> vector<8x2x128xf32>
    "tpu.trace_stop"() : () -> ()
    %c0_183 = arith.constant 0 : index
    %c0_184 = arith.constant 0 : index
    %400 = vector.load %arg6[%c0_183, %c0_184] : memref<1x128xf32, #tpu.memory_space<vmem>>, vector<1x128xf32>
    %401 = vector.shape_cast %400 : vector<1x128xf32> to vector<1x1x128xf32>
    %402 = vector.broadcast %401 : vector<1x1x128xf32> to vector<8x2x128xf32>
    %403 = arith.addf %399, %402 : vector<8x2x128xf32>
    %c0_185 = arith.constant 0 : index
    %c0_186 = arith.constant 0 : index
    %c0_187 = arith.constant 0 : index
    %404 = vector.load %arg7[%c0_185, %c0_186, %c0_187] : memref<8x2x128xf32, #tpu.memory_space<vmem>>, vector<8x2x128xf32>
    tpu.vector_store %arg7[%c0_185, %c0_186, %c0_187], %403 {strides = array<i32>} : memref<8x2x128xf32, #tpu.memory_space<vmem>>, vector<8x2x128xf32>,
    return
  }
}

</mosaic_0001>

<bundles_post_ra>
// kernel: full_network_forward.1
= control target key start
LH: loop header
LB: loop body
LE: loop exit
PB: predicated region body
PF: predicated region fallthrough
CT: control target
= control target key end

     0   :  { %v2107_v25 = vmov 0.0   ;;  %vm185_vm0 = vcmask 261120   ;;  %vm123_vm1 = vcmask 1041408   ;;  %vm125_vm2 = vcmask 1045508   ;;  %s3669_s2 = inlined_call_operand.vmem [shape: f32[32,512], index: 2, kind: input, shape index: {}]   ;;  %s3670_s0 = inlined_call_operand.vmem [shape: f32[8,2,32], index: 0, kind: input, shape index: {}]   ;;  %s3671_s3 = inlined_call_operand.vmem [shape: f32[128,512], index: 3, kind: input, shape index: {}]   ;;  %s3672_s4 = inlined_call_operand.vmem [shape: f32[1,512], index: 4, kind: input, shape index: {}]   ;;  %s3673_s1 = inlined_call_operand.vmem [shape: f32[8,2,128], index: 1, kind: input, shape index: {}]   ;;  %s3674_s6 = inlined_call_operand.vmem [shape: f32[1,128], index: 6, kind: input, shape index: {}]   ;;  %s3675_s5 = inlined_call_operand.vmem [shape: f32[128,128], index: 5, kind: input, shape index: {}]   ;;  %s3676_s7 = inlined_call_operand.vmem [shape: f32[8,2,128], index: 7, kind: output, shape index: {}]  }
   0x1   :  { %v110_v0 = vld [vmem:[%s3669_s2 + $0x60] sm:$0xff]  ;;  %v112_v1 = vld [vmem:[%s3669_s2 + $0x70] sm:$0xff]  ;;  %v113_v2 = vld [vmem:[%s3669_s2 + $0x78] sm:$0xff]  ;;  %345 = vst [vmem:[#allocation2] sm:$0x3] %v2107_v25  ;;  %vm127_vm3 = vcmask 1043456  }
   0x2   :  { %202 = vmatpush.msra.mxu1 %v110_v0  ;;  %248 = vmatpush.msra.mxu2 %v112_v1  ;;  %v106_v3 = vld [vmem:[%s3669_s2 + $0x40] sm:$0xff]  ;;  %v108_v4 = vld [vmem:[%s3669_s2 + $0x50] sm:$0xff]  ;;  %v109_v5 = vld [vmem:[%s3669_s2 + $0x58] sm:$0xff]  ;;  %346 = vst [vmem:[#allocation3] sm:$0x3] %v2107_v25  ;;  %vm299_vm4 = vcmask 1043458  }
   0x3   :  { %271 = vmatpush.msra.mxu3 %v113_v2  ;;  %v102_v6 = vld [vmem:[%s3669_s2 + $0x20] sm:$0xff]  ;;  %v104_v7 = vld [vmem:[%s3669_s2 + $0x30] sm:$0xff]  ;;  %v105_v8 = vld [vmem:[%s3669_s2 + $0x38] sm:$0xff]  ;;  %vm301_vm5 = vcmask 1045504   ;;  %vm303_vm6 = vcmask 1045506  }
   0x4   :  { %203 = vmatpush.msra.mxu1 %v106_v3  ;;  %249 = vmatpush.msra.mxu2 %v108_v4  ;;  %v98_v9 = vld [vmem:[%s3669_s2] sm:$0xff]  ;;  %v111_v10 = vld [vmem:[%s3669_s2 + $0x68] sm:$0xff]  ;;  %v100_v11 = vld [vmem:[%s3669_s2 + $0x10] sm:$0xff] }
   0x5   :  { %272 = vmatpush.msra.mxu3 %v109_v5  ;;  %v101_v12 = vld [vmem:[%s3669_s2 + $0x18] sm:$0xff]  ;;  %v90_v13 = vld [vmem:[%s3670_s0] sm:$0x3]  ;;  %v91_v14 = vld [vmem:[%s3670_s0 + $0x2] sm:$0x3] }
   0x6   :  { %204 = vmatpush.msra.mxu1 %v102_v6  ;;  %250 = vmatpush.msra.mxu2 %v104_v7  ;;  %v92_v15 = vld [vmem:[%s3670_s0 + $0x4] sm:$0x3]  ;;  %v93_v16 = vld [vmem:[%s3670_s0 + $0x6] sm:$0x3]  ;;  %137 = vst [vmem:[#allocation1] ss:$4 sm:$0xff] %v90_v13 }
   0x7   :  { %273 = vmatpush.msra.mxu3 %v105_v8  ;;  %139 = vst [vmem:[#allocation1 + $0x1] ss:$4 sm:$0xff] %v91_v14  ;;  %v2202_v17 = vld [vmem:[%s3671_s3 + $0x1f0] sm:$0xff]  ;;  %v2207_v18 = vld [vmem:[%s3671_s3 + $0x1f8] sm:$0xff]  ;;  %v107_v19 = vld [vmem:[%s3669_s2 + $0x48] sm:$0xff] }
   0x8   :  { %205 = vmatpush.msra.mxu1 %v98_v9  ;;  %251 = vmatpush.msra.mxu2 %v100_v11  ;;  %141 = vst [vmem:[#allocation1 + $0x2] ss:$4 sm:$0xff] %v92_v15  ;;  %v2215_v20 = vld [vmem:[%s3671_s3 + $0x1d0] sm:$0xff]  ;;  %v2220_v21 = vld [vmem:[%s3671_s3 + $0x1d8] sm:$0xff]  ;;  %v103_v22 = vld [vmem:[%s3669_s2 + $0x28] sm:$0xff] }
   0x9   :  { %274 = vmatpush.msra.mxu3 %v101_v12  ;;  %143 = vst [vmem:[#allocation1 + $0x3] ss:$4 sm:$0xff] %v93_v16  ;;  %v2230_v23 = vld [vmem:[%s3671_s3 + $0x1b0] sm:$0xff]  ;;  %v2235_v24 = vld [vmem:[%s3671_s3 + $0x1b8] sm:$0xff]  ;;  %v94_v26 = vld [vmem:[%s3670_s0 + $0x8] sm:$0x3] }
   0xa   :  { %225 = vmatpush.msrb.mxu1 %v111_v10  ;;  %390 = vmatpush.msrb.mxu2 %v2202_v17  ;;  %v95_v27 = vld [vmem:[%s3670_s0 + $0xa] sm:$0x3]  ;;  %v96_v28 = vld [vmem:[%s3670_s0 + $0xc] sm:$0x3]  ;;  %v97_v30 = vld [vmem:[%s3670_s0 + $0xe] sm:$0x3] }
   0xb   :  { %410 = vmatpush.msrb.mxu3 %v2207_v18  ;;  %v99_v29 = vld [vmem:[%s3669_s2 + $0x8] sm:$0xff]  ;;  %145 = vst [vmem:[#allocation1 + $0x20] ss:$4 sm:$0xff] %v94_v26  ;;  %v2257_v31 = vld [vmem:[%s3671_s3 + $0x1e0] sm:$0xff]  ;;  %v2262_v32 = vld [vmem:[%s3671_s3 + $0x190] sm:$0xff] }
   0xc   :  { %226 = vmatpush.msrb.mxu1 %v107_v19  ;;  %391 = vmatpush.msrb.mxu2 %v2215_v20  ;;  %v2267_v33 = vld [vmem:[%s3671_s3 + $0x198] sm:$0xff]  ;;  %147 = vst [vmem:[#allocation1 + $0x21] ss:$4 sm:$0xff] %v95_v27  ;;  %v2273_v34 = vld [vmem:[%s3671_s3 + $0x1c0] sm:$0xff]  ;;  %v2280_v35 = vld [vmem:[%s3671_s3 + $0x1e8] sm:$0xff] }
   0xd   :  { %411 = vmatpush.msrb.mxu3 %v2220_v21  ;;  %350 = vmatpush.msra.mxu0 %v2257_v31  ;;  %149 = vst [vmem:[#allocation1 + $0x22] ss:$4 sm:$0xff] %v96_v28  ;;  %v2285_v36 = vld [vmem:[%s3671_s3 + $0x170] sm:$0xff]  ;;  %v2295_v38 = vld [vmem:[%s3671_s3 + $0x178] sm:$0xff]  ;;  %v2300_v39 = vld [vmem:[%s3671_s3 + $0x1a0] sm:$0xff] }
   0xe   :  { %227 = vmatpush.msrb.mxu1 %v103_v22  ;;  %392 = vmatpush.msrb.mxu2 %v2230_v23  ;;  %151 = vst [vmem:[#allocation1 + $0x23] ss:$4 sm:$0xff] %v97_v30  ;;  %v2307_v40 = vld [vmem:[%s3671_s3 + $0x1c8] sm:$0xff]  ;;  %v2316_v41 = vld [vmem:[%s3671_s3 + $0x150] sm:$0xff]  ;;  %v2321_v42 = vld [vmem:[%s3671_s3 + $0x158] sm:$0xff] }
   0xf   :  { %412 = vmatpush.msrb.mxu3 %v2235_v24  ;;  %351 = vmatpush.msra.mxu0 %v2273_v34  ;;  %v2327_v43 = vld [vmem:[%s3671_s3 + $0x1a8] sm:$0xff]  ;;  %v2333_v44 = vld [vmem:[%s3671_s3 + $0x180] sm:$0xff]  ;;  %v2341_v45 = vld [vmem:[%s3671_s3 + $0x130] sm:$0xff] }
  0x10   :  { %228 = vmatpush.msrb.mxu1 %v99_v29  ;;  %v2288_v37 = vld.sshfl [vmem:[#allocation1] sm:$0xff pattern:$0x73625140]  ;;  %393 = vmatpush.msrb.mxu2 %v2262_v32  ;;  %v2346_v46 = vld [vmem:[%s3671_s3 + $0x138] sm:$0xff]  ;;  %v2353_v47 = vld [vmem:[%s3671_s3 + $0x188] sm:$0xff] }
  0x11   :  { %413 = vmatpush.msrb.mxu3 %v2267_v33  ;;  %1874 = vmatmul.msk.f32.vlgmr.msra.gmra.mxu1 %vm185_vm0, %v2288_v37  ;;  %v2358_v48 = vld [vmem:[%s3671_s3 + $0x160] sm:$0xff]  ;;  %v2367_v50 = vld [vmem:[%s3671_s3 + $0x110] sm:$0xff]  ;;  %v2374_v51 = vld [vmem:[%s3671_s3 + $0x168] sm:$0xff] }
  0x12   :  { %1878 = vmatmul.msk.f32.vlgmr.msra.gmra.mxu2 %vm185_vm0, %v2288_v37  ;;  %370 = vmatpush.msra.mxu1 %v2280_v35  ;;  %v2379_v52 = vld [vmem:[%s3671_s3 + $0x118] sm:$0xff]  ;;  %v2386_v53 = vld [vmem:[%s3671_s3 + $0xf0] sm:$0xff]  ;;  %v2391_v54 = vld [vmem:[%s3671_s3 + $0x140] sm:$0xff] }
  0x13   :  { %394 = vmatpush.msrb.mxu2 %v2285_v36  ;;  %414 = vmatpush.msrb.mxu3 %v2295_v38  ;;  %v2399_v55 = vld [vmem:[%s3671_s3 + $0x148] sm:$0xff]  ;;  %v2404_v56 = vld [vmem:[%s3671_s3 + $0xf8] sm:$0xff]  ;;  %v2418_v58 = vld [vmem:[%s3671_s3 + $0xd0] sm:$0xff] }
  0x14   :  { %352 = vmatpush.msra.mxu0 %v2300_v39  ;;  %371 = vmatpush.msra.mxu1 %v2307_v40  ;;  %v2413_v57 = vld [vmem:[%s3671_s3 + $0x128] sm:$0xff]  ;;  %3763 = vst [vmem:[#allocation6_spill] sm:$0xff] %v2418_v58  ;;  %v2425_v59 = vld [vmem:[%s3671_s3 + $0xd8] sm:$0xff]  ;;  %v2430_v60 = vld [vmem:[%s3671_s3 + $0x120] sm:$0xff] }
  0x15   :  { %1880 = vmatmul.msk.f32.vlgmr.msra.gmra.mxu3 %vm185_vm0, %v2288_v37  ;;  %395 = vmatpush.msrb.mxu2 %v2316_v41  ;;  %v2360_v49 = vld.sshfl [vmem:[#allocation1 + $0x20] sm:$0xff pattern:$0x73625140]  ;;  %3764 = vst [vmem:[#allocation7_spill] sm:$0xff] %v2425_v59  ;;  %v2439_v61 = vld [vmem:[%s3671_s3 + $0x108] sm:$0xff]  ;;  %v2444_v62 = vld [vmem:[%s3671_s3 + $0xb0] sm:$0xff] }
  0x16   :  { %415 = vmatpush.msrb.mxu3 %v2321_v42  ;;  %372 = vmatpush.msra.mxu1 %v2327_v43  ;;  %3765 = vst [vmem:[#allocation8_spill] sm:$0xff] %v2444_v62  ;;  %v2451_v63 = vld [vmem:[%s3671_s3 + $0xb8] sm:$0xff]  ;;  %v2458_v0 = vld [vmem:[%s3671_s3 + $0x100] sm:$0xff]  ;;  %v2463_v1 = vld [vmem:[%s3671_s3 + $0xe8] sm:$0xff] }
  0x17   :  { %353 = vmatpush.msra.mxu0 %v2333_v44  ;;  %396 = vmatpush.msrb.mxu2 %v2341_v45  ;;  %3766 = vst [vmem:[#allocation9_spill] sm:$0xff] %v2451_v63  ;;  %v114_v2 = vld [vmem:[%s3672_s4] sm:$0xf]  ;;  %v2473_v3 = vld [vmem:[%s3671_s3 + $0x90] sm:$0xff]  ;;  %v2478_v4 = vld [vmem:[%s3671_s3 + $0x98] sm:$0xff] }
  0x18   :  { %416 = vmatpush.msrb.mxu3 %v2346_v46  ;;  %373 = vmatpush.msra.mxu1 %v2353_v47  ;;  %3767 = vst [vmem:[#allocation10_spill] sm:$0xff] %v2473_v3  ;;  %v116_v5 = vperm.slane %v114_v2, 0  ;;  %v117_v6 = vperm.slane %v114_v2, 1  ;;  %v118_v7 = vperm.slane %v114_v2, 2  ;;  %v119_v8 = vperm.slane %v114_v2, 3  ;;  %v2486_v9 = vld [vmem:[%s3671_s3 + $0xe0] sm:$0xff] }
  0x19   :  { %354 = vmatpush.msra.mxu0 %v2358_v48  ;;  %1875 = vmatmul.msk.f32.gmra.mxu1 %vm185_vm0, %v2360_v49  ;;  %3768 = vst [vmem:[#allocation11_spill] sm:$0xff] %v2478_v4  ;;  %v2491_v10 = vld [vmem:[%s3671_s3 + $0xc8] sm:$0xff]  ;;  %v2498_v11 = vld [vmem:[%s3671_s3 + $0x70] sm:$0xff]  ;;  %v2503_v12 = vld [vmem:[%s3671_s3 + $0x78] sm:$0xff] }
  0x1a   :  { %397 = vmatpush.msrb.mxu2 %v2367_v50  ;;  %374 = vmatpush.msra.mxu1 %v2374_v51  ;;  %3769 = vst [vmem:[#allocation12_spill] sm:$0xff] %v2498_v11  ;;  %v120_v13 = vrot.slane %v117_v6, 6  ;;  %v121_v14 = vrot.slane %v118_v7, 4  ;;  %v122_v15 = vrot.slane %v119_v8, 2  ;;  %v2510_v16 = vld [vmem:[%s3671_s3 + $0xc0] sm:$0xff]  ;;  %v2515_v19 = vld [vmem:[%s3671_s3 + $0xa8] sm:$0xff] }
  0x1b   :  { %417 = vmatpush.msrb.mxu3 %v2379_v52  ;;  %355 = vmatpush.msra.mxu0 %v2391_v54  ;;  %3770 = vst [vmem:[#allocation13_spill] sm:$0xff] %v2503_v12  ;;  %v2522_v22 = vld [vmem:[%s3671_s3 + $0x50] sm:$0xff]  ;;  %v2527_v25 = vld [vmem:[%s3671_s3 + $0x58] sm:$0xff]  ;;  %v2536_v28 = vld [vmem:[%s3671_s3 + $0xa0] sm:$0xff] }
  0x1c   :  { %398 = vmatpush.msrb.mxu2 %v2386_v53  ;;  %375 = vmatpush.msra.mxu1 %v2399_v55  ;;  %3771 = vst [vmem:[#allocation14_spill] sm:$0xff] %v2515_v19  ;;  %v124_v26 = vsel %vm123_vm1, %v116_v5, %v120_v13  ;;  %v126_v27 = vsel %vm125_vm2, %v121_v14, %v122_v15  ;;  %v2541_v29 = vld [vmem:[%s3671_s3 + $0x88] sm:$0xff]  ;;  %v2556_v2 = vld [vmem:[%s3671_s3 + $0x38] sm:$0xff]  ;;  %v2561_v5 = vld [vmem:[%s3671_s3 + $0x80] sm:$0xff] }
  0x1d   :  { %418 = vmatpush.msrb.mxu3 %v2404_v56  ;;  %1879 = vmatmul.msk.f32.gmra.mxu2 %vm185_vm0, %v2360_v49  ;;  %3772 = vst [vmem:[#allocation15_spill] sm:$0xff] %v2522_v22  ;;  %v128_v30 = vsel %vm127_vm3, %v124_v26, %v126_v27  ;;  %v2568_v6 = vld [vmem:[%s3671_s3 + $0x68] sm:$0xff]  ;;  %v2573_v7 = vld [vmem:[%s3671_s3 + $0x10] sm:$0xff]  ;;  %v2581_v8 = vld [vmem:[%s3671_s3 + $0x18] sm:$0xff] }
  0x1e   :  { %1881 = vmatmul.msk.f32.gmra.mxu3 %vm185_vm0, %v2360_v49  ;;  %376 = vmatpush.msra.mxu1 %v2413_v57  ;;  %3773 = vst [vmem:[#allocation16_spill] sm:$0xff] %v2527_v25  ;;  %v2583_v13 = vld [vmem:[#allocation2] sm:$0x3]  ;;  %v2590_v14 = vld [vmem:[%s3671_s3 + $0x60] sm:$0xff] }
  0x1f   :  { %399 = vmatpush.msrb.mxu2 %v2418_v58  ;;  %419 = vmatpush.msrb.mxu3 %v2425_v59  ;;  %3774 = vst [vmem:[#allocation17_spill] sm:$0xff] %v2536_v28  ;;  %v2604_v15 = vld [vmem:[%s3671_s3 + $0x40] sm:$0xff]  ;;  %v2611_v26 = vld [vmem:[%s3671_s3 + $0x28] sm:$0xff] }
  0x20   :  { %356 = vmatpush.msra.mxu0 %v2430_v60  ;;  %377 = vmatpush.msra.mxu1 %v2439_v61  ;;  %3775 = vst [vmem:[#allocation18_spill] sm:$0xff] %v2541_v29  ;;  %v2617_v27 = vld [vmem:[%s3671_s3 + $0x20] sm:$0xff] }
  0x21   :  { %400 = vmatpush.msrb.mxu2 %v2444_v62  ;;  %1876 = vmatmul.msk.f32.vlgmr.msrb.gmra.mxu1 %vm185_vm0, %v2288_v37  ;;  %v2549_v37 = vld [vmem:[%s3671_s3 + $0x30] sm:$0xff]  ;;  %154 = vst [vmem:[#allocation1] ss:$4 sm:$0xff] %v128_v30 }
  0x22   :  { %420 = vmatpush.msrb.mxu3 %v2451_v63  ;;  %357 = vmatpush.msra.mxu0 %v2458_v0  ;;  %3776 = vst [vmem:[#allocation19_spill] sm:$0xff] %v2549_v37 }
  0x23   :  { %378 = vmatpush.msra.mxu1 %v2463_v1  ;;  %401 = vmatpush.msrb.mxu2 %v2473_v3  ;;  %3777 = vst [vmem:[#allocation20_spill] sm:$0xff] %v2556_v2 }
  0x24   :  { %421 = vmatpush.msrb.mxu3 %v2478_v4  ;;  %358 = vmatpush.msra.mxu0 %v2486_v9  ;;  %3778 = vst [vmem:[#allocation21_spill] sm:$0xff] %v2561_v5 }
  0x25   :  { %379 = vmatpush.msra.mxu1 %v2491_v10  ;;  %402 = vmatpush.msrb.mxu2 %v2498_v11  ;;  %156 = vst [vmem:[#allocation1 + $0x1] ss:$4 sm:$0xff] %v128_v30 }
  0x26   :  { %422 = vmatpush.msrb.mxu3 %v2503_v12  ;;  %359 = vmatpush.msra.mxu0 %v2510_v16  ;;  %3779 = vst [vmem:[#allocation22_spill] sm:$0xff] %v2568_v6 }
  0x27   :  { %380 = vmatpush.msra.mxu1 %v2515_v19  ;;  %403 = vmatpush.msrb.mxu2 %v2522_v22  ;;  %3780 = vst [vmem:[#allocation23_spill] sm:$0xff] %v2573_v7 }
  0x28   :  { %423 = vmatpush.msrb.mxu3 %v2527_v25  ;;  %360 = vmatpush.msra.mxu0 %v2536_v28  ;;  %158 = vst [vmem:[#allocation1 + $0x2] ss:$4 sm:$0xff] %v128_v30 }
  0x29   :  { %381 = vmatpush.msra.mxu1 %v2541_v29  ;;  %404 = vmatpush.msrb.mxu2 %v2549_v37  ;;  %3781 = vst [vmem:[#allocation24_spill] sm:$0xff] %v2581_v8 }
  0x2a   :  { %1877 = vmatmul.msk.f32.gmra.mxu1 %vm185_vm0, %v2360_v49  ;;  %3782 = vst [vmem:[#allocation25_spill] sm:$0xff] %v2583_v13  ;;  %424 = vmatpush.msrb.mxu3 %v2556_v2  ;;  %v2597_v49 = vld [vmem:[%s3671_s3 + $0x48] sm:$0xff] }
  0x2b   :  { %160 = vst [vmem:[#allocation1 + $0x3] ss:$4 sm:$0xff] %v128_v30  ;;  %361 = vmatpush.msra.mxu0 %v2561_v5  ;;  %382 = vmatpush.msra.mxu1 %v2568_v6 }
  0x2c   :  { %3783 = vst [vmem:[#allocation26_spill] sm:$0xff] %v2590_v14  ;;  %405 = vmatpush.msrb.mxu2 %v2573_v7  ;;  %425 = vmatpush.msrb.mxu3 %v2581_v8  ;;  %v2624_v8 = vld [vmem:[%s3671_s3 + $0x8] sm:$0xff] }
  0x2d   :  { %162 = vst [vmem:[#allocation1 + $0x20] ss:$4 sm:$0xff] %v128_v30  ;;  %406 = vmatmul.f32.vlgmr.msrb.gmra.mxu2 %v2583_v13  ;;  %426 = vmatmul.f32.vlgmr.msrb.gmra.mxu3 %v2583_v13 }
  0x2e   :  { %3784 = vst [vmem:[#allocation27_spill] sm:$0xff] %v2597_v49  ;;  %362 = vmatpush.msra.mxu0 %v2590_v14  ;;  %383 = vmatpush.msra.mxu1 %v2597_v49 }
  0x2f   :  { %164 = vst [vmem:[#allocation1 + $0x21] ss:$4 sm:$0xff] %v128_v30  ;;  %564 = vmatpush.msra.mxu2 %v2202_v17  ;;  %584 = vmatpush.msra.mxu3 %v2207_v18 }
  0x30   :  { %3785 = vst [vmem:[#allocation28_spill] sm:$0xff] %v2604_v15  ;;  %363 = vmatpush.msra.mxu0 %v2604_v15  ;;  %384 = vmatpush.msra.mxu1 %v2611_v26 }
  0x31   :  { %166 = vst [vmem:[#allocation1 + $0x22] ss:$4 sm:$0xff] %v128_v30  ;;  %565 = vmatpush.msra.mxu2 %v2215_v20  ;;  %585 = vmatpush.msra.mxu3 %v2220_v21 }
  0x32   :  { %3786 = vst [vmem:[#allocation29_spill] sm:$0xff] %v2611_v26  ;;  %364 = vmatpush.msra.mxu0 %v2617_v27  ;;  %385 = vmatpush.msra.mxu1 %v2624_v8 }
  0x33   :  { %168 = vst [vmem:[#allocation1 + $0x23] ss:$4 sm:$0xff] %v128_v30  ;;  %v2631_v30 = vld [vmem:[%s3671_s3] sm:$0xff]  ;;  %566 = vmatpush.msra.mxu2 %v2230_v23  ;;  %386 = vmatmul.f32.vlgmr.msra.gmra.mxu1 %v2583_v13 }
  0x34   :  { %3787 = vst [vmem:[#allocation30_spill] sm:$0xff] %v2617_v27  ;;  %365 = vmatpush.msra.mxu0 %v2631_v30  ;;  %544 = vmatpush.msrb.mxu1 %v2280_v35 }
  0x35   :  { %3788 = vst [vmem:[#allocation31_spill] sm:$0xff] %v2624_v8  ;;  %366 = vmatmul.f32.vlgmr.msra.gmra.mxu0 %v2583_v13  ;;  %586 = vmatpush.msra.mxu3 %v2235_v24  ;;  %v3790_v13 = vld [vmem:[#allocation24_spill] sm:$0xff] }
  0x36   :  { %3789 = vst [vmem:[#allocation32_spill] sm:$0xff] %v2631_v30  ;;  %524 = vmatpush.msrb.mxu0 %v2257_v31  ;;  %545 = vmatpush.msrb.mxu1 %v2307_v40 }
  0x37   :  { %567 = vmatpush.msra.mxu2 %v2262_v32  ;;  %587 = vmatpush.msra.mxu3 %v2267_v33 }
  0x38   :  { %525 = vmatpush.msrb.mxu0 %v2273_v34  ;;  %546 = vmatpush.msrb.mxu1 %v2327_v43 }
  0x39   :  { %568 = vmatpush.msra.mxu2 %v2285_v36  ;;  %588 = vmatpush.msra.mxu3 %v2295_v38 }
  0x3a   :  { %526 = vmatpush.msrb.mxu0 %v2300_v39  ;;  %547 = vmatpush.msrb.mxu1 %v2353_v47 }
  0x3b   :  { %569 = vmatpush.msra.mxu2 %v2316_v41  ;;  %589 = vmatpush.msra.mxu3 %v2321_v42 }
  0x3c   :  { %527 = vmatpush.msrb.mxu0 %v2333_v44  ;;  %548 = vmatpush.msrb.mxu1 %v2374_v51 }
  0x3d   :  { %570 = vmatpush.msra.mxu2 %v2341_v45  ;;  %590 = vmatpush.msra.mxu3 %v2346_v46 }
  0x3e   :  { %528 = vmatpush.msrb.mxu0 %v2358_v48  ;;  %549 = vmatpush.msrb.mxu1 %v2399_v55 }
  0x3f   :  { %571 = vmatpush.msra.mxu2 %v2367_v50  ;;  %591 = vmatpush.msra.mxu3 %v2379_v52 }
  0x40   :  { %529 = vmatpush.msrb.mxu0 %v2391_v54  ;;  %550 = vmatpush.msrb.mxu1 %v2413_v57 }
  0x41   :  { %572 = vmatpush.msra.mxu2 %v2386_v53  ;;  %592 = vmatpush.msra.mxu3 %v2404_v56 }
  0x42   :  { %530 = vmatpush.msrb.mxu0 %v2430_v60  ;;  %551 = vmatpush.msrb.mxu1 %v2439_v61 }
  0x43   :  { %573 = vmatpush.msra.mxu2 %v2418_v58  ;;  %593 = vmatpush.msra.mxu3 %v2425_v59 }
  0x44   :  { %531 = vmatpush.msrb.mxu0 %v2458_v0  ;;  %552 = vmatpush.msrb.mxu1 %v2463_v1 }
  0x45   :  { %574 = vmatpush.msra.mxu2 %v2444_v62  ;;  %594 = vmatpush.msra.mxu3 %v2451_v63 }
  0x46   :  { %532 = vmatpush.msrb.mxu0 %v2486_v9  ;;  %553 = vmatpush.msrb.mxu1 %v2491_v10 }
  0x47   :  { %575 = vmatpush.msra.mxu2 %v2473_v3  ;;  %595 = vmatpush.msra.mxu3 %v2478_v4 }
  0x48   :  { %533 = vmatpush.msrb.mxu0 %v2510_v16  ;;  %554 = vmatpush.msrb.mxu1 %v2515_v19 }
  0x49   :  { %576 = vmatpush.msra.mxu2 %v2498_v11  ;;  %596 = vmatpush.msra.mxu3 %v2503_v12 }
  0x4a   :  { %534 = vmatpush.msrb.mxu0 %v2536_v28  ;;  %555 = vmatpush.msrb.mxu1 %v2541_v29 }
  0x4b   :  { %577 = vmatpush.msra.mxu2 %v2522_v22  ;;  %597 = vmatpush.msra.mxu3 %v2527_v25 }
  0x4c   :  { %535 = vmatpush.msrb.mxu0 %v2561_v5  ;;  %556 = vmatpush.msrb.mxu1 %v2568_v6 }
  0x4d   :  { %578 = vmatpush.msra.mxu2 %v2549_v37  ;;  %598 = vmatpush.msra.mxu3 %v2556_v2 }
  0x4e   :  { %536 = vmatpush.msrb.mxu0 %v2590_v14  ;;  %557 = vmatpush.msrb.mxu1 %v2597_v49 }
  0x4f   :  { %579 = vmatpush.msra.mxu2 %v2573_v7  ;;  %599 = vmatpush.msra.mxu3 %v3790_v13 }
  0x50   :  { %537 = vmatpush.msrb.mxu0 %v2604_v15  ;;  %558 = vmatpush.msrb.mxu1 %v2611_v26 }
  0x51   :  { %740 = vmatpush.msrb.mxu2 %v2202_v17  ;;  %760 = vmatpush.msrb.mxu3 %v2207_v18 }
  0x52   :  { %538 = vmatpush.msrb.mxu0 %v2617_v27  ;;  %559 = vmatpush.msrb.mxu1 %v2624_v8 }
  0x53   :  { %741 = vmatpush.msrb.mxu2 %v2215_v20  ;;  %761 = vmatpush.msrb.mxu3 %v2220_v21 }
  0x54   :  { %539 = vmatpush.msrb.mxu0 %v2631_v30  ;;  %720 = vmatpush.msra.mxu1 %v2280_v35 }
  0x55   :  { %742 = vmatpush.msrb.mxu2 %v2230_v23  ;;  %762 = vmatpush.msrb.mxu3 %v2235_v24 }
  0x56   :  { %700 = vmatpush.msra.mxu0 %v2257_v31  ;;  %721 = vmatpush.msra.mxu1 %v2307_v40 }
  0x57   :  { %743 = vmatpush.msrb.mxu2 %v2262_v32  ;;  %763 = vmatpush.msrb.mxu3 %v2267_v33 }
  0x58   :  { %701 = vmatpush.msra.mxu0 %v2273_v34  ;;  %722 = vmatpush.msra.mxu1 %v2327_v43 }
  0x59   :  { %744 = vmatpush.msrb.mxu2 %v2285_v36  ;;  %764 = vmatpush.msrb.mxu3 %v2295_v38 }
  0x5a   :  { %702 = vmatpush.msra.mxu0 %v2300_v39  ;;  %723 = vmatpush.msra.mxu1 %v2353_v47 }
  0x5b   :  { %745 = vmatpush.msrb.mxu2 %v2316_v41  ;;  %765 = vmatpush.msrb.mxu3 %v2321_v42 }
  0x5c   :  { %703 = vmatpush.msra.mxu0 %v2333_v44  ;;  %724 = vmatpush.msra.mxu1 %v2374_v51 }
  0x5d   :  { %746 = vmatpush.msrb.mxu2 %v2341_v45  ;;  %766 = vmatpush.msrb.mxu3 %v2346_v46 }
  0x5e   :  { %704 = vmatpush.msra.mxu0 %v2358_v48  ;;  %725 = vmatpush.msra.mxu1 %v2399_v55 }
  0x5f   :  { %747 = vmatpush.msrb.mxu2 %v2367_v50  ;;  %767 = vmatpush.msrb.mxu3 %v2379_v52 }
  0x60   :  { %705 = vmatpush.msra.mxu0 %v2391_v54  ;;  %726 = vmatpush.msra.mxu1 %v2413_v57 }
  0x61   :  { %748 = vmatpush.msrb.mxu2 %v2386_v53  ;;  %768 = vmatpush.msrb.mxu3 %v2404_v56 }
  0x62   :  { %706 = vmatpush.msra.mxu0 %v2430_v60  ;;  %727 = vmatpush.msra.mxu1 %v2439_v61 }
  0x63   :  { %749 = vmatpush.msrb.mxu2 %v2418_v58  ;;  %769 = vmatpush.msrb.mxu3 %v2425_v59 }
  0x64   :  { %707 = vmatpush.msra.mxu0 %v2458_v0  ;;  %728 = vmatpush.msra.mxu1 %v2463_v1 }
  0x65   :  { %750 = vmatpush.msrb.mxu2 %v2444_v62  ;;  %770 = vmatpush.msrb.mxu3 %v2451_v63 }
  0x66   :  { %708 = vmatpush.msra.mxu0 %v2486_v9  ;;  %729 = vmatpush.msra.mxu1 %v2491_v10 }
  0x67   :  { %751 = vmatpush.msrb.mxu2 %v2473_v3  ;;  %771 = vmatpush.msrb.mxu3 %v2478_v4  ;;  %v175_v4 = vld.sshfl [vmem:[#allocation1 + $0x30] sm:$0xff pattern:$0x73625140]  ;;  %v176_v3 = vld.sshfl [vmem:[#allocation1 + $0x38] sm:$0xff pattern:$0x73625140] }
  0x68   :  { %709 = vmatpush.msra.mxu0 %v2510_v16  ;;  %730 = vmatpush.msra.mxu1 %v2515_v19 }
  0x69   :  { %752 = vmatpush.msrb.mxu2 %v2498_v11  ;;  %772 = vmatpush.msrb.mxu3 %v2503_v12  ;;  %v172_v12 = vld.sshfl [vmem:[#allocation1 + $0x18] sm:$0xff pattern:$0x73625140] }
  0x6a   :  { %710 = vmatpush.msra.mxu0 %v2536_v28  ;;  %731 = vmatpush.msra.mxu1 %v2541_v29  ;;  %v174_v28 = vld.sshfl [vmem:[#allocation1 + $0x28] sm:$0xff pattern:$0x73625140] }
  0x6b   :  { %753 = vmatpush.msrb.mxu2 %v2522_v22  ;;  %773 = vmatpush.msrb.mxu3 %v2527_v25  ;;  %v171_v22 = vld.sshfl [vmem:[#allocation1 + $0x10] sm:$0xff pattern:$0x73625140] }
  0x6c   :  { %711 = vmatpush.msra.mxu0 %v2561_v5  ;;  %732 = vmatpush.msra.mxu1 %v2568_v6 }
  0x6d   :  { %754 = vmatpush.msrb.mxu2 %v2549_v37  ;;  %774 = vmatpush.msrb.mxu3 %v2556_v2 }
  0x6e   :  { %712 = vmatpush.msra.mxu0 %v2590_v14  ;;  %733 = vmatpush.msra.mxu1 %v2597_v49 }
  0x6f   :  { %755 = vmatpush.msrb.mxu2 %v2573_v7  ;;  %775 = vmatpush.msrb.mxu3 %v3790_v13 }
  0x70   :  { %713 = vmatpush.msra.mxu0 %v2604_v15  ;;  %734 = vmatpush.msra.mxu1 %v2611_v26  ;;  %v170_v26 = vld.sshfl [vmem:[#allocation1 + $0x8] sm:$0xff pattern:$0x73625140] }
  0x72   :  { %714 = vmatpush.msra.mxu0 %v2617_v27  ;;  %735 = vmatpush.msra.mxu1 %v2624_v8 }
  0x74   :  { %715 = vmatpush.msra.mxu0 %v2631_v30  ;;  %v169_v30 = vld.sshfl [vmem:[#allocation1] sm:$0xff pattern:$0x73625140] }
  0x8e   :  { %v207_v25 = vpop.f32.mrf.mxu1 }
  0x95   :  { %v253_v49 = vpop.f32.mrf.mxu2 }
  0x96   :  { %v254_v37 = vadd.f32 %v253_v49, %v171_v22  ;;  %v210_v15 = vpop.f32.mrf.mxu1 }
  0x98   :  { %v276_v11 = vpop.f32.mrf.mxu3  ;;  %v291_v2 = vrot.slane %v254_v37, 4  ;;  %v208_v37 = vadd.f32 %v207_v25, %v169_v30 }
  0x99   :  { %v277_v6 = vadd.f32 %v276_v11, %v172_v12 }
  0x9b   :  { %v292_v7 = vrot.slane %v277_v6, 2 }
  0x9d   :  { %v302_v27 = vsel %vm301_vm5, %v292_v7, %v291_v2  ;;  %v307_v13 = vsel %vm123_vm1, %v291_v2, %v292_v7  ;;  %v311_v8 = vsel %vm299_vm4, %v291_v2, %v292_v7 }
  0x9e   :  { %v230_v14 = vpop.f32.mrf.mxu1 }
  0x9f   :  { %v231_v22 = vadd.f32 %v230_v14, %v170_v26 }
  0xa0   :  { %v256_v49 = vpop.f32.mrf.mxu2 }
  0xa1   :  { %v279_v29 = vpop.f32.mrf.mxu3  ;;  %v290_v11 = vrot.slane %v231_v22, 6  ;;  %v257_v12 = vadd.f32 %v256_v49, %v175_v4  ;;  %v173_v4 = vld.sshfl [vmem:[#allocation1 + $0x20] sm:$0xff pattern:$0x73625140] }
  0xa2   :  { %v280_v5 = vadd.f32 %v279_v29, %v176_v3  ;;  %v211_v49 = vadd.f32 %v210_v15, %v173_v4 }
  0xa3   :  { %v300_v6 = vsel %vm299_vm4, %v208_v37, %v290_v11  ;;  %v306_v63 = vsel %vm125_vm2, %v208_v37, %v290_v11  ;;  %v310_v62 = vsel %vm301_vm5, %v290_v11, %v208_v37  ;;  %v294_v19 = vrot.slane %v257_v12, 4 }
  0xa4   :  { %v295_v59 = vrot.slane %v280_v5, 2  ;;  %v2771_v58 = vsel %vm303_vm6, %v300_v6, %v302_v27  ;;  %v2774_v14 = vsel %vm127_vm3, %v307_v13, %v306_v63  ;;  %v2777_v25 = vsel %vm303_vm6, %v311_v8, %v310_v62 }
  0xa5   :  { %3791 = vst [vmem:[#allocation33_spill] sm:$0xff] %v2774_v14 }
  0xa6   :  { %3792 = vst [vmem:[#allocation34_spill] sm:$0xff] %v2777_v25  ;;  %v315_v29 = vsel %vm125_vm2, %v294_v19, %v295_v59  ;;  %v318_v26 = vsel %vm301_vm5, %v295_v59, %v294_v19  ;;  %v322_v30 = vsel %vm123_vm1, %v294_v19, %v295_v59  ;;  %v326_v22 = vsel %vm299_vm4, %v294_v19, %v295_v59 }
  0xa7   :  { %v233_v3 = vpop.f32.mrf.mxu1 }
  0xa8   :  { %v234_v5 = vadd.f32 %v233_v3, %v174_v28 }
  0xaa   :  { %v293_v27 = vrot.slane %v234_v5, 6 }
  0xac   :  { %v314_v12 = vsel %vm123_vm1, %v211_v49, %v293_v27  ;;  %v317_v63 = vsel %vm299_vm4, %v211_v49, %v293_v27  ;;  %v321_v62 = vsel %vm125_vm2, %v211_v49, %v293_v27  ;;  %v325_v8 = vsel %vm301_vm5, %v293_v27, %v211_v49 }
  0xad   :  { %v2788_v13 = vsel %vm127_vm3, %v314_v12, %v315_v29  ;;  %v2791_v6 = vsel %vm303_vm6, %v317_v63, %v318_v26  ;;  %v2794_v25 = vsel %vm127_vm3, %v322_v30, %v321_v62  ;;  %v2797_v59 = vsel %vm303_vm6, %v326_v22, %v325_v8 }
  0xae   :  { %3793 = vst [vmem:[#allocation35_spill] sm:$0xff] %v2788_v13  ;;  %v296_v49 = vsel %vm123_vm1, %v208_v37, %v290_v11  ;;  %v297_v29 = vsel %vm125_vm2, %v291_v2, %v292_v7 }
  0xaf   :  { %3794 = vst [vmem:[#allocation36_spill] sm:$0xff] %v2791_v6  ;;  %v298_v30 = vsel %vm127_vm3, %v296_v49, %v297_v29 }
  0xb0   :  { %3795 = vst [vmem:[#allocation37_spill] sm:$0xff] %v2794_v25  ;;  %v407_v19 = vpop.f32.mrf.mxu2  ;;  %v387_v28 = vpop.f32.mrf.mxu1 }
  0xb1   :  { %3796 = vst [vmem:[#allocation38_spill] sm:$0xff] %v2797_v59  ;;  %v435_v15 = vrot.slane %v407_v19, 4  ;;  %v427_v4 = vpop.f32.mrf.mxu3  ;;  %v434_v3 = vrot.slane %v387_v28, 6 }
  0xb2   :  { %v436_v5 = vrot.slane %v427_v4, 2  ;;  %v367_v27 = vpop.f32.mrf.mxu0 }
  0xb3   :  { %v437_v12 = vsel %vm123_vm1, %v367_v27, %v434_v3 }
  0xb4   :  { %v438_v26 = vsel %vm125_vm2, %v435_v15, %v436_v5 }
  0xb5   :  { %v439_v22 = vsel %vm127_vm3, %v437_v12, %v438_v26 }
  0xb6   :  { %v441_v63 = vadd.f32 %v439_v22, %v298_v30 }
  0xb8   :  { %v1882_v62 = vmul.f32 -1.442695, %v441_v63  ;;  %v462_v8 = vrot.slane %v441_v63, 2  ;;  %v486_v19 = vrot.slane %v441_v63, 6  ;;  %v483_v26 = vrot.slane %v441_v63, 4 }
  0xba   :  { %1915 = vpow2.f32 %v1882_v62  ;;  %v1883_v28 = vmul.f32 -1.442695, %v462_v8  ;;  %v1884_v4 = vmul.f32 -1.442695, %v486_v19 }
  0xbc   :  { %1917 = vpow2.f32 %v1883_v28 }
  0xbd   :  { %1919 = vpow2.f32 %v1884_v4 }
  0xc0   :  { %v1916_v37 = vpop.eup %1915 }
  0xc1   :  { %v445_v2 = vadd.f32 1.0, %v1916_v37 }
  0xc2   :  { %v1918_v7 = vpop.eup %1917 }
  0xc3   :  { %v1920_v11 = vpop.eup %1919  ;;  %1921 = vrcp.f32 %v445_v2  ;;  %v467_v15 = vadd.f32 1.0, %v1918_v7  ;;  %v457_v62 = vand.u32 2147483648, %v445_v2  ;;  %v455_v19 = vand.u32 2147483647, %v445_v2 }
  0xc4   :  { %v491_v3 = vadd.f32 1.0, %v1920_v11  ;;  %vm451_vm8 = vweird.f32 %v445_v2 }
  0xc5   :  { %1923 = vrcp.f32 %v467_v15  ;;  %v479_v37 = vand.u32 2147483648, %v467_v15  ;;  %v477_v11 = vand.u32 2147483647, %v467_v15  ;;  %v458_v25 = vor.u32 1.1754944e-38, %v457_v62 }
  0xc6   :  { %1925 = vrcp.f32 %v491_v3  ;;  %vm456_vm11 = vcmp.eq.f32.partialorder %v455_v19, 8.507059e+37  ;;  %vm473_vm12 = vweird.f32 %v467_v15  ;;  %vm497_vm4 = vweird.f32 %v491_v3 }
  0xc7   :  { %1927 = vtanh.f32 %v483_v26  ;;  %v480_v13 = vor.u32 1.1754944e-38, %v479_v37  ;;  %vm478_vm14 = vcmp.eq.f32.partialorder %v477_v11, 8.507059e+37  ;;  %v3797_v37 = vld [vmem:[#allocation25_spill] sm:$0xff] }
  0xc9   :  { %v1922_v5 = vpop.eup %1921 }
  0xca   :  { %v447_v49 = vmul.f32 %v1922_v5, %v445_v2  ;;  %vm452_vm7 = vweird.f32 %v1922_v5  ;;  %v512_v2 = vld [vmem:[%s3673_s1] sm:$0x3] }
  0xcb   :  { %v1924_v29 = vpop.eup %1923  ;;  %vm453_vm9 = vmor %vm451_vm8, %vm452_vm7  ;;  %vm513_vm15 = vcmp.gt.f32.partialorder %v512_v2, 0.0 }
  0xcc   :  { %v448_v27 = vsub.f32 1.0, %v447_v49  ;;  %v1926_v12 = vpop.eup %1925  ;;  %v469_v30 = vmul.f32 %v1924_v29, %v467_v15  ;;  %vm474_vm10 = vweird.f32 %v1924_v29  ;;  %v503_v15 = vand.u32 2147483648, %v491_v3 }
  0xcd   :  { %v493_v8 = vmul.f32 %v1926_v12, %v491_v3  ;;  %vm475_vm13 = vmor %vm473_vm12, %vm474_vm10  ;;  %v1928_v26 = vpop.eup %1927  ;;  %vm498_vm0 = vweird.f32 %v1926_v12 }
  0xce   :  { %v449_v22 = vmul.f32 %v1922_v5, %v448_v27  ;;  %v470_v28 = vsub.f32 1.0, %v469_v30  ;;  %v348_v27 = vld [vmem:[#allocation3] sm:$0x3]  ;;  %vm499_vm5 = vmor %vm497_vm4, %vm498_vm0  ;;  %v504_v19 = vor.u32 1.1754944e-38, %v503_v15 }
  0xcf   :  { %v494_v49 = vsub.f32 1.0, %v493_v8 }
  0xd0   :  { %v450_v4 = vadd.f32 %v1922_v5, %v449_v22  ;;  %v471_v7 = vmul.f32 %v1924_v29, %v470_v28 }
  0xd1   :  { %v495_v22 = vmul.f32 %v1926_v12, %v494_v49 }
  0xd2   :  { %v454_v59 = vsel %vm453_vm9, %v1922_v5, %v450_v4  ;;  %v472_v63 = vadd.f32 %v1924_v29, %v471_v7 }
  0xd3   :  { %v459_v6 = vsel %vm456_vm11, %v458_v25, %v454_v59  ;;  %v496_v8 = vadd.f32 %v1926_v12, %v495_v22  ;;  %v501_v59 = vand.u32 2147483647, %v491_v3 }
  0xd4   :  { %v476_v14 = vsel %vm475_vm13, %v1924_v29, %v472_v63  ;;  %v508_v5 = vmul.f32 %v1928_v26, %v459_v6 }
  0xd5   :  { %v481_v30 = vsel %vm478_vm14, %v480_v13, %v476_v14  ;;  %v500_v29 = vsel %vm499_vm5, %v1926_v12, %v496_v8  ;;  %vm502_vm6 = vcmp.eq.f32.partialorder %v501_v59, 8.507059e+37 }
  0xd6   :  { %v507_v28 = vmul.f32 %v481_v30, %v348_v27  ;;  %v505_v14 = vsel %vm502_vm6, %v504_v19, %v500_v29 }
  0xd8   :  { %v509_v62 = vadd.f32 %v508_v5, %v507_v28 }
  0xda   :  { %1929 = vtanh.f32 %v509_v62  ;;  %v516_v25 = vsel %vm513_vm15, %v509_v62, %v348_v27 }
  0xdb   :  { %517 = vst [vmem:[#allocation3] sm:$0x3] %v516_v25 }
  0xe0   :  { %v1930_v4 = vpop.eup %1929 }
  0xe1   :  { %v511_v13 = vmul.f32 %v1930_v4, %v505_v14 }
  0xe3   :  { %v514_v6 = vsel %vm513_vm15, %v511_v13, %v3797_v37  ;;  %v518_v7 = vmul.f32 %v512_v2, %v511_v13 }
  0xe4   :  { %515 = vst [vmem:[#allocation2] sm:$0x3] %v514_v6 }
  0xe5   :  { %519 = vst [vmem:[#allocation5] sm:$0x3] %v518_v7 }
  0xeb   :  { %v2811_v11 = vld [vmem:[#allocation2] sm:$0x3] }
  0xec   :  { %540 = vmatmul.f32.vlgmr.msrb.gmra.mxu0 %v2811_v11  ;;  %560 = vmatmul.f32.vlgmr.msrb.gmra.mxu1 %v2811_v11  ;;  %v1752_v3 = vld [vmem:[#allocation5] sm:$0x3] }
  0xed   :  { %580 = vmatmul.f32.vlgmr.msra.gmra.mxu2 %v2811_v11  ;;  %600 = vmatmul.f32.vlgmr.msra.gmra.mxu3 %v2811_v11  ;;  %1787 = vst [vmem:[#allocation1] ss:$4 sm:$0xff] %v1752_v3 }
  0xee   :  { %876 = vmatpush.msrb.mxu0 %v2257_v31  ;;  %896 = vmatpush.msrb.mxu1 %v2280_v35  ;;  %v3804_v31 = vld [vmem:[#allocation21_spill] sm:$0xff]  ;;  %v3808_v35 = vld [vmem:[#allocation26_spill] sm:$0xff] }
  0xef   :  { %916 = vmatpush.msra.mxu2 %v2202_v17  ;;  %936 = vmatpush.msra.mxu3 %v2207_v18  ;;  %v3798_v17 = vld [vmem:[#allocation6_spill] sm:$0xff]  ;;  %v3799_v18 = vld [vmem:[#allocation7_spill] sm:$0xff] }
  0xf0   :  { %877 = vmatpush.msrb.mxu0 %v2273_v34  ;;  %897 = vmatpush.msrb.mxu1 %v2307_v40  ;;  %v3807_v34 = vld [vmem:[#allocation11_spill] sm:$0xff]  ;;  %v3812_v40 = vld [vmem:[#allocation28_spill] sm:$0xff] }
  0xf1   :  { %917 = vmatpush.msra.mxu2 %v2215_v20  ;;  %937 = vmatpush.msra.mxu3 %v2220_v21  ;;  %v3800_v20 = vld [vmem:[#allocation17_spill] sm:$0xff]  ;;  %v3801_v21 = vld [vmem:[#allocation14_spill] sm:$0xff] }
  0xf2   :  { %878 = vmatpush.msrb.mxu0 %v2300_v39  ;;  %898 = vmatpush.msrb.mxu1 %v2327_v43  ;;  %v3811_v39 = vld [vmem:[#allocation13_spill] sm:$0xff]  ;;  %v3815_v43 = vld [vmem:[#allocation16_spill] sm:$0xff] }
  0xf3   :  { %918 = vmatpush.msra.mxu2 %v2230_v23  ;;  %938 = vmatpush.msra.mxu3 %v2235_v24  ;;  %v3802_v23 = vld [vmem:[#allocation8_spill] sm:$0xff]  ;;  %v3803_v24 = vld [vmem:[#allocation9_spill] sm:$0xff] }
  0xf4   :  { %879 = vmatpush.msrb.mxu0 %v2333_v44  ;;  %899 = vmatpush.msrb.mxu1 %v2353_v47  ;;  %v3816_v44 = vld [vmem:[#allocation30_spill] sm:$0xff]  ;;  %v3819_v47 = vld [vmem:[#allocation20_spill] sm:$0xff] }
  0xf5   :  { %919 = vmatpush.msra.mxu2 %v2262_v32  ;;  %939 = vmatpush.msra.mxu3 %v2267_v33  ;;  %v3805_v32 = vld [vmem:[#allocation18_spill] sm:$0xff] }
  0xf6   :  { %880 = vmatpush.msrb.mxu0 %v2358_v48  ;;  %900 = vmatpush.msrb.mxu1 %v2374_v51  ;;  %v3806_v33 = vld [vmem:[#allocation10_spill] sm:$0xff]  ;;  %v3820_v48 = vld [vmem:[#allocation32_spill] sm:$0xff]  ;;  %v3822_v51 = vld [vmem:[#allocation23_spill] sm:$0xff] }
  0xf7   :  { %920 = vmatpush.msra.mxu2 %v2285_v36  ;;  %940 = vmatpush.msra.mxu3 %v2295_v38  ;;  %v3809_v36 = vld [vmem:[#allocation22_spill] sm:$0xff]  ;;  %v3810_v38 = vld [vmem:[#allocation12_spill] sm:$0xff] }
  0xf8   :  { %881 = vmatpush.msrb.mxu0 %v2391_v54  ;;  %901 = vmatpush.msrb.mxu1 %v2399_v55 }
  0xf9   :  { %921 = vmatpush.msra.mxu2 %v2316_v41  ;;  %941 = vmatpush.msra.mxu3 %v2321_v42  ;;  %v3813_v41 = vld [vmem:[#allocation27_spill] sm:$0xff] }
  0xfa   :  { %882 = vmatpush.msrb.mxu0 %v2430_v60  ;;  %902 = vmatpush.msrb.mxu1 %v2413_v57  ;;  %v3814_v42 = vld [vmem:[#allocation15_spill] sm:$0xff] }
  0xfb   :  { %922 = vmatpush.msra.mxu2 %v2341_v45  ;;  %942 = vmatpush.msra.mxu3 %v2346_v46  ;;  %v3817_v45 = vld [vmem:[#allocation29_spill] sm:$0xff]  ;;  %v3818_v46 = vld [vmem:[#allocation19_spill] sm:$0xff] }
  0xfc   :  { %883 = vmatpush.msrb.mxu0 %v2458_v0  ;;  %903 = vmatpush.msrb.mxu1 %v2439_v61 }
  0xfd   :  { %923 = vmatpush.msra.mxu2 %v2367_v50  ;;  %943 = vmatpush.msra.mxu3 %v2379_v52  ;;  %v3821_v50 = vld [vmem:[#allocation31_spill] sm:$0xff]  ;;  %v3823_v52 = vld [vmem:[#allocation24_spill] sm:$0xff] }
  0xfe   :  { %884 = vmatpush.msrb.mxu0 %v2486_v9  ;;  %904 = vmatpush.msrb.mxu1 %v2463_v1  ;;  %v305_v1 = vrot.slane %v2771_v58, 2 }
  0xff   :  { %924 = vmatpush.msra.mxu2 %v2386_v53  ;;  %944 = vmatpush.msra.mxu3 %v2404_v56 }
 0x100   :  { %885 = vmatpush.msrb.mxu0 %v2510_v16  ;;  %905 = vmatpush.msrb.mxu1 %v2491_v10 }
 0x101   :  { %925 = vmatpush.msra.mxu2 %v3798_v17  ;;  %945 = vmatpush.msra.mxu3 %v3799_v18 }
 0x102   :  { %886 = vmatpush.msrb.mxu0 %v3800_v20  ;;  %906 = vmatpush.msrb.mxu1 %v3801_v21 }
 0x103   :  { %926 = vmatpush.msra.mxu2 %v3802_v23  ;;  %946 = vmatpush.msra.mxu3 %v3803_v24 }
 0x104   :  { %887 = vmatpush.msrb.mxu0 %v3804_v31  ;;  %907 = vmatpush.msrb.mxu1 %v3805_v32 }
 0x105   :  { %927 = vmatpush.msra.mxu2 %v3806_v33  ;;  %947 = vmatpush.msra.mxu3 %v3807_v34  ;;  %v1888_v34 = vld [vmem:[%s3673_s1 + $0x2] sm:$0x3] }
 0x106   :  { %888 = vmatpush.msrb.mxu0 %v3808_v35  ;;  %908 = vmatpush.msrb.mxu1 %v3809_v36  ;;  %v521_v36 = vld [vmem:[#allocation3] sm:$0x3]  ;;  %vm688_vm15 = vcmp.gt.f32.partialorder %v1888_v34, 0.0 }
 0x107   :  { %928 = vmatpush.msra.mxu2 %v3810_v38  ;;  %948 = vmatpush.msra.mxu3 %v3811_v39 }
 0x108   :  { %889 = vmatpush.msrb.mxu0 %v3812_v40  ;;  %909 = vmatpush.msrb.mxu1 %v3813_v41 }
 0x109   :  { %929 = vmatpush.msra.mxu2 %v3814_v42  ;;  %949 = vmatpush.msra.mxu3 %v3815_v43 }
 0x10a   :  { %890 = vmatpush.msrb.mxu0 %v3816_v44  ;;  %910 = vmatpush.msrb.mxu1 %v3817_v45 }
 0x10b   :  { %930 = vmatpush.msra.mxu2 %v3818_v46  ;;  %950 = vmatpush.msra.mxu3 %v3819_v47 }
 0x10c   :  { %891 = vmatpush.msrb.mxu0 %v3820_v48  ;;  %911 = vmatpush.msrb.mxu1 %v3821_v50 }
 0x10d   :  { %931 = vmatpush.msra.mxu2 %v3822_v51  ;;  %951 = vmatpush.msra.mxu3 %v3823_v52 }
 0x169   :  { %v561_v53 = vpop.f32.mrf.mxu1  ;;  %v541_v61 = vpop.f32.mrf.mxu0 }
 0x16a   :  { %v608_v54 = vrot.slane %v561_v53, 6 }
 0x16c   :  { %v611_v0 = vsel %vm123_vm1, %v541_v61, %v608_v54 }
 0x170   :  { %v581_v55 = vpop.f32.mrf.mxu2  ;;  %v601_v56 = vpop.f32.mrf.mxu3 }
 0x171   :  { %v609_v57 = vrot.slane %v581_v55, 4  ;;  %v610_v60 = vrot.slane %v601_v56, 2 }
 0x173   :  { %v612_v9 = vsel %vm125_vm2, %v609_v57, %v610_v60 }
 0x174   :  { %v613_v10 = vsel %vm127_vm3, %v611_v0, %v612_v9  ;;  %v2900_v9 = vld [vmem:[%s3671_s3 + $0x1e0] sm:$0xff] }
 0x175   :  { %v615_v16 = vadd.f32 %v613_v10, %v305_v1  ;;  %v2912_v10 = vld [vmem:[%s3671_s3 + $0x1f0] sm:$0xff] }
 0x177   :  { %v1885_v12 = vmul.f32 -1.442695, %v615_v16  ;;  %v636_v49 = vrot.slane %v615_v16, 2  ;;  %v660_v63 = vrot.slane %v615_v16, 6  ;;  %v657_v59 = vrot.slane %v615_v16, 4  ;;  %v2918_v16 = vld [vmem:[%s3671_s3 + $0x1f8] sm:$0xff] }
 0x179   :  { %1931 = vpow2.f32 %v1885_v12  ;;  %v1886_v27 = vmul.f32 -1.442695, %v636_v49  ;;  %v1887_v2 = vmul.f32 -1.442695, %v660_v63  ;;  %v2924_v12 = vld [vmem:[%s3671_s3 + $0x1c0] sm:$0xff]  ;;  %v2930_v49 = vld [vmem:[%s3671_s3 + $0x1c8] sm:$0xff] }
 0x17a   :  { %v2936_v63 = vld [vmem:[%s3671_s3 + $0x1d0] sm:$0xff] }
 0x17b   :  { %1933 = vpow2.f32 %v1886_v27  ;;  %v2942_v27 = vld [vmem:[%s3671_s3 + $0x1d8] sm:$0xff] }
 0x17c   :  { %1935 = vpow2.f32 %v1887_v2  ;;  %v2948_v2 = vld [vmem:[%s3671_s3 + $0x1a0] sm:$0xff] }
 0x17f   :  { %v1932_v26 = vpop.eup %1931 }
 0x180   :  { %v619_v30 = vadd.f32 1.0, %v1932_v26  ;;  %v2954_v26 = vld [vmem:[%s3671_s3 + $0x1a8] sm:$0xff] }
 0x181   :  { %v1934_v22 = vpop.eup %1933 }
 0x182   :  { %v1936_v28 = vpop.eup %1935  ;;  %1937 = vrcp.f32 %v619_v30  ;;  %v641_v5 = vadd.f32 1.0, %v1934_v22  ;;  %v631_v14 = vand.u32 2147483648, %v619_v30  ;;  %v629_v37 = vand.u32 2147483647, %v619_v30  ;;  %v2966_v22 = vld [vmem:[%s3671_s3 + $0x1b8] sm:$0xff] }
 0x183   :  { %v665_v58 = vadd.f32 1.0, %v1936_v28  ;;  %vm625_vm8 = vweird.f32 %v619_v30  ;;  %v2972_v28 = vld [vmem:[%s3671_s3 + $0x180] sm:$0xff] }
 0x184   :  { %1939 = vrcp.f32 %v641_v5  ;;  %v653_v3 = vand.u32 2147483648, %v641_v5  ;;  %v651_v18 = vand.u32 2147483647, %v641_v5  ;;  %v632_v21 = vor.u32 1.1754944e-38, %v631_v14  ;;  %v3038_v14 = vld [vmem:[%s3671_s3 + $0x158] sm:$0xff] }
 0x185   :  { %1941 = vrcp.f32 %v665_v58  ;;  %vm630_vm11 = vcmp.eq.f32.partialorder %v629_v37, 8.507059e+37  ;;  %vm647_vm12 = vweird.f32 %v641_v5  ;;  %v677_v47 = vand.u32 2147483648, %v665_v58  ;;  %v3050_v37 = vld [vmem:[%s3671_s3 + $0x128] sm:$0xff] }
 0x186   :  { %1943 = vtanh.f32 %v657_v59  ;;  %v654_v32 = vor.u32 1.1754944e-38, %v653_v3  ;;  %vm652_vm14 = vcmp.eq.f32.partialorder %v651_v18, 8.507059e+37  ;;  %vm671_vm4 = vweird.f32 %v665_v58  ;;  %v3014_v59 = vld [vmem:[%s3671_s3 + $0x178] sm:$0xff]  ;;  %v3068_v3 = vld [vmem:[%s3671_s3 + $0x100] sm:$0xff]  ;;  %v3080_v18 = vld [vmem:[%s3671_s3 + $0x110] sm:$0xff] }
 0x187   :  { %v675_v52 = vand.u32 2147483647, %v665_v58  ;;  %v678_v54 = vor.u32 1.1754944e-38, %v677_v47  ;;  %v3182_v47 = vld [vmem:[%s3671_s3 + $0x98] sm:$0xff] }
 0x188   :  { %v1938_v62 = vpop.eup %1937  ;;  %3833 = vst [vmem:[#allocation10_spill] sm:$0xff] %v3182_v47 }
 0x189   :  { %v621_v8 = vmul.f32 %v1938_v62, %v619_v30  ;;  %vm626_vm7 = vweird.f32 %v1938_v62  ;;  %vm676_vm6 = vcmp.eq.f32.partialorder %v675_v52, 8.507059e+37  ;;  %v2960_v30 = vld [vmem:[%s3671_s3 + $0x1b0] sm:$0xff]  ;;  %v3194_v52 = vld [vmem:[%s3671_s3 + $0x68] sm:$0xff] }
 0x18a   :  { %v1940_v15 = vpop.eup %1939  ;;  %vm627_vm9 = vmor %vm625_vm8, %vm626_vm7  ;;  %3835 = vst [vmem:[#allocation26_spill] sm:$0xff] %v3194_v52 }
 0x18b   :  { %v622_v25 = vsub.f32 1.0, %v621_v8  ;;  %v1942_v29 = vpop.eup %1941  ;;  %v643_v19 = vmul.f32 %v1940_v15, %v641_v5  ;;  %vm648_vm10 = vweird.f32 %v1940_v15  ;;  %v2978_v5 = vld [vmem:[%s3671_s3 + $0x188] sm:$0xff]  ;;  %v2996_v8 = vld [vmem:[%s3671_s3 + $0x160] sm:$0xff] }
 0x18c   :  { %v667_v13 = vmul.f32 %v1942_v29, %v665_v58  ;;  %vm649_vm13 = vmor %vm647_vm12, %vm648_vm10  ;;  %v1944_v35 = vpop.eup %1943  ;;  %vm672_vm0 = vweird.f32 %v1942_v29  ;;  %v2984_v58 = vld [vmem:[%s3671_s3 + $0x190] sm:$0xff] }
 0x18d   :  { %v623_v4 = vmul.f32 %v1938_v62, %v622_v25  ;;  %v644_v6 = vsub.f32 1.0, %v643_v19  ;;  %vm673_vm5 = vmor %vm671_vm4, %vm672_vm0  ;;  %v3008_v25 = vld [vmem:[%s3671_s3 + $0x170] sm:$0xff]  ;;  %v3026_v19 = vld [vmem:[%s3671_s3 + $0x148] sm:$0xff] }
 0x18e   :  { %v668_v23 = vsub.f32 1.0, %v667_v13  ;;  %v3044_v13 = vld [vmem:[%s3671_s3 + $0x120] sm:$0xff] }
 0x18f   :  { %v624_v7 = vadd.f32 %v1938_v62, %v623_v4  ;;  %v645_v17 = vmul.f32 %v1940_v15, %v644_v6  ;;  %v3032_v4 = vld [vmem:[%s3671_s3 + $0x150] sm:$0xff] }
 0x190   :  { %v669_v39 = vmul.f32 %v1942_v29, %v668_v23  ;;  %v3056_v6 = vld [vmem:[%s3671_s3 + $0x130] sm:$0xff]  ;;  %v3098_v23 = vld [vmem:[%s3671_s3 + $0xe8] sm:$0xff] }
 0x191   :  { %v628_v20 = vsel %vm627_vm9, %v1938_v62, %v624_v7  ;;  %v646_v24 = vadd.f32 %v1940_v15, %v645_v17  ;;  %v2990_v62 = vld [vmem:[%s3671_s3 + $0x198] sm:$0xff]  ;;  %v3074_v17 = vld [vmem:[%s3671_s3 + $0x108] sm:$0xff] }
 0x192   :  { %v633_v31 = vsel %vm630_vm11, %v632_v21, %v628_v20  ;;  %v670_v46 = vadd.f32 %v1942_v29, %v669_v39  ;;  %v3062_v7 = vld [vmem:[%s3671_s3 + $0x138] sm:$0xff]  ;;  %v3092_v21 = vld [vmem:[%s3671_s3 + $0xe0] sm:$0xff]  ;;  %v3152_v39 = vld [vmem:[%s3671_s3 + $0xb0] sm:$0xff] }
 0x193   :  { %v650_v33 = vsel %vm649_vm13, %v1940_v15, %v646_v24  ;;  %v682_v42 = vmul.f32 %v1944_v35, %v633_v31  ;;  %v3002_v15 = vld [vmem:[%s3671_s3 + $0x168] sm:$0xff]  ;;  %v3086_v20 = vld [vmem:[%s3671_s3 + $0x118] sm:$0xff]  ;;  %v3104_v24 = vld [vmem:[%s3671_s3 + $0xf0] sm:$0xff]  ;;  %3828 = vst [vmem:[#allocation14_spill] sm:$0xff] %v3152_v39 }
 0x194   :  { %v655_v38 = vsel %vm652_vm14, %v654_v32, %v650_v33  ;;  %v674_v53 = vsel %vm673_vm5, %v1942_v29, %v670_v46  ;;  %v3020_v29 = vld [vmem:[%s3671_s3 + $0x140] sm:$0xff]  ;;  %v3110_v31 = vld [vmem:[%s3671_s3 + $0xf8] sm:$0xff]  ;;  %v3122_v33 = vld [vmem:[%s3671_s3 + $0xc8] sm:$0xff] }
 0x195   :  { %v681_v41 = vmul.f32 %v655_v38, %v521_v36  ;;  %v679_v56 = vsel %vm676_vm6, %v678_v54, %v674_v53  ;;  %v3116_v32 = vld [vmem:[%s3671_s3 + $0xc0] sm:$0xff]  ;;  %v3134_v35 = vld [vmem:[%s3671_s3 + $0xd8] sm:$0xff]  ;;  %v3146_v38 = vld [vmem:[%s3671_s3 + $0xa8] sm:$0xff] }
 0x196   :  { %3825 = vst [vmem:[#allocation6_spill] sm:$0xff] %v3134_v35  ;;  %v3176_v46 = vld [vmem:[%s3671_s3 + $0x90] sm:$0xff]  ;;  %v3206_v54 = vld [vmem:[%s3671_s3 + $0x78] sm:$0xff] }
 0x197   :  { %v683_v43 = vadd.f32 %v682_v42, %v681_v41  ;;  %3827 = vst [vmem:[#allocation17_spill] sm:$0xff] %v3146_v38  ;;  %v3158_v41 = vld [vmem:[%s3671_s3 + $0xb8] sm:$0xff]  ;;  %v3164_v42 = vld [vmem:[%s3671_s3 + $0x80] sm:$0xff]  ;;  %v3200_v53 = vld [vmem:[%s3671_s3 + $0x70] sm:$0xff] }
 0x198   :  { %3829 = vst [vmem:[#allocation8_spill] sm:$0xff] %v3158_v41 }
 0x199   :  { %1945 = vtanh.f32 %v683_v43  ;;  %v691_v51 = vsel %vm688_vm15, %v683_v43, %v521_v36  ;;  %v3140_v36 = vld [vmem:[%s3671_s3 + $0xa0] sm:$0xff]  ;;  %3830 = vst [vmem:[#allocation9_spill] sm:$0xff] %v3164_v42  ;;  %v3170_v43 = vld [vmem:[%s3671_s3 + $0x88] sm:$0xff] }
 0x19a   :  { %692 = vst [vmem:[#allocation3] sm:$0x3] %v691_v51  ;;  %v3188_v51 = vld [vmem:[%s3671_s3 + $0x60] sm:$0xff] }
 0x19b   :  { %3826 = vst [vmem:[#allocation7_spill] sm:$0xff] %v3140_v36 }
 0x19c   :  { %3831 = vst [vmem:[#allocation21_spill] sm:$0xff] %v3170_v43 }
 0x19d   :  { %3832 = vst [vmem:[#allocation18_spill] sm:$0xff] %v3176_v46 }
 0x19e   :  { %3834 = vst [vmem:[#allocation11_spill] sm:$0xff] %v3188_v51 }
 0x19f   :  { %v1946_v55 = vpop.eup %1945  ;;  %3836 = vst [vmem:[#allocation22_spill] sm:$0xff] %v3200_v53 }
 0x1a0   :  { %v685_v57 = vmul.f32 %v1946_v55, %v679_v56  ;;  %3837 = vst [vmem:[#allocation12_spill] sm:$0xff] %v3206_v54  ;;  %v3213_v55 = vld [vmem:[%s3671_s3 + $0x48] sm:$0xff]  ;;  %v3219_v56 = vld [vmem:[%s3671_s3 + $0x50] sm:$0xff] }
 0x1a1   :  { %3838 = vst [vmem:[#allocation13_spill] sm:$0xff] %v3213_v55 }
 0x1a2   :  { %v689_v60 = vsel %vm688_vm15, %v685_v57, %v2811_v11  ;;  %v693_v61 = vmul.f32 %v1888_v34, %v685_v57  ;;  %v2906_v11 = vld [vmem:[%s3671_s3 + $0x1e8] sm:$0xff]  ;;  %v3128_v34 = vld [vmem:[%s3671_s3 + $0xd0] sm:$0xff]  ;;  %3839 = vst [vmem:[#allocation28_spill] sm:$0xff] %v3219_v56  ;;  %v3225_v57 = vld [vmem:[%s3671_s3 + $0x58] sm:$0xff] }
 0x1a3   :  { %690 = vst [vmem:[#allocation2] sm:$0x3] %v689_v60  ;;  %v3239_v60 = vld [vmem:[%s3671_s3 + $0x38] sm:$0xff] }
 0x1a4   :  { %695 = vst [vmem:[#allocation5 + $0x2] sm:$0x3] %v693_v61 }
 0x1a5   :  { %3824 = vst [vmem:[#allocation25_spill] sm:$0xff] %v3128_v34 }
 0x1a6   :  { %3840 = vst [vmem:[#allocation27_spill] sm:$0xff] %v3225_v57 }
 0x1a7   :  { %3842 = vst [vmem:[#allocation16_spill] sm:$0xff] %v3239_v60 }
 0x1aa   :  { %v2891_v0 = vld [vmem:[#allocation2] sm:$0x3] }
 0x1ab   :  { %716 = vmatmul.f32.vlgmr.msra.gmra.mxu0 %v2891_v0  ;;  %736 = vmatmul.f32.vlgmr.msra.gmra.mxu1 %v2891_v0  ;;  %v1753_v1 = vld [vmem:[#allocation5 + $0x2] sm:$0x3] }
 0x1ac   :  { %756 = vmatmul.f32.vlgmr.msrb.gmra.mxu2 %v2891_v0  ;;  %776 = vmatmul.f32.vlgmr.msrb.gmra.mxu3 %v2891_v0  ;;  %1789 = vst [vmem:[#allocation1 + $0x1] ss:$4 sm:$0xff] %v1753_v1 }
 0x1ad   :  { %1052 = vmatpush.msra.mxu0 %v2900_v9  ;;  %1072 = vmatpush.msra.mxu1 %v2906_v11 }
 0x1ae   :  { %1092 = vmatpush.msrb.mxu2 %v2912_v10  ;;  %1112 = vmatpush.msrb.mxu3 %v2918_v16 }
 0x1af   :  { %1053 = vmatpush.msra.mxu0 %v2924_v12  ;;  %1073 = vmatpush.msra.mxu1 %v2930_v49 }
 0x1b0   :  { %1093 = vmatpush.msrb.mxu2 %v2936_v63  ;;  %1113 = vmatpush.msrb.mxu3 %v2942_v27 }
 0x1b1   :  { %1054 = vmatpush.msra.mxu0 %v2948_v2  ;;  %1074 = vmatpush.msra.mxu1 %v2954_v26 }
 0x1b2   :  { %1094 = vmatpush.msrb.mxu2 %v2960_v30  ;;  %1114 = vmatpush.msrb.mxu3 %v2966_v22 }
 0x1b3   :  { %1055 = vmatpush.msra.mxu0 %v2972_v28  ;;  %1075 = vmatpush.msra.mxu1 %v2978_v5 }
 0x1b4   :  { %1095 = vmatpush.msrb.mxu2 %v2984_v58  ;;  %1115 = vmatpush.msrb.mxu3 %v2990_v62 }
 0x1b5   :  { %1056 = vmatpush.msra.mxu0 %v2996_v8  ;;  %1076 = vmatpush.msra.mxu1 %v3002_v15 }
 0x1b6   :  { %1096 = vmatpush.msrb.mxu2 %v3008_v25  ;;  %1116 = vmatpush.msrb.mxu3 %v3014_v59 }
 0x1b7   :  { %1057 = vmatpush.msra.mxu0 %v3020_v29  ;;  %1077 = vmatpush.msra.mxu1 %v3026_v19 }
 0x1b8   :  { %1097 = vmatpush.msrb.mxu2 %v3032_v4  ;;  %1117 = vmatpush.msrb.mxu3 %v3038_v14 }
 0x1b9   :  { %1058 = vmatpush.msra.mxu0 %v3044_v13  ;;  %1078 = vmatpush.msra.mxu1 %v3050_v37 }
 0x1ba   :  { %1098 = vmatpush.msrb.mxu2 %v3056_v6  ;;  %1118 = vmatpush.msrb.mxu3 %v3062_v7 }
 0x1bb   :  { %1059 = vmatpush.msra.mxu0 %v3068_v3  ;;  %1079 = vmatpush.msra.mxu1 %v3074_v17 }
 0x1bc   :  { %1099 = vmatpush.msrb.mxu2 %v3080_v18  ;;  %1119 = vmatpush.msrb.mxu3 %v3086_v20 }
 0x1bd   :  { %1060 = vmatpush.msra.mxu0 %v3092_v21  ;;  %1080 = vmatpush.msra.mxu1 %v3098_v23 }
 0x1be   :  { %1100 = vmatpush.msrb.mxu2 %v3104_v24  ;;  %1120 = vmatpush.msrb.mxu3 %v3110_v31 }
 0x1bf   :  { %1061 = vmatpush.msra.mxu0 %v3116_v32  ;;  %1081 = vmatpush.msra.mxu1 %v3122_v33 }
 0x1c0   :  { %1101 = vmatpush.msrb.mxu2 %v3128_v34  ;;  %1121 = vmatpush.msrb.mxu3 %v3134_v35 }
 0x1c1   :  { %1062 = vmatpush.msra.mxu0 %v3140_v36  ;;  %1082 = vmatpush.msra.mxu1 %v3146_v38 }
 0x1c2   :  { %1102 = vmatpush.msrb.mxu2 %v3152_v39  ;;  %1122 = vmatpush.msrb.mxu3 %v3158_v41 }
 0x1c3   :  { %1063 = vmatpush.msra.mxu0 %v3164_v42  ;;  %1083 = vmatpush.msra.mxu1 %v3170_v43 }
 0x1c4   :  { %1103 = vmatpush.msrb.mxu2 %v3176_v46  ;;  %1123 = vmatpush.msrb.mxu3 %v3182_v47 }
 0x1c5   :  { %1064 = vmatpush.msra.mxu0 %v3188_v51  ;;  %1084 = vmatpush.msra.mxu1 %v3194_v52 }
 0x1c6   :  { %1104 = vmatpush.msrb.mxu2 %v3200_v53  ;;  %1124 = vmatpush.msrb.mxu3 %v3206_v54 }
 0x1c7   :  { %1065 = vmatpush.msra.mxu0 %v3812_v40  ;;  %1085 = vmatpush.msra.mxu1 %v3213_v55  ;;  %v3233_v40 = vld [vmem:[%s3671_s3 + $0x30] sm:$0xff] }
 0x1c8   :  { %1105 = vmatpush.msrb.mxu2 %v3219_v56  ;;  %1125 = vmatpush.msrb.mxu3 %v3225_v57  ;;  %3841 = vst [vmem:[#allocation15_spill] sm:$0xff] %v3233_v40  ;;  %v3845_v55 = vld [vmem:[#allocation33_spill] sm:$0xff] }
 0x1c9   :  { %1066 = vmatpush.msra.mxu0 %v3816_v44  ;;  %1086 = vmatpush.msra.mxu1 %v3817_v45  ;;  %v3247_v44 = vld [vmem:[%s3671_s3 + $0x10] sm:$0xff]  ;;  %v3253_v45 = vld [vmem:[%s3671_s3 + $0x18] sm:$0xff]  ;;  %v309_v54 = vrot.slane %v3845_v55, 4 }
 0x1ca   :  { %1106 = vmatpush.msrb.mxu2 %v3233_v40  ;;  %1126 = vmatpush.msrb.mxu3 %v3239_v60  ;;  %3843 = vst [vmem:[#allocation30_spill] sm:$0xff] %v3247_v44 }
 0x1cb   :  { %1067 = vmatpush.msra.mxu0 %v3820_v48  ;;  %1087 = vmatpush.msra.mxu1 %v3821_v50  ;;  %3844 = vst [vmem:[#allocation29_spill] sm:$0xff] %v3253_v45 }
 0x1cc   :  { %1107 = vmatpush.msrb.mxu2 %v3247_v44  ;;  %1127 = vmatpush.msrb.mxu3 %v3253_v45 }
 0x228   :  { %v737_v61 = vpop.f32.mrf.mxu1  ;;  %v717_v57 = vpop.f32.mrf.mxu0 }
 0x229   :  { %v784_v1 = vrot.slane %v737_v61, 6 }
 0x22b   :  { %v787_v56 = vsel %vm123_vm1, %v717_v57, %v784_v1 }
 0x22f   :  { %v757_v60 = vpop.f32.mrf.mxu2  ;;  %v777_v48 = vpop.f32.mrf.mxu3 }
 0x230   :  { %v785_v40 = vrot.slane %v757_v60, 4  ;;  %v786_v50 = vrot.slane %v777_v48, 2 }
 0x232   :  { %v788_v44 = vsel %vm125_vm2, %v785_v40, %v786_v50 }
 0x233   :  { %v789_v53 = vsel %vm127_vm3, %v787_v56, %v788_v44 }
 0x234   :  { %v791_v52 = vadd.f32 %v789_v53, %v309_v54 }
 0x236   :  { %v1889_v51 = vmul.f32 -1.442695, %v791_v52  ;;  %v812_v47 = vrot.slane %v791_v52, 2  ;;  %v836_v46 = vrot.slane %v791_v52, 6  ;;  %v833_v44 = vrot.slane %v791_v52, 4 }
 0x238   :  { %1947 = vpow2.f32 %v1889_v51  ;;  %v1890_v45 = vmul.f32 -1.442695, %v812_v47  ;;  %v1891_v61 = vmul.f32 -1.442695, %v836_v46 }
 0x23a   :  { %1949 = vpow2.f32 %v1890_v45 }
 0x23b   :  { %1951 = vpow2.f32 %v1891_v61 }
 0x23e   :  { %v1948_v60 = vpop.eup %1947 }
 0x23f   :  { %v795_v48 = vadd.f32 1.0, %v1948_v60 }
 0x240   :  { %v1950_v43 = vpop.eup %1949 }
 0x241   :  { %v1952_v42 = vpop.eup %1951  ;;  %1953 = vrcp.f32 %v795_v48  ;;  %v817_v57 = vadd.f32 1.0, %v1950_v43  ;;  %v807_v46 = vand.u32 2147483648, %v795_v48  ;;  %v805_v50 = vand.u32 2147483647, %v795_v48 }
 0x242   :  { %v841_v55 = vadd.f32 1.0, %v1952_v42  ;;  %vm801_vm8 = vweird.f32 %v795_v48 }
 0x243   :  { %1955 = vrcp.f32 %v817_v57  ;;  %v829_v41 = vand.u32 2147483648, %v817_v57  ;;  %v827_v43 = vand.u32 2147483647, %v817_v57  ;;  %v808_v38 = vor.u32 1.1754944e-38, %v807_v46 }
 0x244   :  { %1957 = vrcp.f32 %v841_v55  ;;  %vm806_vm11 = vcmp.eq.f32.partialorder %v805_v50, 8.507059e+37  ;;  %vm823_vm12 = vweird.f32 %v817_v57  ;;  %vm847_vm4 = vweird.f32 %v841_v55 }
 0x245   :  { %1959 = vtanh.f32 %v833_v44  ;;  %v830_v36 = vor.u32 1.1754944e-38, %v829_v41  ;;  %vm828_vm14 = vcmp.eq.f32.partialorder %v827_v43, 8.507059e+37  ;;  %v3848_v43 = vld [vmem:[#allocation7_spill] sm:$0xff] }
 0x247   :  { %v1954_v40 = vpop.eup %1953 }
 0x248   :  { %v797_v56 = vmul.f32 %v1954_v40, %v795_v48  ;;  %vm802_vm7 = vweird.f32 %v1954_v40  ;;  %v1892_v48 = vld [vmem:[%s3673_s1 + $0x4] sm:$0x3] }
 0x249   :  { %v1956_v53 = vpop.eup %1955  ;;  %vm803_vm9 = vmor %vm801_vm8, %vm802_vm7  ;;  %vm864_vm15 = vcmp.gt.f32.partialorder %v1892_v48, 0.0 }
 0x24a   :  { %v798_v54 = vsub.f32 1.0, %v797_v56  ;;  %v1958_v1 = vpop.eup %1957  ;;  %v819_v51 = vmul.f32 %v1956_v53, %v817_v57  ;;  %vm824_vm10 = vweird.f32 %v1956_v53  ;;  %v853_v57 = vand.u32 2147483648, %v841_v55 }
 0x24b   :  { %v843_v45 = vmul.f32 %v1958_v1, %v841_v55  ;;  %vm825_vm13 = vmor %vm823_vm12, %vm824_vm10  ;;  %v1960_v44 = vpop.eup %1959  ;;  %vm848_vm0 = vweird.f32 %v1958_v1 }
 0x24c   :  { %v799_v47 = vmul.f32 %v1954_v40, %v798_v54  ;;  %v820_v61 = vsub.f32 1.0, %v819_v51  ;;  %v697_v51 = vld [vmem:[#allocation3] sm:$0x3]  ;;  %vm849_vm5 = vmor %vm847_vm4, %vm848_vm0 }
 0x24d   :  { %v844_v56 = vsub.f32 1.0, %v843_v45 }
 0x24e   :  { %v800_v60 = vadd.f32 %v1954_v40, %v799_v47  ;;  %v821_v42 = vmul.f32 %v1956_v53, %v820_v61 }
 0x24f   :  { %v845_v61 = vmul.f32 %v1958_v1, %v844_v56  ;;  %v3849_v56 = vld [vmem:[#allocation17_spill] sm:$0xff] }
 0x250   :  { %v804_v39 = vsel %vm803_vm9, %v1954_v40, %v800_v60  ;;  %v822_v52 = vadd.f32 %v1956_v53, %v821_v42 }
 0x251   :  { %v809_v54 = vsel %vm806_vm11, %v808_v38, %v804_v39  ;;  %v846_v45 = vadd.f32 %v1958_v1, %v845_v61  ;;  %v851_v39 = vand.u32 2147483647, %v841_v55  ;;  %v3856_v61 = vld [vmem:[#allocation11_spill] sm:$0xff] }
 0x252   :  { %v826_v35 = vsel %vm825_vm13, %v1956_v53, %v822_v52  ;;  %v858_v40 = vmul.f32 %v1960_v44, %v809_v54  ;;  %v854_v53 = vor.u32 1.1754944e-38, %v853_v57  ;;  %v3850_v52 = vld [vmem:[#allocation14_spill] sm:$0xff]  ;;  %v3851_v54 = vld [vmem:[#allocation8_spill] sm:$0xff]  ;;  %v3853_v44 = vld [vmem:[#allocation21_spill] sm:$0xff] }
 0x253   :  { %v831_v47 = vsel %vm828_vm14, %v830_v36, %v826_v35  ;;  %v850_v41 = vsel %vm849_vm5, %v1958_v1, %v846_v45  ;;  %vm852_vm6 = vcmp.eq.f32.partialorder %v851_v39, 8.507059e+37  ;;  %v3847_v1 = vld [vmem:[#allocation6_spill] sm:$0xff]  ;;  %v3859_v45 = vld [vmem:[#allocation12_spill] sm:$0xff] }
 0x254   :  { %v857_v34 = vmul.f32 %v831_v47, %v697_v51  ;;  %v855_v35 = vsel %vm852_vm6, %v854_v53, %v850_v41  ;;  %v3855_v47 = vld [vmem:[#allocation10_spill] sm:$0xff]  ;;  %v3862_v39 = vld [vmem:[#allocation28_spill] sm:$0xff]  ;;  %v3863_v41 = vld [vmem:[#allocation27_spill] sm:$0xff] }
 0x255   :  { %v3327_v57 = vld [vmem:[%s3671_s3 + $0x40] sm:$0xff] }
 0x256   :  { %v859_v46 = vadd.f32 %v858_v40, %v857_v34  ;;  %v3857_v40 = vld [vmem:[#allocation26_spill] sm:$0xff]  ;;  %3860 = vst [vmem:[#allocation19_spill] sm:$0xff] %v3327_v57 }
 0x257   :  { %v3336_v53 = vld [vmem:[%s3671_s3 + $0x20] sm:$0xff] }
 0x258   :  { %1961 = vtanh.f32 %v859_v46  ;;  %v867_v38 = vsel %vm864_vm15, %v859_v46, %v697_v51  ;;  %v3854_v51 = vld [vmem:[#allocation18_spill] sm:$0xff]  ;;  %3864 = vst [vmem:[#allocation20_spill] sm:$0xff] %v3336_v53 }
 0x259   :  { %868 = vst [vmem:[#allocation3] sm:$0x3] %v867_v38  ;;  %v3858_v46 = vld [vmem:[#allocation22_spill] sm:$0xff]  ;;  %v3861_v38 = vld [vmem:[#allocation13_spill] sm:$0xff] }
 0x25e   :  { %v1962_v50 = vpop.eup %1961 }
 0x25f   :  { %v861_v36 = vmul.f32 %v1962_v50, %v855_v35  ;;  %v3342_v50 = vld [vmem:[%s3671_s3 + $0x28] sm:$0xff] }
 0x260   :  { %3865 = vst [vmem:[#allocation32_spill] sm:$0xff] %v3342_v50  ;;  %v3866_v35 = vld [vmem:[#allocation15_spill] sm:$0xff] }
 0x261   :  { %v865_v60 = vsel %vm864_vm15, %v861_v36, %v2891_v0  ;;  %v869_v34 = vmul.f32 %v1892_v48, %v861_v36  ;;  %v3846_v0 = vld [vmem:[#allocation25_spill] sm:$0xff]  ;;  %v3867_v36 = vld [vmem:[#allocation16_spill] sm:$0xff] }
 0x262   :  { %866 = vst [vmem:[#allocation2] sm:$0x3] %v865_v60  ;;  %v3852_v48 = vld [vmem:[#allocation9_spill] sm:$0xff]  ;;  %v3350_v60 = vld [vmem:[%s3671_s3] sm:$0xff] }
 0x263   :  { %871 = vst [vmem:[#allocation5 + $0x4] sm:$0x3] %v869_v34  ;;  %v3356_v34 = vld [vmem:[%s3671_s3 + $0x8] sm:$0xff] }
 0x264   :  { %3868 = vst [vmem:[#allocation31_spill] sm:$0xff] %v3350_v60 }
 0x265   :  { %3869 = vst [vmem:[#allocation23_spill] sm:$0xff] %v3356_v34 }
 0x269   :  { %v3266_v42 = vld [vmem:[#allocation2] sm:$0x3] }
 0x26a   :  { %892 = vmatmul.f32.vlgmr.msrb.gmra.mxu0 %v3266_v42  ;;  %912 = vmatmul.f32.vlgmr.msrb.gmra.mxu1 %v3266_v42  ;;  %v1754_v55 = vld [vmem:[#allocation5 + $0x4] sm:$0x3] }
 0x26b   :  { %932 = vmatmul.f32.vlgmr.msra.gmra.mxu2 %v3266_v42  ;;  %952 = vmatmul.f32.vlgmr.msra.gmra.mxu3 %v3266_v42  ;;  %1791 = vst [vmem:[#allocation1 + $0x2] ss:$4 sm:$0xff] %v1754_v55  ;;  %v3870_v55 = vld [vmem:[#allocation30_spill] sm:$0xff] }
 0x26c   :  { %1228 = vmatpush.msrb.mxu0 %v2900_v9  ;;  %1248 = vmatpush.msrb.mxu1 %v2906_v11 }
 0x26d   :  { %1268 = vmatpush.msra.mxu2 %v2912_v10  ;;  %1288 = vmatpush.msra.mxu3 %v2918_v16 }
 0x26e   :  { %1229 = vmatpush.msrb.mxu0 %v2924_v12  ;;  %1249 = vmatpush.msrb.mxu1 %v2930_v49 }
 0x26f   :  { %1269 = vmatpush.msra.mxu2 %v2936_v63  ;;  %1289 = vmatpush.msra.mxu3 %v2942_v27 }
 0x270   :  { %1230 = vmatpush.msrb.mxu0 %v2948_v2  ;;  %1250 = vmatpush.msrb.mxu1 %v2954_v26 }
 0x271   :  { %1270 = vmatpush.msra.mxu2 %v2960_v30  ;;  %1290 = vmatpush.msra.mxu3 %v2966_v22 }
 0x272   :  { %1231 = vmatpush.msrb.mxu0 %v2972_v28  ;;  %1251 = vmatpush.msrb.mxu1 %v2978_v5 }
 0x273   :  { %1271 = vmatpush.msra.mxu2 %v2984_v58  ;;  %1291 = vmatpush.msra.mxu3 %v2990_v62 }
 0x274   :  { %1232 = vmatpush.msrb.mxu0 %v2996_v8  ;;  %1252 = vmatpush.msrb.mxu1 %v3002_v15 }
 0x275   :  { %1272 = vmatpush.msra.mxu2 %v3008_v25  ;;  %1292 = vmatpush.msra.mxu3 %v3014_v59 }
 0x276   :  { %1233 = vmatpush.msrb.mxu0 %v3020_v29  ;;  %1253 = vmatpush.msrb.mxu1 %v3026_v19 }
 0x277   :  { %1273 = vmatpush.msra.mxu2 %v3032_v4  ;;  %1293 = vmatpush.msra.mxu3 %v3038_v14 }
 0x278   :  { %1234 = vmatpush.msrb.mxu0 %v3044_v13  ;;  %1254 = vmatpush.msrb.mxu1 %v3050_v37 }
 0x279   :  { %1274 = vmatpush.msra.mxu2 %v3056_v6  ;;  %1294 = vmatpush.msra.mxu3 %v3062_v7 }
 0x27a   :  { %1235 = vmatpush.msrb.mxu0 %v3068_v3  ;;  %1255 = vmatpush.msrb.mxu1 %v3074_v17 }
 0x27b   :  { %1275 = vmatpush.msra.mxu2 %v3080_v18  ;;  %1295 = vmatpush.msra.mxu3 %v3086_v20 }
 0x27c   :  { %1236 = vmatpush.msrb.mxu0 %v3092_v21  ;;  %1256 = vmatpush.msrb.mxu1 %v3098_v23 }
 0x27d   :  { %1276 = vmatpush.msra.mxu2 %v3104_v24  ;;  %1296 = vmatpush.msra.mxu3 %v3110_v31 }
 0x27e   :  { %1237 = vmatpush.msrb.mxu0 %v3116_v32  ;;  %1257 = vmatpush.msrb.mxu1 %v3122_v33 }
 0x27f   :  { %1277 = vmatpush.msra.mxu2 %v3846_v0  ;;  %1297 = vmatpush.msra.mxu3 %v3847_v1 }
 0x280   :  { %1238 = vmatpush.msrb.mxu0 %v3848_v43  ;;  %1258 = vmatpush.msrb.mxu1 %v3849_v56 }
 0x281   :  { %1278 = vmatpush.msra.mxu2 %v3850_v52  ;;  %1298 = vmatpush.msra.mxu3 %v3851_v54 }
 0x282   :  { %1239 = vmatpush.msrb.mxu0 %v3852_v48  ;;  %1259 = vmatpush.msrb.mxu1 %v3853_v44 }
 0x283   :  { %1279 = vmatpush.msra.mxu2 %v3854_v51  ;;  %1299 = vmatpush.msra.mxu3 %v3855_v47 }
 0x284   :  { %1240 = vmatpush.msrb.mxu0 %v3856_v61  ;;  %1260 = vmatpush.msrb.mxu1 %v3857_v40 }
 0x285   :  { %1280 = vmatpush.msra.mxu2 %v3858_v46  ;;  %1300 = vmatpush.msra.mxu3 %v3859_v45  ;;  %v3872_v45 = vld [vmem:[#allocation34_spill] sm:$0xff] }
 0x286   :  { %1241 = vmatpush.msrb.mxu0 %v3327_v57  ;;  %1261 = vmatpush.msrb.mxu1 %v3861_v38  ;;  %v313_v46 = vrot.slane %v3872_v45, 6 }
 0x287   :  { %1281 = vmatpush.msra.mxu2 %v3862_v39  ;;  %1301 = vmatpush.msra.mxu3 %v3863_v41 }
 0x288   :  { %1242 = vmatpush.msrb.mxu0 %v3336_v53  ;;  %1262 = vmatpush.msrb.mxu1 %v3342_v50  ;;  %v3871_v50 = vld [vmem:[#allocation29_spill] sm:$0xff] }
 0x289   :  { %1282 = vmatpush.msra.mxu2 %v3866_v35  ;;  %1302 = vmatpush.msra.mxu3 %v3867_v36 }
 0x28a   :  { %1243 = vmatpush.msrb.mxu0 %v3350_v60  ;;  %1263 = vmatpush.msrb.mxu1 %v3356_v34 }
 0x28b   :  { %1283 = vmatpush.msra.mxu2 %v3870_v55  ;;  %1303 = vmatpush.msra.mxu3 %v3871_v50 }
 0x2e7   :  { %v913_v35 = vpop.f32.mrf.mxu1  ;;  %v893_v57 = vpop.f32.mrf.mxu0 }
 0x2e8   :  { %v960_v36 = vrot.slane %v913_v35, 6 }
 0x2ea   :  { %v963_v60 = vsel %vm123_vm1, %v893_v57, %v960_v36 }
 0x2ee   :  { %v933_v53 = vpop.f32.mrf.mxu2  ;;  %v953_v41 = vpop.f32.mrf.mxu3 }
 0x2ef   :  { %v961_v39 = vrot.slane %v933_v53, 4  ;;  %v962_v38 = vrot.slane %v953_v41, 2 }
 0x2f1   :  { %v964_v40 = vsel %vm125_vm2, %v961_v39, %v962_v38 }
 0x2f2   :  { %v965_v61 = vsel %vm127_vm3, %v963_v60, %v964_v40 }
 0x2f3   :  { %v967_v34 = vadd.f32 %v965_v61, %v313_v46 }
 0x2f5   :  { %v1893_v47 = vmul.f32 -1.442695, %v967_v34  ;;  %v988_v55 = vrot.slane %v967_v34, 2  ;;  %v1012_v51 = vrot.slane %v967_v34, 6  ;;  %v1009_v39 = vrot.slane %v967_v34, 4 }
 0x2f7   :  { %1963 = vpow2.f32 %v1893_v47  ;;  %v1894_v50 = vmul.f32 -1.442695, %v988_v55  ;;  %v1895_v35 = vmul.f32 -1.442695, %v1012_v51 }
 0x2f9   :  { %1965 = vpow2.f32 %v1894_v50 }
 0x2fa   :  { %1967 = vpow2.f32 %v1895_v35 }
 0x2fd   :  { %v1964_v53 = vpop.eup %1963 }
 0x2fe   :  { %v971_v41 = vadd.f32 1.0, %v1964_v53 }
 0x2ff   :  { %v1966_v44 = vpop.eup %1965 }
 0x300   :  { %v1968_v48 = vpop.eup %1967  ;;  %1969 = vrcp.f32 %v971_v41  ;;  %v993_v57 = vadd.f32 1.0, %v1966_v44  ;;  %v983_v51 = vand.u32 2147483648, %v971_v41  ;;  %v981_v55 = vand.u32 2147483647, %v971_v41 }
 0x301   :  { %v1017_v45 = vadd.f32 1.0, %v1968_v48  ;;  %vm977_vm8 = vweird.f32 %v971_v41 }
 0x302   :  { %1971 = vrcp.f32 %v993_v57  ;;  %v1005_v54 = vand.u32 2147483648, %v993_v57  ;;  %v1003_v44 = vand.u32 2147483647, %v993_v57  ;;  %v984_v56 = vor.u32 1.1754944e-38, %v983_v51 }
 0x303   :  { %1973 = vrcp.f32 %v1017_v45  ;;  %vm982_vm11 = vcmp.eq.f32.partialorder %v981_v55, 8.507059e+37  ;;  %vm999_vm12 = vweird.f32 %v993_v57  ;;  %vm1023_vm4 = vweird.f32 %v1017_v45 }
 0x304   :  { %1975 = vtanh.f32 %v1009_v39  ;;  %v1006_v43 = vor.u32 1.1754944e-38, %v1005_v54  ;;  %vm1004_vm14 = vcmp.eq.f32.partialorder %v1003_v44, 8.507059e+37  ;;  %v3875_v44 = vld [vmem:[#allocation7_spill] sm:$0xff] }
 0x306   :  { %v1970_v38 = vpop.eup %1969 }
 0x307   :  { %v973_v40 = vmul.f32 %v1970_v38, %v971_v41  ;;  %vm978_vm7 = vweird.f32 %v1970_v38  ;;  %v1896_v41 = vld [vmem:[%s3673_s1 + $0x6] sm:$0x3] }
 0x308   :  { %v1972_v61 = vpop.eup %1971  ;;  %vm979_vm9 = vmor %vm977_vm8, %vm978_vm7  ;;  %vm1040_vm15 = vcmp.gt.f32.partialorder %v1896_v41, 0.0 }
 0x309   :  { %v974_v46 = vsub.f32 1.0, %v973_v40  ;;  %v1974_v36 = vpop.eup %1973  ;;  %v995_v47 = vmul.f32 %v1972_v61, %v993_v57  ;;  %vm1000_vm10 = vweird.f32 %v1972_v61  ;;  %v1029_v57 = vand.u32 2147483648, %v1017_v45 }
 0x30a   :  { %v1019_v50 = vmul.f32 %v1974_v36, %v1017_v45  ;;  %vm1001_vm13 = vmor %vm999_vm12, %vm1000_vm10  ;;  %v1976_v39 = vpop.eup %1975  ;;  %vm1024_vm0 = vweird.f32 %v1974_v36 }
 0x30b   :  { %v975_v60 = vmul.f32 %v1970_v38, %v974_v46  ;;  %v996_v35 = vsub.f32 1.0, %v995_v47  ;;  %v873_v47 = vld [vmem:[#allocation3] sm:$0x3]  ;;  %vm1025_vm5 = vmor %vm1023_vm4, %vm1024_vm0 }
 0x30c   :  { %v1020_v40 = vsub.f32 1.0, %v1019_v50 }
 0x30d   :  { %v976_v53 = vadd.f32 %v1970_v38, %v975_v60  ;;  %v997_v48 = vmul.f32 %v1972_v61, %v996_v35 }
 0x30e   :  { %v1021_v35 = vmul.f32 %v1974_v36, %v1020_v40  ;;  %v3876_v40 = vld [vmem:[#allocation17_spill] sm:$0xff] }
 0x30f   :  { %v980_v52 = vsel %vm979_vm9, %v1970_v38, %v976_v53  ;;  %v998_v34 = vadd.f32 %v1972_v61, %v997_v48 }
 0x310   :  { %v985_v46 = vsel %vm982_vm11, %v984_v56, %v980_v52  ;;  %v1022_v50 = vadd.f32 %v1974_v36, %v1021_v35  ;;  %v1027_v52 = vand.u32 2147483647, %v1017_v45  ;;  %v3883_v35 = vld [vmem:[#allocation11_spill] sm:$0xff] }
 0x311   :  { %v1002_v1 = vsel %vm1001_vm13, %v1972_v61, %v998_v34  ;;  %v1034_v38 = vmul.f32 %v1976_v39, %v985_v46  ;;  %v1030_v61 = vor.u32 1.1754944e-38, %v1029_v57  ;;  %v3877_v34 = vld [vmem:[#allocation14_spill] sm:$0xff]  ;;  %v3878_v46 = vld [vmem:[#allocation8_spill] sm:$0xff]  ;;  %v3880_v39 = vld [vmem:[#allocation21_spill] sm:$0xff] }
 0x312   :  { %v1007_v60 = vsel %vm1004_vm14, %v1006_v43, %v1002_v1  ;;  %v1026_v54 = vsel %vm1025_vm5, %v1974_v36, %v1022_v50  ;;  %vm1028_vm6 = vcmp.eq.f32.partialorder %v1027_v52, 8.507059e+37  ;;  %v3874_v36 = vld [vmem:[#allocation6_spill] sm:$0xff]  ;;  %v3886_v50 = vld [vmem:[#allocation12_spill] sm:$0xff]  ;;  %v3887_v57 = vld [vmem:[#allocation19_spill] sm:$0xff] }
 0x313   :  { %v1033_v0 = vmul.f32 %v1007_v60, %v873_v47  ;;  %v1031_v1 = vsel %vm1028_vm6, %v1030_v61, %v1026_v54  ;;  %v3882_v60 = vld [vmem:[#allocation10_spill] sm:$0xff]  ;;  %v3889_v52 = vld [vmem:[#allocation28_spill] sm:$0xff]  ;;  %v3890_v54 = vld [vmem:[#allocation27_spill] sm:$0xff] }
 0x314   :  { %v3891_v61 = vld [vmem:[#allocation20_spill] sm:$0xff] }
 0x315   :  { %v1035_v51 = vadd.f32 %v1034_v38, %v1033_v0  ;;  %v3884_v38 = vld [vmem:[#allocation26_spill] sm:$0xff] }
 0x317   :  { %1977 = vtanh.f32 %v1035_v51  ;;  %v1043_v56 = vsel %vm1040_vm15, %v1035_v51, %v873_v47  ;;  %v3881_v47 = vld [vmem:[#allocation18_spill] sm:$0xff] }
 0x318   :  { %1044 = vst [vmem:[#allocation3] sm:$0x3] %v1043_v56  ;;  %v3885_v51 = vld [vmem:[#allocation22_spill] sm:$0xff]  ;;  %v3888_v56 = vld [vmem:[#allocation13_spill] sm:$0xff] }
 0x31d   :  { %v1978_v55 = vpop.eup %1977 }
 0x31e   :  { %v1037_v43 = vmul.f32 %v1978_v55, %v1031_v1  ;;  %v3892_v55 = vld [vmem:[#allocation32_spill] sm:$0xff]  ;;  %v3893_v1 = vld [vmem:[#allocation15_spill] sm:$0xff] }
 0x320   :  { %v1041_v53 = vsel %vm1040_vm15, %v1037_v43, %v3266_v42  ;;  %v1045_v0 = vmul.f32 %v1896_v41, %v1037_v43  ;;  %v3873_v42 = vld [vmem:[#allocation25_spill] sm:$0xff]  ;;  %v3894_v43 = vld [vmem:[#allocation16_spill] sm:$0xff] }
 0x321   :  { %1042 = vst [vmem:[#allocation2] sm:$0x3] %v1041_v53  ;;  %v3879_v41 = vld [vmem:[#allocation9_spill] sm:$0xff]  ;;  %v3895_v53 = vld [vmem:[#allocation31_spill] sm:$0xff] }
 0x322   :  { %1047 = vst [vmem:[#allocation5 + $0x6] sm:$0x3] %v1045_v0  ;;  %v3896_v0 = vld [vmem:[#allocation23_spill] sm:$0xff] }
 0x328   :  { %v3371_v48 = vld [vmem:[#allocation2] sm:$0x3] }
 0x329   :  { %1068 = vmatmul.f32.vlgmr.msra.gmra.mxu0 %v3371_v48  ;;  %1088 = vmatmul.f32.vlgmr.msra.gmra.mxu1 %v3371_v48  ;;  %v1755_v45 = vld [vmem:[#allocation5 + $0x6] sm:$0x3] }
 0x32a   :  { %1108 = vmatmul.f32.vlgmr.msrb.gmra.mxu2 %v3371_v48  ;;  %1128 = vmatmul.f32.vlgmr.msrb.gmra.mxu3 %v3371_v48  ;;  %1793 = vst [vmem:[#allocation1 + $0x3] ss:$4 sm:$0xff] %v1755_v45  ;;  %v3897_v45 = vld [vmem:[#allocation30_spill] sm:$0xff] }
 0x32b   :  { %1404 = vmatpush.msra.mxu0 %v2900_v9  ;;  %1424 = vmatpush.msra.mxu1 %v2906_v11 }
 0x32c   :  { %1444 = vmatpush.msrb.mxu2 %v2912_v10  ;;  %1464 = vmatpush.msrb.mxu3 %v2918_v16 }
 0x32d   :  { %1405 = vmatpush.msra.mxu0 %v2924_v12  ;;  %1425 = vmatpush.msra.mxu1 %v2930_v49 }
 0x32e   :  { %1445 = vmatpush.msrb.mxu2 %v2936_v63  ;;  %1465 = vmatpush.msrb.mxu3 %v2942_v27 }
 0x32f   :  { %1406 = vmatpush.msra.mxu0 %v2948_v2  ;;  %1426 = vmatpush.msra.mxu1 %v2954_v26 }
 0x330   :  { %1446 = vmatpush.msrb.mxu2 %v2960_v30  ;;  %1466 = vmatpush.msrb.mxu3 %v2966_v22 }
 0x331   :  { %1407 = vmatpush.msra.mxu0 %v2972_v28  ;;  %1427 = vmatpush.msra.mxu1 %v2978_v5 }
 0x332   :  { %1447 = vmatpush.msrb.mxu2 %v2984_v58  ;;  %1467 = vmatpush.msrb.mxu3 %v2990_v62 }
 0x333   :  { %1408 = vmatpush.msra.mxu0 %v2996_v8  ;;  %1428 = vmatpush.msra.mxu1 %v3002_v15 }
 0x334   :  { %1448 = vmatpush.msrb.mxu2 %v3008_v25  ;;  %1468 = vmatpush.msrb.mxu3 %v3014_v59 }
 0x335   :  { %1409 = vmatpush.msra.mxu0 %v3020_v29  ;;  %1429 = vmatpush.msra.mxu1 %v3026_v19 }
 0x336   :  { %1449 = vmatpush.msrb.mxu2 %v3032_v4  ;;  %1469 = vmatpush.msrb.mxu3 %v3038_v14 }
 0x337   :  { %1410 = vmatpush.msra.mxu0 %v3044_v13  ;;  %1430 = vmatpush.msra.mxu1 %v3050_v37 }
 0x338   :  { %1450 = vmatpush.msrb.mxu2 %v3056_v6  ;;  %1470 = vmatpush.msrb.mxu3 %v3062_v7 }
 0x339   :  { %1411 = vmatpush.msra.mxu0 %v3068_v3  ;;  %1431 = vmatpush.msra.mxu1 %v3074_v17 }
 0x33a   :  { %1451 = vmatpush.msrb.mxu2 %v3080_v18  ;;  %1471 = vmatpush.msrb.mxu3 %v3086_v20 }
 0x33b   :  { %1412 = vmatpush.msra.mxu0 %v3092_v21  ;;  %1432 = vmatpush.msra.mxu1 %v3098_v23 }
 0x33c   :  { %1452 = vmatpush.msrb.mxu2 %v3104_v24  ;;  %1472 = vmatpush.msrb.mxu3 %v3110_v31 }
 0x33d   :  { %1413 = vmatpush.msra.mxu0 %v3116_v32  ;;  %1433 = vmatpush.msra.mxu1 %v3122_v33 }
 0x33e   :  { %1453 = vmatpush.msrb.mxu2 %v3873_v42  ;;  %1473 = vmatpush.msrb.mxu3 %v3874_v36 }
 0x33f   :  { %1414 = vmatpush.msra.mxu0 %v3875_v44  ;;  %1434 = vmatpush.msra.mxu1 %v3876_v40 }
 0x340   :  { %1454 = vmatpush.msrb.mxu2 %v3877_v34  ;;  %1474 = vmatpush.msrb.mxu3 %v3878_v46 }
 0x341   :  { %1415 = vmatpush.msra.mxu0 %v3879_v41  ;;  %1435 = vmatpush.msra.mxu1 %v3880_v39 }
 0x342   :  { %1455 = vmatpush.msrb.mxu2 %v3881_v47  ;;  %1475 = vmatpush.msrb.mxu3 %v3882_v60 }
 0x343   :  { %1416 = vmatpush.msra.mxu0 %v3883_v35  ;;  %1436 = vmatpush.msra.mxu1 %v3884_v38 }
 0x344   :  { %1456 = vmatpush.msrb.mxu2 %v3885_v51  ;;  %1476 = vmatpush.msrb.mxu3 %v3886_v50 }
 0x345   :  { %1417 = vmatpush.msra.mxu0 %v3887_v57  ;;  %1437 = vmatpush.msra.mxu1 %v3888_v56  ;;  %v3898_v57 = vld [vmem:[#allocation29_spill] sm:$0xff] }
 0x346   :  { %1457 = vmatpush.msrb.mxu2 %v3889_v52  ;;  %1477 = vmatpush.msrb.mxu3 %v3890_v54 }
 0x347   :  { %1418 = vmatpush.msra.mxu0 %v3891_v61  ;;  %1438 = vmatpush.msra.mxu1 %v3892_v55 }
 0x348   :  { %1458 = vmatpush.msrb.mxu2 %v3893_v1  ;;  %1478 = vmatpush.msrb.mxu3 %v3894_v43 }
 0x349   :  { %1419 = vmatpush.msra.mxu0 %v3895_v53  ;;  %1439 = vmatpush.msra.mxu1 %v3896_v0  ;;  %v3899_v53 = vld [vmem:[#allocation35_spill] sm:$0xff] }
 0x34a   :  { %1459 = vmatpush.msrb.mxu2 %v3897_v45  ;;  %1479 = vmatpush.msrb.mxu3 %v3898_v57 }
 0x3a6   :  { %v1089_v56 = vpop.f32.mrf.mxu1  ;;  %v1069_v38 = vpop.f32.mrf.mxu0 }
 0x3a7   :  { %v1136_v52 = vrot.slane %v1089_v56, 6 }
 0x3a9   :  { %v1139_v55 = vsel %vm123_vm1, %v1069_v38, %v1136_v52 }
 0x3ad   :  { %v1109_v50 = vpop.f32.mrf.mxu2  ;;  %v1129_v54 = vpop.f32.mrf.mxu3 }
 0x3ae   :  { %v1137_v51 = vrot.slane %v1109_v50, 4  ;;  %v1138_v61 = vrot.slane %v1129_v54, 2 }
 0x3b0   :  { %v1140_v1 = vsel %vm125_vm2, %v1137_v51, %v1138_v61 }
 0x3b1   :  { %v1141_v43 = vsel %vm127_vm3, %v1139_v55, %v1140_v1 }
 0x3b2   :  { %v1143_v35 = vadd.f32 %v1141_v43, %v3899_v53 }
 0x3b4   :  { %v1897_v0 = vmul.f32 -1.442695, %v1143_v35  ;;  %v1164_v60 = vrot.slane %v1143_v35, 2  ;;  %v1188_v45 = vrot.slane %v1143_v35, 6  ;;  %v1185_v43 = vrot.slane %v1143_v35, 4 }
 0x3b6   :  { %1979 = vpow2.f32 %v1897_v0  ;;  %v1898_v57 = vmul.f32 -1.442695, %v1164_v60  ;;  %v1899_v47 = vmul.f32 -1.442695, %v1188_v45 }
 0x3b8   :  { %1981 = vpow2.f32 %v1898_v57 }
 0x3b9   :  { %1983 = vpow2.f32 %v1899_v47 }
 0x3bc   :  { %v1980_v56 = vpop.eup %1979 }
 0x3bd   :  { %v1147_v50 = vadd.f32 1.0, %v1980_v56 }
 0x3be   :  { %v1982_v54 = vpop.eup %1981 }
 0x3bf   :  { %v1984_v39 = vpop.eup %1983  ;;  %1985 = vrcp.f32 %v1147_v50  ;;  %v1169_v38 = vadd.f32 1.0, %v1982_v54  ;;  %v1159_v57 = vand.u32 2147483648, %v1147_v50  ;;  %v1157_v45 = vand.u32 2147483647, %v1147_v50 }
 0x3c0   :  { %v1193_v52 = vadd.f32 1.0, %v1984_v39  ;;  %vm1153_vm8 = vweird.f32 %v1147_v50 }
 0x3c1   :  { %1987 = vrcp.f32 %v1169_v38  ;;  %v1181_v46 = vand.u32 2147483648, %v1169_v38  ;;  %v1179_v54 = vand.u32 2147483647, %v1169_v38  ;;  %v1160_v40 = vor.u32 1.1754944e-38, %v1159_v57 }
 0x3c2   :  { %1989 = vrcp.f32 %v1193_v52  ;;  %vm1158_vm11 = vcmp.eq.f32.partialorder %v1157_v45, 8.507059e+37  ;;  %vm1175_vm12 = vweird.f32 %v1169_v38  ;;  %vm1199_vm4 = vweird.f32 %v1193_v52 }
 0x3c3   :  { %1991 = vtanh.f32 %v1185_v43  ;;  %v1182_v44 = vor.u32 1.1754944e-38, %v1181_v46  ;;  %vm1180_vm14 = vcmp.eq.f32.partialorder %v1179_v54, 8.507059e+37 }
 0x3c5   :  { %v1986_v51 = vpop.eup %1985 }
 0x3c6   :  { %v1149_v61 = vmul.f32 %v1986_v51, %v1147_v50  ;;  %vm1154_vm7 = vweird.f32 %v1986_v51  ;;  %v1900_v50 = vld [vmem:[%s3673_s1 + $0x8] sm:$0x3] }
 0x3c7   :  { %v1988_v55 = vpop.eup %1987  ;;  %vm1155_vm9 = vmor %vm1153_vm8, %vm1154_vm7  ;;  %vm1216_vm15 = vcmp.gt.f32.partialorder %v1900_v50, 0.0 }
 0x3c8   :  { %v1150_v1 = vsub.f32 1.0, %v1149_v61  ;;  %v1990_v53 = vpop.eup %1989  ;;  %v1171_v0 = vmul.f32 %v1988_v55, %v1169_v38  ;;  %vm1176_vm10 = vweird.f32 %v1988_v55  ;;  %v1205_v38 = vand.u32 2147483648, %v1193_v52 }
 0x3c9   :  { %v1195_v47 = vmul.f32 %v1990_v53, %v1193_v52  ;;  %vm1177_vm13 = vmor %vm1175_vm12, %vm1176_vm10  ;;  %v1992_v43 = vpop.eup %1991  ;;  %vm1200_vm0 = vweird.f32 %v1990_v53 }
 0x3ca   :  { %v1151_v60 = vmul.f32 %v1986_v51, %v1150_v1  ;;  %v1172_v56 = vsub.f32 1.0, %v1171_v0  ;;  %v1049_v0 = vld [vmem:[#allocation3] sm:$0x3]  ;;  %vm1201_vm5 = vmor %vm1199_vm4, %vm1200_vm0 }
 0x3cb   :  { %v1196_v61 = vsub.f32 1.0, %v1195_v47 }
 0x3cc   :  { %v1152_v41 = vadd.f32 %v1986_v51, %v1151_v60  ;;  %v1173_v39 = vmul.f32 %v1988_v55, %v1172_v56 }
 0x3cd   :  { %v1197_v56 = vmul.f32 %v1990_v53, %v1196_v61 }
 0x3ce   :  { %v1156_v34 = vsel %vm1155_vm9, %v1986_v51, %v1152_v41  ;;  %v1174_v35 = vadd.f32 %v1988_v55, %v1173_v39 }
 0x3cf   :  { %v1161_v1 = vsel %vm1158_vm11, %v1160_v40, %v1156_v34  ;;  %v1198_v57 = vadd.f32 %v1990_v53, %v1197_v56  ;;  %v1203_v34 = vand.u32 2147483647, %v1193_v52 }
 0x3d0   :  { %v1178_v36 = vsel %vm1177_vm13, %v1988_v55, %v1174_v35  ;;  %v1210_v41 = vmul.f32 %v1992_v43, %v1161_v1  ;;  %v1206_v55 = vor.u32 1.1754944e-38, %v1205_v38 }
 0x3d1   :  { %v1183_v60 = vsel %vm1180_vm14, %v1182_v44, %v1178_v36  ;;  %v1202_v46 = vsel %vm1201_vm5, %v1990_v53, %v1198_v57  ;;  %vm1204_vm6 = vcmp.eq.f32.partialorder %v1203_v34, 8.507059e+37 }
 0x3d2   :  { %v1209_v42 = vmul.f32 %v1183_v60, %v1049_v0  ;;  %v1207_v36 = vsel %vm1204_vm6, %v1206_v55, %v1202_v46 }
 0x3d4   :  { %v1211_v51 = vadd.f32 %v1210_v41, %v1209_v42 }
 0x3d6   :  { %1993 = vtanh.f32 %v1211_v51  ;;  %v1219_v40 = vsel %vm1216_vm15, %v1211_v51, %v1049_v0 }
 0x3d7   :  { %1220 = vst [vmem:[#allocation3] sm:$0x3] %v1219_v40 }
 0x3dc   :  { %v1994_v47 = vpop.eup %1993 }
 0x3dd   :  { %v1213_v44 = vmul.f32 %v1994_v47, %v1207_v36 }
 0x3df   :  { %v1217_v45 = vsel %vm1216_vm15, %v1213_v44, %v3371_v48  ;;  %v1221_v42 = vmul.f32 %v1900_v50, %v1213_v44 }
 0x3e0   :  { %1218 = vst [vmem:[#allocation2] sm:$0x3] %v1217_v45 }
 0x3e1   :  { %1223 = vst [vmem:[#allocation5 + $0x8] sm:$0x3] %v1221_v42 }
 0x3e7   :  { %v3451_v39 = vld [vmem:[#allocation2] sm:$0x3] }
 0x3e8   :  { %1244 = vmatmul.f32.vlgmr.msrb.gmra.mxu0 %v3451_v39  ;;  %1264 = vmatmul.f32.vlgmr.msrb.gmra.mxu1 %v3451_v39  ;;  %v1756_v52 = vld [vmem:[#allocation5 + $0x8] sm:$0x3] }
 0x3e9   :  { %1284 = vmatmul.f32.vlgmr.msra.gmra.mxu2 %v3451_v39  ;;  %1304 = vmatmul.f32.vlgmr.msra.gmra.mxu3 %v3451_v39  ;;  %1795 = vst [vmem:[#allocation1 + $0x20] ss:$4 sm:$0xff] %v1756_v52 }
 0x3ea   :  { %1580 = vmatpush.msrb.mxu0 %v2900_v9  ;;  %1600 = vmatpush.msrb.mxu1 %v2906_v11  ;;  %v3900_v9 = vld [vmem:[#allocation25_spill] sm:$0xff]  ;;  %v3901_v11 = vld [vmem:[#allocation6_spill] sm:$0xff] }
 0x3eb   :  { %1620 = vmatpush.msra.mxu2 %v2912_v10  ;;  %1640 = vmatpush.msra.mxu3 %v2918_v16  ;;  %v3902_v10 = vld [vmem:[#allocation7_spill] sm:$0xff]  ;;  %v3903_v16 = vld [vmem:[#allocation17_spill] sm:$0xff] }
 0x3ec   :  { %1581 = vmatpush.msrb.mxu0 %v2924_v12  ;;  %1601 = vmatpush.msrb.mxu1 %v2930_v49  ;;  %v3904_v12 = vld [vmem:[#allocation14_spill] sm:$0xff]  ;;  %v3905_v49 = vld [vmem:[#allocation8_spill] sm:$0xff] }
 0x3ed   :  { %1621 = vmatpush.msra.mxu2 %v2936_v63  ;;  %1641 = vmatpush.msra.mxu3 %v2942_v27  ;;  %v3906_v63 = vld [vmem:[#allocation9_spill] sm:$0xff] }
 0x3ee   :  { %1582 = vmatpush.msrb.mxu0 %v2948_v2  ;;  %1602 = vmatpush.msrb.mxu1 %v2954_v26  ;;  %v3907_v27 = vld [vmem:[#allocation21_spill] sm:$0xff]  ;;  %v3908_v2 = vld [vmem:[#allocation18_spill] sm:$0xff] }
 0x3ef   :  { %1622 = vmatpush.msra.mxu2 %v2960_v30  ;;  %1642 = vmatpush.msra.mxu3 %v2966_v22  ;;  %v3909_v26 = vld [vmem:[#allocation10_spill] sm:$0xff]  ;;  %v3910_v30 = vld [vmem:[#allocation11_spill] sm:$0xff] }
 0x3f0   :  { %1583 = vmatpush.msrb.mxu0 %v2972_v28  ;;  %1603 = vmatpush.msrb.mxu1 %v2978_v5  ;;  %v3911_v22 = vld [vmem:[#allocation26_spill] sm:$0xff]  ;;  %v3913_v5 = vld [vmem:[#allocation12_spill] sm:$0xff] }
 0x3f1   :  { %1623 = vmatpush.msra.mxu2 %v2984_v58  ;;  %1643 = vmatpush.msra.mxu3 %v2990_v62  ;;  %v3912_v28 = vld [vmem:[#allocation22_spill] sm:$0xff]  ;;  %v3914_v58 = vld [vmem:[#allocation19_spill] sm:$0xff]  ;;  %v3915_v62 = vld [vmem:[#allocation13_spill] sm:$0xff] }
 0x3f2   :  { %1584 = vmatpush.msrb.mxu0 %v2996_v8  ;;  %1604 = vmatpush.msrb.mxu1 %v3002_v15  ;;  %v3916_v8 = vld [vmem:[#allocation28_spill] sm:$0xff]  ;;  %v3917_v15 = vld [vmem:[#allocation27_spill] sm:$0xff] }
 0x3f3   :  { %1624 = vmatpush.msra.mxu2 %v3008_v25  ;;  %1644 = vmatpush.msra.mxu3 %v3014_v59  ;;  %v3918_v25 = vld [vmem:[#allocation20_spill] sm:$0xff] }
 0x3f4   :  { %1585 = vmatpush.msrb.mxu0 %v3020_v29  ;;  %1605 = vmatpush.msrb.mxu1 %v3026_v19  ;;  %v3919_v59 = vld [vmem:[#allocation32_spill] sm:$0xff]  ;;  %v3920_v29 = vld [vmem:[#allocation15_spill] sm:$0xff] }
 0x3f5   :  { %1625 = vmatpush.msra.mxu2 %v3032_v4  ;;  %1645 = vmatpush.msra.mxu3 %v3038_v14  ;;  %v3921_v19 = vld [vmem:[#allocation16_spill] sm:$0xff]  ;;  %v3922_v4 = vld [vmem:[#allocation31_spill] sm:$0xff] }
 0x3f6   :  { %1586 = vmatpush.msrb.mxu0 %v3044_v13  ;;  %1606 = vmatpush.msrb.mxu1 %v3050_v37  ;;  %v3923_v14 = vld [vmem:[#allocation23_spill] sm:$0xff]  ;;  %v3924_v13 = vld [vmem:[#allocation30_spill] sm:$0xff]  ;;  %v3925_v37 = vld [vmem:[#allocation29_spill] sm:$0xff] }
 0x3f7   :  { %1626 = vmatpush.msra.mxu2 %v3056_v6  ;;  %1646 = vmatpush.msra.mxu3 %v3062_v7 }
 0x3f8   :  { %1587 = vmatpush.msrb.mxu0 %v3068_v3  ;;  %1607 = vmatpush.msrb.mxu1 %v3074_v17 }
 0x3f9   :  { %1627 = vmatpush.msra.mxu2 %v3080_v18  ;;  %1647 = vmatpush.msra.mxu3 %v3086_v20 }
 0x3fa   :  { %1588 = vmatpush.msrb.mxu0 %v3092_v21  ;;  %1608 = vmatpush.msrb.mxu1 %v3098_v23 }
 0x3fb   :  { %1628 = vmatpush.msra.mxu2 %v3104_v24  ;;  %1648 = vmatpush.msra.mxu3 %v3110_v31  ;;  %v3926_v24 = vld [vmem:[#allocation36_spill] sm:$0xff] }
 0x3fc   :  { %1589 = vmatpush.msrb.mxu0 %v3116_v32  ;;  %1609 = vmatpush.msrb.mxu1 %v3122_v33  ;;  %v320_v31 = vrot.slane %v3926_v24, 2 }
 0x3fd   :  { %1629 = vmatpush.msra.mxu2 %v3900_v9  ;;  %1649 = vmatpush.msra.mxu3 %v3901_v11 }
 0x3fe   :  { %1590 = vmatpush.msrb.mxu0 %v3902_v10  ;;  %1610 = vmatpush.msrb.mxu1 %v3903_v16 }
 0x3ff   :  { %1630 = vmatpush.msra.mxu2 %v3904_v12  ;;  %1650 = vmatpush.msra.mxu3 %v3905_v49 }
 0x400   :  { %1591 = vmatpush.msrb.mxu0 %v3906_v63  ;;  %1611 = vmatpush.msrb.mxu1 %v3907_v27 }
 0x401   :  { %1631 = vmatpush.msra.mxu2 %v3908_v2  ;;  %1651 = vmatpush.msra.mxu3 %v3909_v26 }
 0x402   :  { %1592 = vmatpush.msrb.mxu0 %v3910_v30  ;;  %1612 = vmatpush.msrb.mxu1 %v3911_v22  ;;  %v1904_v30 = vld [vmem:[%s3673_s1 + $0xa] sm:$0x3] }
 0x403   :  { %1632 = vmatpush.msra.mxu2 %v3912_v28  ;;  %1652 = vmatpush.msra.mxu3 %v3913_v5  ;;  %v1225_v28 = vld [vmem:[#allocation3] sm:$0x3]  ;;  %vm1392_vm15 = vcmp.gt.f32.partialorder %v1904_v30, 0.0 }
 0x404   :  { %1593 = vmatpush.msrb.mxu0 %v3914_v58  ;;  %1613 = vmatpush.msrb.mxu1 %v3915_v62 }
 0x405   :  { %1633 = vmatpush.msra.mxu2 %v3916_v8  ;;  %1653 = vmatpush.msra.mxu3 %v3917_v15 }
 0x406   :  { %1594 = vmatpush.msrb.mxu0 %v3918_v25  ;;  %1614 = vmatpush.msrb.mxu1 %v3919_v59 }
 0x407   :  { %1634 = vmatpush.msra.mxu2 %v3920_v29  ;;  %1654 = vmatpush.msra.mxu3 %v3921_v19 }
 0x408   :  { %1595 = vmatpush.msrb.mxu0 %v3922_v4  ;;  %1615 = vmatpush.msrb.mxu1 %v3923_v14 }
 0x409   :  { %1635 = vmatpush.msra.mxu2 %v3924_v13  ;;  %1655 = vmatpush.msra.mxu3 %v3925_v37 }
 0x465   :  { %v1265_v6 = vpop.f32.mrf.mxu1  ;;  %v1245_v21 = vpop.f32.mrf.mxu0 }
 0x466   :  { %v1312_v7 = vrot.slane %v1265_v6, 6 }
 0x468   :  { %v1315_v23 = vsel %vm123_vm1, %v1245_v21, %v1312_v7 }
 0x46c   :  { %v1285_v3 = vpop.f32.mrf.mxu2  ;;  %v1305_v17 = vpop.f32.mrf.mxu3 }
 0x46d   :  { %v1313_v18 = vrot.slane %v1285_v3, 4  ;;  %v1314_v20 = vrot.slane %v1305_v17, 2 }
 0x46f   :  { %v1316_v32 = vsel %vm125_vm2, %v1313_v18, %v1314_v20 }
 0x470   :  { %v1317_v33 = vsel %vm127_vm3, %v1315_v23, %v1316_v32 }
 0x471   :  { %v1319_v48 = vadd.f32 %v1317_v33, %v320_v31 }
 0x473   :  { %v1901_v53 = vmul.f32 -1.442695, %v1319_v48  ;;  %v1340_v54 = vrot.slane %v1319_v48, 2  ;;  %v1364_v61 = vrot.slane %v1319_v48, 6  ;;  %v1361_v34 = vrot.slane %v1319_v48, 4  ;;  %v3927_v48 = vld [vmem:[#allocation37_spill] sm:$0xff] }
 0x475   :  { %1995 = vpow2.f32 %v1901_v53  ;;  %v1902_v35 = vmul.f32 -1.442695, %v1340_v54  ;;  %v1903_v1 = vmul.f32 -1.442695, %v1364_v61  ;;  %v324_v53 = vrot.slane %v3927_v48, 4 }
 0x477   :  { %1997 = vpow2.f32 %v1902_v35 }
 0x478   :  { %1999 = vpow2.f32 %v1903_v1  ;;  %v1775_v1 = vld [vmem:[%s3675_s5 + $0x78] sm:$0xff] }
 0x47b   :  { %v1996_v50 = vpop.eup %1995 }
 0x47c   :  { %v1323_v43 = vadd.f32 1.0, %v1996_v50 }
 0x47d   :  { %v1998_v0 = vpop.eup %1997 }
 0x47e   :  { %v2000_v60 = vpop.eup %1999  ;;  %2001 = vrcp.f32 %v1323_v43  ;;  %v1345_v56 = vadd.f32 1.0, %v1998_v0  ;;  %v1335_v36 = vand.u32 2147483648, %v1323_v43  ;;  %v1333_v45 = vand.u32 2147483647, %v1323_v43 }
 0x47f   :  { %v1369_v41 = vadd.f32 1.0, %v2000_v60  ;;  %vm1329_vm8 = vweird.f32 %v1323_v43  ;;  %v1774_v60 = vld [vmem:[%s3675_s5 + $0x70] sm:$0xff] }
 0x480   :  { %2003 = vrcp.f32 %v1345_v56  ;;  %v1357_v9 = vand.u32 2147483648, %v1345_v56  ;;  %v1355_v10 = vand.u32 2147483647, %v1345_v56  ;;  %v1336_v12 = vor.u32 1.1754944e-38, %v1335_v36 }
 0x481   :  { %2005 = vrcp.f32 %v1369_v41  ;;  %vm1334_vm11 = vcmp.eq.f32.partialorder %v1333_v45, 8.507059e+37  ;;  %vm1351_vm12 = vweird.f32 %v1345_v56  ;;  %v1381_v59 = vand.u32 2147483648, %v1369_v41 }
 0x482   :  { %2007 = vtanh.f32 %v1361_v34  ;;  %v1358_v2 = vor.u32 1.1754944e-38, %v1357_v9  ;;  %vm1356_vm14 = vcmp.eq.f32.partialorder %v1355_v10, 8.507059e+37  ;;  %vm1375_vm4 = vweird.f32 %v1369_v41  ;;  %v1770_v34 = vld [vmem:[%s3675_s5 + $0x50] sm:$0xff]  ;;  %v1765_v10 = vld [vmem:[%s3675_s5 + $0x28] sm:$0xff] }
 0x483   :  { %v1379_v19 = vand.u32 2147483647, %v1369_v41  ;;  %v1382_v14 = vor.u32 1.1754944e-38, %v1381_v59  ;;  %v1766_v9 = vld [vmem:[%s3675_s5 + $0x30] sm:$0xff]  ;;  %v3593_v59 = vld [vmem:[%s3674_s6] ss:$0 sm:$0xff] }
 0x484   :  { %v2002_v51 = vpop.eup %2001 }
 0x485   :  { %v1325_v57 = vmul.f32 %v2002_v51, %v1323_v43  ;;  %vm1330_vm7 = vweird.f32 %v2002_v51  ;;  %vm1380_vm6 = vcmp.eq.f32.partialorder %v1379_v19, 8.507059e+37 }
 0x486   :  { %v2004_v38 = vpop.eup %2003  ;;  %vm1331_vm9 = vmor %vm1329_vm8, %vm1330_vm7 }
 0x487   :  { %v1326_v40 = vsub.f32 1.0, %v1325_v57  ;;  %v2006_v46 = vpop.eup %2005  ;;  %v1347_v55 = vmul.f32 %v2004_v38, %v1345_v56  ;;  %vm1352_vm10 = vweird.f32 %v2004_v38  ;;  %v1772_v57 = vld [vmem:[%s3675_s5 + $0x60] sm:$0xff] }
 0x488   :  { %v1371_v44 = vmul.f32 %v2006_v46, %v1369_v41  ;;  %vm1353_vm13 = vmor %vm1351_vm12, %vm1352_vm10  ;;  %v2008_v22 = vpop.eup %2007  ;;  %vm1376_vm0 = vweird.f32 %v2006_v46 }
 0x489   :  { %v1327_v47 = vmul.f32 %v2002_v51, %v1326_v40  ;;  %v1348_v42 = vsub.f32 1.0, %v1347_v55  ;;  %vm1377_vm5 = vmor %vm1375_vm4, %vm1376_vm0 }
 0x48a   :  { %v1372_v49 = vsub.f32 1.0, %v1371_v44 }
 0x48b   :  { %v1328_v52 = vadd.f32 %v2002_v51, %v1327_v47  ;;  %v1349_v11 = vmul.f32 %v2004_v38, %v1348_v42  ;;  %v1769_v47 = vld [vmem:[%s3675_s5 + $0x48] sm:$0xff]  ;;  %v1768_v42 = vld [vmem:[%s3675_s5 + $0x40] sm:$0xff] }
 0x48c   :  { %v1373_v58 = vmul.f32 %v2006_v46, %v1372_v49 }
 0x48d   :  { %v1332_v16 = vsel %vm1331_vm9, %v2002_v51, %v1328_v52  ;;  %v1350_v63 = vadd.f32 %v2004_v38, %v1349_v11  ;;  %v1773_v51 = vld [vmem:[%s3675_s5 + $0x68] sm:$0xff]  ;;  %v1767_v52 = vld [vmem:[%s3675_s5 + $0x38] sm:$0xff] }
 0x48e   :  { %v1337_v27 = vsel %vm1334_vm11, %v1336_v12, %v1332_v16  ;;  %v1374_v25 = vadd.f32 %v2006_v46, %v1373_v58  ;;  %v1764_v12 = vld [vmem:[%s3675_s5 + $0x20] sm:$0xff] }
 0x48f   :  { %v1354_v26 = vsel %vm1353_vm13, %v2004_v38, %v1350_v63  ;;  %v1386_v8 = vmul.f32 %v2008_v22, %v1337_v27  ;;  %v1771_v38 = vld [vmem:[%s3675_s5 + $0x58] sm:$0xff] }
 0x490   :  { %v1359_v5 = vsel %vm1356_vm14, %v1358_v2, %v1354_v26  ;;  %v1378_v4 = vsel %vm1377_vm5, %v2006_v46, %v1374_v25 }
 0x491   :  { %v1385_v62 = vmul.f32 %v1359_v5, %v1225_v28  ;;  %v1383_v37 = vsel %vm1380_vm6, %v1382_v14, %v1378_v4  ;;  %v1763_v5 = vld [vmem:[%s3675_s5 + $0x18] sm:$0xff]  ;;  %v1761_v14 = vld [vmem:[%s3675_s5 + $0x8] sm:$0xff] }
 0x493   :  { %v1387_v15 = vadd.f32 %v1386_v8, %v1385_v62  ;;  %v1762_v8 = vld [vmem:[%s3675_s5 + $0x10] sm:$0xff] }
 0x495   :  { %2009 = vtanh.f32 %v1387_v15  ;;  %v1395_v29 = vsel %vm1392_vm15, %v1387_v15, %v1225_v28 }
 0x496   :  { %1396 = vst [vmem:[#allocation3] sm:$0x3] %v1395_v29 }
 0x49b   :  { %v2010_v13 = vpop.eup %2009 }
 0x49c   :  { %v1389_v6 = vmul.f32 %v2010_v13, %v1383_v37  ;;  %v1802_v13 = vld.sshfl [vmem:[#allocation1] sm:$0xff pattern:$0x73625140] }
 0x49d   :  { %1806 = vst [vmem:[#allocation1] ss:$4 sm:$0xff] %v3593_v59 }
 0x49e   :  { %v1393_v7 = vsel %vm1392_vm15, %v1389_v6, %v3451_v39  ;;  %v1397_v3 = vmul.f32 %v1904_v30, %v1389_v6  ;;  %1808 = vst [vmem:[#allocation1 + $0x1] ss:$4 sm:$0xff] %v3593_v59 }
 0x49f   :  { %1394 = vst [vmem:[#allocation2] sm:$0x3] %v1393_v7 }
 0x4a0   :  { %1399 = vst [vmem:[#allocation5 + $0xa] sm:$0x3] %v1397_v3 }
 0x4a1   :  { %1810 = vst [vmem:[#allocation1 + $0x2] ss:$4 sm:$0xff] %v3593_v59 }
 0x4a2   :  { %1812 = vst [vmem:[#allocation1 + $0x3] ss:$4 sm:$0xff] %v3593_v59 }
 0x4a6   :  { %v3531_v17 = vld [vmem:[#allocation2] sm:$0x3] }
 0x4a7   :  { %1420 = vmatmul.f32.vlgmr.msra.gmra.mxu0 %v3531_v17  ;;  %1440 = vmatmul.f32.vlgmr.msra.gmra.mxu1 %v3531_v17  ;;  %v1757_v18 = vld [vmem:[#allocation5 + $0xa] sm:$0x3] }
 0x4a8   :  { %1460 = vmatmul.f32.vlgmr.msrb.gmra.mxu2 %v3531_v17  ;;  %1480 = vmatmul.f32.vlgmr.msrb.gmra.mxu3 %v3531_v17  ;;  %1797 = vst [vmem:[#allocation1 + $0x21] ss:$4 sm:$0xff] %v1757_v18  ;;  %v1760_v18 = vld [vmem:[%s3675_s5] sm:$0xff] }
 0x4a9   :  { %1825 = vmatpush.msra.mxu0 %v1775_v1 }
 0x4ab   :  { %1826 = vmatpush.msra.mxu0 %v1774_v60 }
 0x4ad   :  { %1827 = vmatpush.msra.mxu0 %v1773_v51 }
 0x4af   :  { %1828 = vmatpush.msra.mxu0 %v1772_v57 }
 0x4b1   :  { %1829 = vmatpush.msra.mxu0 %v1771_v38 }
 0x4b3   :  { %1830 = vmatpush.msra.mxu0 %v1770_v34 }
 0x4b5   :  { %1831 = vmatpush.msra.mxu0 %v1769_v47 }
 0x4b7   :  { %1832 = vmatpush.msra.mxu0 %v1768_v42 }
 0x4b9   :  { %1833 = vmatpush.msra.mxu0 %v1767_v52 }
 0x4bb   :  { %1834 = vmatpush.msra.mxu0 %v1766_v9 }
 0x4bd   :  { %1835 = vmatpush.msra.mxu0 %v1765_v10 }
 0x4bf   :  { %1836 = vmatpush.msra.mxu0 %v1764_v12 }
 0x4c1   :  { %1837 = vmatpush.msra.mxu0 %v1763_v5 }
 0x4c3   :  { %1838 = vmatpush.msra.mxu0 %v1762_v8 }
 0x4c5   :  { %1839 = vmatpush.msra.mxu0 %v1761_v14 }
 0x4c7   :  { %1840 = vmatpush.msra.mxu0 %v1760_v18 }
 0x524   :  { %v1441_v20 = vpop.f32.mrf.mxu1  ;;  %v1421_v32 = vpop.f32.mrf.mxu0 }
 0x525   :  { %v1488_v21 = vrot.slane %v1441_v20, 6 }
 0x527   :  { %v1491_v33 = vsel %vm123_vm1, %v1421_v32, %v1488_v21 }
 0x52b   :  { %v1461_v23 = vpop.f32.mrf.mxu2  ;;  %v1481_v24 = vpop.f32.mrf.mxu3 }
 0x52c   :  { %v1489_v39 = vrot.slane %v1461_v23, 4  ;;  %v1490_v31 = vrot.slane %v1481_v24, 2  ;;  %v1908_v24 = vld [vmem:[%s3673_s1 + $0xc] sm:$0x3] }
 0x52d   :  { %vm1568_vm15 = vcmp.gt.f32.partialorder %v1908_v24, 0.0 }
 0x52e   :  { %v1492_v54 = vsel %vm125_vm2, %v1489_v39, %v1490_v31  ;;  %v1401_v31 = vld [vmem:[#allocation3] sm:$0x3] }
 0x52f   :  { %v1493_v61 = vsel %vm127_vm3, %v1491_v33, %v1492_v54 }
 0x530   :  { %v1495_v35 = vadd.f32 %v1493_v61, %v324_v53 }
 0x532   :  { %v1905_v50 = vmul.f32 -1.442695, %v1495_v35  ;;  %v1516_v43 = vrot.slane %v1495_v35, 2  ;;  %v1540_v0 = vrot.slane %v1495_v35, 6  ;;  %v1537_v27 = vrot.slane %v1495_v35, 4 }
 0x534   :  { %2011 = vpow2.f32 %v1905_v50  ;;  %v1906_v56 = vmul.f32 -1.442695, %v1516_v43  ;;  %v1907_v41 = vmul.f32 -1.442695, %v1540_v0 }
 0x536   :  { %2013 = vpow2.f32 %v1906_v56 }
 0x537   :  { %2015 = vpow2.f32 %v1907_v41 }
 0x53a   :  { %v2012_v40 = vpop.eup %2011 }
 0x53b   :  { %v1499_v46 = vadd.f32 1.0, %v2012_v40 }
 0x53c   :  { %v2014_v55 = vpop.eup %2013 }
 0x53d   :  { %v2016_v36 = vpop.eup %2015  ;;  %2017 = vrcp.f32 %v1499_v46  ;;  %v1521_v44 = vadd.f32 1.0, %v2014_v55  ;;  %v1511_v22 = vand.u32 2147483648, %v1499_v46  ;;  %v1509_v58 = vand.u32 2147483647, %v1499_v46 }
 0x53e   :  { %v3562_v45 = vadd.f32 1.0, %v2016_v36  ;;  %vm1505_vm8 = vweird.f32 %v1499_v46 }
 0x53f   :  { %2019 = vrcp.f32 %v1521_v44  ;;  %v1533_v25 = vand.u32 2147483648, %v1521_v44  ;;  %v1531_v4 = vand.u32 2147483647, %v1521_v44  ;;  %v1512_v6 = vor.u32 1.1754944e-38, %v1511_v22 }
 0x540   :  { %2021 = vrcp.f32 %v3562_v45  ;;  %vm1510_vm11 = vcmp.eq.f32.partialorder %v1509_v58, 8.507059e+37  ;;  %vm1527_vm12 = vweird.f32 %v1521_v44  ;;  %v1557_v35 = vand.u32 2147483648, %v3562_v45 }
 0x541   :  { %2023 = vtanh.f32 %v1537_v27  ;;  %v1534_v21 = vor.u32 1.1754944e-38, %v1533_v25  ;;  %vm1532_vm14 = vcmp.eq.f32.partialorder %v1531_v4, 8.507059e+37  ;;  %vm1551_vm4 = vweird.f32 %v3562_v45 }
 0x542   :  { %v1555_v50 = vand.u32 2147483647, %v3562_v45  ;;  %v1558_v0 = vor.u32 1.1754944e-38, %v1557_v35 }
 0x543   :  { %v2018_v11 = vpop.eup %2017 }
 0x544   :  { %v1501_v16 = vmul.f32 %v2018_v11, %v1499_v46  ;;  %vm1506_vm7 = vweird.f32 %v2018_v11  ;;  %vm1556_vm6 = vcmp.eq.f32.partialorder %v1555_v50, 8.507059e+37  ;;  %v1912_v50 = vld [vmem:[%s3673_s1 + $0xe] sm:$0x3] }
 0x545   :  { %v2020_v49 = vpop.eup %2019  ;;  %vm3595_vm9 = vmor %vm1505_vm8, %vm1506_vm7 }
 0x546   :  { %v1502_v63 = vsub.f32 1.0, %v1501_v16  ;;  %v3580_v2 = vpop.eup %2021  ;;  %v1523_v26 = vmul.f32 %v2020_v49, %v1521_v44  ;;  %vm1528_vm10 = vweird.f32 %v2020_v49 }
 0x547   :  { %v1547_v28 = vmul.f32 %v3580_v2, %v3562_v45  ;;  %vm1529_vm13 = vmor %vm1527_vm12, %vm1528_vm10  ;;  %v2024_v39 = vpop.eup %2023  ;;  %vm1552_vm0 = vweird.f32 %v3580_v2  ;;  %vm1744_vm12 = vcmp.gt.f32.partialorder %v1912_v50, 0.0 }
 0x548   :  { %v1503_v30 = vmul.f32 %v2018_v11, %v1502_v63  ;;  %v1524_v62 = vsub.f32 1.0, %v1523_v26  ;;  %vm1553_vm5 = vmor %vm1551_vm4, %vm1552_vm0 }
 0x549   :  { %v1548_v7 = vsub.f32 1.0, %v1547_v28 }
 0x54a   :  { %v1504_v15 = vadd.f32 %v2018_v11, %v1503_v30  ;;  %v1525_v19 = vmul.f32 %v2020_v49, %v1524_v62 }
 0x54b   :  { %v1549_v33 = vmul.f32 %v3580_v2, %v1548_v7 }
 0x54c   :  { %v1508_v37 = vsel %vm3595_vm9, %v2018_v11, %v1504_v15  ;;  %v1526_v3 = vadd.f32 %v2020_v49, %v1525_v19  ;;  %v3930_v11 = vld [vmem:[#allocation38_spill] sm:$0xff] }
 0x54d   :  { %v1513_v20 = vsel %vm1510_vm11, %v1512_v6, %v1508_v37  ;;  %v1550_v61 = vadd.f32 %v3580_v2, %v1549_v33  ;;  %v328_v10 = vrot.slane %v3930_v11, 6 }
 0x54e   :  { %v1530_v23 = vsel %vm1529_vm13, %v2020_v49, %v1526_v3  ;;  %v1562_v53 = vmul.f32 %v2024_v39, %v1513_v20 }
 0x54f   :  { %v1535_v32 = vsel %vm1532_vm14, %v1534_v21, %v1530_v23  ;;  %v1554_v43 = vsel %vm1553_vm5, %v3580_v2, %v1550_v61 }
 0x550   :  { %v1561_v48 = vmul.f32 %v1535_v32, %v1401_v31  ;;  %v1559_v56 = vsel %vm1556_vm6, %v1558_v0, %v1554_v43 }
 0x552   :  { %v1563_v54 = vadd.f32 %v1562_v53, %v1561_v48 }
 0x554   :  { %2025 = vtanh.f32 %v1563_v54  ;;  %v1571_v1 = vsel %vm1568_vm15, %v1563_v54, %v1401_v31 }
 0x555   :  { %1572 = vst [vmem:[#allocation3] sm:$0x3] %v1571_v1 }
 0x55a   :  { %v2026_v60 = vpop.eup %2025 }
 0x55b   :  { %v1565_v41 = vmul.f32 %v2026_v60, %v1559_v56 }
 0x55c   :  { %v1577_v0 = vld [vmem:[#allocation3] sm:$0x3] }
 0x55d   :  { %v1569_v51 = vsel %vm1568_vm15, %v1565_v41, %v3531_v17  ;;  %v1573_v57 = vmul.f32 %v1908_v24, %v1565_v41  ;;  %v1821_v17 = vld.sshfl [vmem:[#allocation1] sm:$0xff pattern:$0x73625140] }
 0x55e   :  { %1570 = vst [vmem:[#allocation2] sm:$0x3] %v1569_v51 }
 0x55f   :  { %1575 = vst [vmem:[#allocation5 + $0xc] sm:$0x3] %v1573_v57 }
 0x565   :  { %v3625_v38 = vld [vmem:[#allocation2] sm:$0x3] }
 0x566   :  { %1596 = vmatmul.f32.vlgmr.msrb.gmra.mxu0 %v3625_v38  ;;  %1616 = vmatmul.f32.vlgmr.msrb.gmra.mxu1 %v3625_v38  ;;  %v1758_v40 = vld [vmem:[#allocation5 + $0xc] sm:$0x3] }
 0x567   :  { %1636 = vmatmul.f32.vlgmr.msra.gmra.mxu2 %v3625_v38  ;;  %1656 = vmatmul.f32.vlgmr.msra.gmra.mxu3 %v3625_v38  ;;  %1799 = vst [vmem:[#allocation1 + $0x22] ss:$4 sm:$0xff] %v1758_v40 }
 0x56e   :  { %1841 = vmatmul.f32.vlgmr.msra.gmra.mxu0 %v1802_v13 }
 0x5e3   :  { %v1597_v34 = vpop.f32.mrf.mxu0  ;;  %v1617_v46 = vpop.f32.mrf.mxu1 }
 0x5e4   :  { %v1664_v55 = vrot.slane %v1617_v46, 6 }
 0x5e6   :  { %v1667_v9 = vsel %vm123_vm1, %v1597_v34, %v1664_v55 }
 0x5ea   :  { %v1637_v47 = vpop.f32.mrf.mxu2  ;;  %v1657_v36 = vpop.f32.mrf.mxu3 }
 0x5eb   :  { %v1665_v44 = vrot.slane %v1637_v47, 4  ;;  %v1666_v45 = vrot.slane %v1657_v36, 2  ;;  %v1842_v42 = vpop.f32.mrf.mxu0 }
 0x5ec   :  { %v1843_v52 = vadd.f32 %v1842_v42, %v1821_v17 }
 0x5ed   :  { %v1668_v16 = vsel %vm125_vm2, %v1665_v44, %v1666_v45 }
 0x5ee   :  { %v1669_v12 = vsel %vm127_vm3, %v1667_v9, %v1668_v16  ;;  %v1850_v49 = vrot.slane %v1843_v52, 2  ;;  %v1851_v63 = vrot.slane %v1843_v52, 4  ;;  %1862 = vst [vmem:[%s3676_s7] sm:$0x3] %v1843_v52  ;;  %v1852_v2 = vrot.slane %v1843_v52, 6 }
 0x5ef   :  { %v1671_v27 = vadd.f32 %v1669_v12, %v328_v10 }
 0x5f0   :  { %1863 = vst [vmem:[%s3676_s7 + $0x2] sm:$0x3] %v1850_v49 }
 0x5f1   :  { %v1909_v26 = vmul.f32 -1.442695, %v1671_v27  ;;  %v1692_v30 = vrot.slane %v1671_v27, 2  ;;  %v1716_v22 = vrot.slane %v1671_v27, 6  ;;  %1864 = vst [vmem:[%s3676_s7 + $0x4] sm:$0x3] %v1851_v63 }
 0x5f2   :  { %1865 = vst [vmem:[%s3676_s7 + $0x6] sm:$0x3] %v1852_v2  ;;  %v1713_v37 = vrot.slane %v1671_v27, 4 }
 0x5f3   :  { %2027 = vpow2.f32 %v1909_v26  ;;  %v1910_v28 = vmul.f32 -1.442695, %v1692_v30  ;;  %v1911_v5 = vmul.f32 -1.442695, %v1716_v22 }
 0x5f5   :  { %2029 = vpow2.f32 %v1910_v28 }
 0x5f6   :  { %2031 = vpow2.f32 %v1911_v5 }
 0x5f9   :  { %v2028_v58 = vpop.eup %2027 }
 0x5fa   :  { %v1675_v62 = vadd.f32 1.0, %v2028_v58 }
 0x5fb   :  { %v2030_v8 = vpop.eup %2029 }
 0x5fc   :  { %v2032_v15 = vpop.eup %2031  ;;  %2033 = vrcp.f32 %v1675_v62  ;;  %v1697_v25 = vadd.f32 1.0, %v2030_v8  ;;  %v1687_v18 = vand.u32 2147483648, %v1675_v62  ;;  %v1685_v21 = vand.u32 2147483647, %v1675_v62 }
 0x5fd   :  { %v1721_v29 = vadd.f32 1.0, %v2032_v15  ;;  %vm1681_vm2 = vweird.f32 %v1675_v62 }
 0x5fe   :  { %2035 = vrcp.f32 %v1697_v25  ;;  %v1709_v39 = vand.u32 2147483648, %v1697_v25  ;;  %v1707_v32 = vand.u32 2147483647, %v1697_v25  ;;  %v1688_v48 = vor.u32 1.1754944e-38, %v1687_v18 }
 0x5ff   :  { %2037 = vrcp.f32 %v1721_v29  ;;  %vm1686_vm8 = vcmp.eq.f32.partialorder %v1685_v21, 8.507059e+37  ;;  %vm1703_vm9 = vweird.f32 %v1697_v25  ;;  %v1733_v34 = vand.u32 2147483648, %v1721_v29 }
 0x600   :  { %2039 = vtanh.f32 %v1713_v37  ;;  %v1710_v35 = vor.u32 1.1754944e-38, %v1709_v39  ;;  %vm1708_vm11 = vcmp.eq.f32.partialorder %v1707_v32, 8.507059e+37  ;;  %vm1727_vm14 = vweird.f32 %v1721_v29 }
 0x601   :  { %v1731_v55 = vand.u32 2147483647, %v1721_v29  ;;  %v1734_v47 = vor.u32 1.1754944e-38, %v1733_v34 }
 0x602   :  { %v2034_v19 = vpop.eup %2033 }
 0x603   :  { %v1677_v4 = vmul.f32 %v2034_v19, %v1675_v62  ;;  %vm1682_vm1 = vweird.f32 %v2034_v19  ;;  %vm1732_vm0 = vcmp.eq.f32.partialorder %v1731_v55, 8.507059e+37 }
 0x604   :  { %v2036_v14 = vpop.eup %2035  ;;  %vm1683_vm3 = vmor %vm1681_vm2, %vm1682_vm1 }
 0x605   :  { %v1678_v13 = vsub.f32 1.0, %v1677_v4  ;;  %v2038_v6 = vpop.eup %2037  ;;  %v1699_v7 = vmul.f32 %v2036_v14, %v1697_v25  ;;  %vm1704_vm7 = vweird.f32 %v2036_v14 }
 0x606   :  { %v1723_v20 = vmul.f32 %v2038_v6, %v1721_v29  ;;  %vm1705_vm10 = vmor %vm1703_vm9, %vm1704_vm7  ;;  %v2040_v43 = vpop.eup %2039  ;;  %vm1728_vm13 = vweird.f32 %v2038_v6 }
 0x607   :  { %v1679_v3 = vmul.f32 %v2034_v19, %v1678_v13  ;;  %v1700_v23 = vsub.f32 1.0, %v1699_v7  ;;  %vm1729_vm15 = vmor %vm1727_vm14, %vm1728_vm13 }
 0x608   :  { %v1724_v53 = vsub.f32 1.0, %v1723_v20 }
 0x609   :  { %v1680_v24 = vadd.f32 %v2034_v19, %v1679_v3  ;;  %v1701_v31 = vmul.f32 %v2036_v14, %v1700_v23 }
 0x60a   :  { %v1725_v56 = vmul.f32 %v2038_v6, %v1724_v53 }
 0x60b   :  { %v1684_v33 = vsel %vm1683_vm3, %v2034_v19, %v1680_v24  ;;  %v1702_v54 = vadd.f32 %v2036_v14, %v1701_v31 }
 0x60c   :  { %v1689_v61 = vsel %vm1686_vm8, %v1688_v48, %v1684_v33  ;;  %v1726_v40 = vadd.f32 %v2038_v6, %v1725_v56 }
 0x60d   :  { %v1706_v1 = vsel %vm1705_vm10, %v2036_v14, %v1702_v54  ;;  %v1738_v51 = vmul.f32 %v2040_v43, %v1689_v61 }
 0x60e   :  { %v1711_v60 = vsel %vm1708_vm11, %v1710_v35, %v1706_v1  ;;  %v1730_v17 = vsel %vm1729_vm15, %v2038_v6, %v1726_v40 }
 0x60f   :  { %v1737_v41 = vmul.f32 %v1711_v60, %v1577_v0  ;;  %v1735_v44 = vsel %vm1732_vm0, %v1734_v47, %v1730_v17 }
 0x611   :  { %v1739_v57 = vadd.f32 %v1738_v51, %v1737_v41 }
 0x613   :  { %2041 = vtanh.f32 %v1739_v57  ;;  %v1747_v46 = vsel %vm1744_vm12, %v1739_v57, %v1577_v0 }
 0x614   :  { %1748 = vst [vmem:[#allocation3] sm:$0x3] %v1747_v46 }
 0x619   :  { %v2042_v36 = vpop.eup %2041 }
 0x61a   :  { %v1741_v45 = vmul.f32 %v2042_v36, %v1735_v44 }
 0x61c   :  { %v1745_v42 = vsel %vm1744_vm12, %v1741_v45, %v3625_v38  ;;  %v1749_v52 = vmul.f32 %v1912_v50, %v1741_v45 }
 0x61d   :  { %1746 = vst [vmem:[#allocation2] sm:$0x3] %v1745_v42 }
 0x61e   :  { %1751 = vst [vmem:[#allocation5 + $0xe] sm:$0x3] %v1749_v52 }
 0x625   :  { %v1759_v9 = vld [vmem:[#allocation5 + $0xe] sm:$0x3] }
 0x626   :  { %1801 = vst [vmem:[#allocation1 + $0x23] ss:$4 sm:$0xff] %v1759_v9 }
 0x62d   :  { %v1803_v11 = vld.sshfl [vmem:[#allocation1 + $0x20] sm:$0xff pattern:$0x73625140] }
 0x62e   :  { %1814 = vst [vmem:[#allocation1 + $0x20] ss:$4 sm:$0xff] %v3593_v59  ;;  %1844 = vmatmul.f32.gmra.mxu0 %v1803_v11 }
 0x62f   :  { %1816 = vst [vmem:[#allocation1 + $0x21] ss:$4 sm:$0xff] %v3593_v59 }
 0x630   :  { %1818 = vst [vmem:[#allocation1 + $0x22] ss:$4 sm:$0xff] %v3593_v59 }
 0x631   :  { %1820 = vst [vmem:[#allocation1 + $0x23] ss:$4 sm:$0xff] %v3593_v59 }
 0x638   :  { %v1822_v10 = vld.sshfl [vmem:[#allocation1 + $0x20] sm:$0xff pattern:$0x73625140] }
 0x6ab   :  { %v1845_v16 = vpop.f32.mrf.mxu0 }
 0x6ac   :  { %v1846_v12 = vadd.f32 %v1845_v16, %v1822_v10 }
 0x6ae   :  { %v1853_v49 = vrot.slane %v1846_v12, 2  ;;  %v1854_v38 = vrot.slane %v1846_v12, 4  ;;  %v1855_v63 = vrot.slane %v1846_v12, 6  ;;  %1866 = vst [vmem:[%s3676_s7 + $0x8] sm:$0x3] %v1846_v12 }
 0x6b0   :  { %1867 = vst [vmem:[%s3676_s7 + $0xa] sm:$0x3] %v1853_v49 }
 0x6b1   :  { %1868 = vst [vmem:[%s3676_s7 + $0xc] sm:$0x3] %v1854_v38 }
 0x6b2   :  { %1869 = vst [vmem:[%s3676_s7 + $0xe] sm:$0x3] %v1855_v63 }

</bundles_post_ra>
